<compile_context>
chip_gen: v7x
topology: tpu7x:2x2x1
jax: 0.10.0
libtpu: 0.0.40
codegen_flags: <defaults>
</compile_context>

<pallas_src>
import functools

import numpy as np
import jax
import jax.numpy as jnp
from jax import lax
from jax.experimental import pallas as pl
from jax.experimental.pallas import tpu as pltpu

_INV_SQRT2 = 0.7071067811865476


def _gelu(x, approximate=False):
    if approximate:
        # tanh approximation (goes to the EUP); deviates slightly from torch's
        # exact GELU -- gated behind a flag, off by default.
        c = 0.7978845608028654  # sqrt(2/pi)
        return 0.5 * x * (1.0 + jnp.tanh(c * (x + 0.044715 * x * x * x)))
    return 0.5 * x * (1.0 + lax.erf(x * _INV_SQRT2))


def _tsconvnext_kernel(
    x_ref,
    wproj_a_ref, wproj_b_ref, bproj_a_ref, bproj_b_ref,
    w_dw0_ref, b_dw0_ref, w_dw1_ref, b_dw1_ref,
    w1st_a_ref, w1st_b_ref, b1st_ref,
    lnw_ref, lnb_ref,
    wp1_ref, bp1_ref,
    grn_g_ref, grn_b_ref,
    wp2_ref, bp2_ref,
    out_ref,
    pad0_ref, pad1_ref,
    *, T, C, k0, k1, a0, a1, eps, approx_gelu,
):
    cg = C // 2
    p0 = (k0 - 1) // 2
    p1 = (k1 - 1) // 2
    f32 = jnp.float32
    mm_dtype = wproj_a_ref.dtype        # bf16 matmul operands, f32 accumulation

    xb = x_ref[0]                       # (T, C) float32
    xb_mm = xb.astype(mm_dtype)

    # --- projection_linear (1x1 Conv1d == pointwise matmul), split along its
    # output channels into the two depthwise groups so no lane-dim concat/slice
    # is ever needed downstream. ---
    h0 = jnp.dot(xb_mm, wproj_a_ref[...],
                 preferred_element_type=f32) + bproj_a_ref[...]      # (T, cg)
    h1g = jnp.dot(xb_mm, wproj_b_ref[...],
                  preferred_element_type=f32) + bproj_b_ref[...]     # (T, cg)

    # --- multi-scale depthwise convs ('same' zero padding) ---
    # Only the halo rows are zeroed (the interior is fully overwritten every
    # step).  Interiors start at sublane-aligned offsets a0/a1 so the big
    # (T, cg) stores are unmasked.
    # TODO(synk): for very large T*cg a pltpu.roll-based register variant would
    # relieve the per-tap misaligned VMEM loads; kept the scratch-based form
    # here since it scales to realistic T/C without vreg spills.
    if a0 > 0:
        pad0_ref[0:a0, :] = jnp.zeros((a0, cg), f32)
    if p0 > 0:
        pad0_ref[a0 + T:, :] = jnp.zeros((p0, cg), f32)
    pad0_ref[a0:a0 + T, :] = h0

    if a1 > 0:
        pad1_ref[0:a1, :] = jnp.zeros((a1, cg), f32)
    if p1 > 0:
        pad1_ref[a1 + T:, :] = jnp.zeros((p1, cg), f32)
    pad1_ref[a1:a1 + T, :] = h1g

    w0 = w_dw0_ref[...]                 # (k0, cg) loaded once, rows from regs
    y0 = jnp.zeros((T, cg), f32)
    base0 = a0 - p0
    for k in range(k0):
        y0 = y0 + pad0_ref[base0 + k: base0 + k + T, :] * w0[k:k + 1, :]
    y0 = y0 + b_dw0_ref[...]

    w1 = w_dw1_ref[...]                 # (k1, cg)
    y1 = jnp.zeros((T, cg), f32)
    base1 = a1 - p1
    for k in range(k1):
        y1 = y1 + pad1_ref[base1 + k: base1 + k + T, :] * w1[k:k + 1, :]
    y1 = y1 + b_dw1_ref[...]

    # GELU applied per group (== GELU of the concat, elementwise)
    g0 = _gelu(y0, approx_gelu)
    g1 = _gelu(y1, approx_gelu)

    # --- pwconv_1stage, with its reduction split to match the two groups
    # (equivalent to concat -> Linear), then residual with the block input ---
    h1 = (jnp.dot(g0.astype(mm_dtype), w1st_a_ref[...], preferred_element_type=f32)
          + jnp.dot(g1.astype(mm_dtype), w1st_b_ref[...], preferred_element_type=f32)
          + b1st_ref[...])                                           # (T, C)
    r1 = h1 + xb

    # --- LayerNorm over channels (channels_last, eps=1e-6) ---
    mu = jnp.mean(r1, axis=-1, keepdims=True)
    var = jnp.mean((r1 - mu) ** 2, axis=-1, keepdims=True)
    xn = (r1 - mu) / jnp.sqrt(var + eps) * lnw_ref[...] + lnb_ref[...]

    # --- pwconv1 (C -> 4C) + GELU ---
    h2 = jnp.dot(xn.astype(mm_dtype), wp1_ref[...],
                 preferred_element_type=f32) + bp1_ref[...]          # (T, 4C)
    h2 = _gelu(h2, approx_gelu)

    # --- GRN: L2 norm over time, normalized by mean over channels ---
    gx = jnp.sqrt(jnp.sum(h2 * h2, axis=0, keepdims=True))           # (1, 4C)
    nx = gx / (jnp.mean(gx, axis=-1, keepdims=True) + 1e-6)
    h2 = grn_g_ref[...] * (h2 * nx) + grn_b_ref[...] + h2

    # --- pwconv2 (4C -> C) + residual.  DropPath(drop_prob=0.0) == identity ---
    h3 = jnp.dot(h2.astype(mm_dtype), wp2_ref[...],
                 preferred_element_type=f32) + bp2_ref[...]          # (T, C)
    out_ref[0] = r1 + h3


def tsconvnext_pallas(x_nct, params, kernel_sizes=(7, 65), eps=1e-6,
                      matmul_dtype=jnp.bfloat16, approximate_gelu=False):
    N, C, T = x_nct.shape
    k0, k1 = kernel_sizes
    assert C % 2 == 0, "dim must be divisible by num_scale (=2)"
    cg = C // 2
    p0, p1 = (k0 - 1) // 2, (k1 - 1) // 2
    a0 = ((p0 + 7) // 8) * 8            # sublane-aligned interior offsets
    a1 = ((p1 + 7) // 8) * 8

    # TODO(synk): keep activations channels-last end-to-end in the surrounding
    # model to avoid these two full-tensor HBM transposes around the kernel.
    x_ntc = jnp.transpose(x_nct, (0, 2, 1))                          # (N, T, C)

    mm_dt = jnp.float32 if matmul_dtype is None else matmul_dtype
    p = params
    wproj = p["wproj"].astype(mm_dt)
    w1st = p["w1st"].astype(mm_dt)
    ordered = [
        wproj[:, :cg], wproj[:, cg:], p["bproj"][:, :cg], p["bproj"][:, cg:],
        p["w_dw0"], p["b_dw0"], p["w_dw1"], p["b_dw1"],
        w1st[:cg, :], w1st[cg:, :], p["b1st"],
        p["lnw"], p["lnb"],
        p["wp1"].astype(mm_dt), p["bp1"],
        p["grn_g"], p["grn_b"],
        p["wp2"].astype(mm_dt), p["bp2"],
    ]

    kernel = functools.partial(
        _tsconvnext_kernel, T=T, C=C, k0=k0, k1=k1, a0=a0, a1=a1, eps=eps,
        approx_gelu=approximate_gelu)

    def full2d(arr):
        return pl.BlockSpec(arr.shape, lambda b: (0, 0))

    grid_spec = pltpu.PrefetchScalarGridSpec(
        num_scalar_prefetch=0,
        grid=(N,),
        in_specs=[pl.BlockSpec((1, T, C), lambda b: (b, 0, 0))]
                 + [full2d(a) for a in ordered],
        out_specs=pl.BlockSpec((1, T, C), lambda b: (b, 0, 0)),
        scratch_shapes=[
            pltpu.VMEM((a0 + T + p0, cg), jnp.float32),  # padded buf, branch 0
            pltpu.VMEM((a1 + T + p1, cg), jnp.float32),  # padded buf, branch 1
        ],
    )

    out_ntc = pl.pallas_call(
        kernel,
        out_shape=jax.ShapeDtypeStruct((N, T, C), jnp.float32),
        grid_spec=grid_spec,
        compiler_params=pltpu.CompilerParams(
            dimension_semantics=("parallel",),        # batch elements independent
            vmem_limit_bytes=48 * 1024 * 1024,        # headroom beyond default cap
        ),
    )(x_ntc, *ordered)

    return jnp.transpose(out_ntc, (0, 2, 1))                         # (N, C, T)


def init_params(key, C, kernel_sizes):
    """Deterministic synthetic parameters (shapes follow TSConvNeXt.__init__)."""
    k0, k1 = kernel_sizes
    cg = C // 2
    keys = jax.random.split(key, 14)
    s = 0.1

    def nrm(k, shape):
        return s * jax.random.normal(k, shape, jnp.float32)

    # Weights are stored pre-transposed so the kernel does y = x @ W + b.
    # GRN gamma/beta are zeros in torch init; random here so the GRN math is
    # actually exercised (still deterministic).
    return dict(
        wproj=nrm(keys[0], (C, C)),       bproj=nrm(keys[1], (1, C)),
        w_dw0=nrm(keys[2], (k0, cg)),     b_dw0=nrm(keys[3], (1, cg)),
        w_dw1=nrm(keys[4], (k1, cg)),     b_dw1=nrm(keys[5], (1, cg)),
        w1st=nrm(keys[6], (C, C)),        b1st=nrm(keys[7], (1, C)),
        lnw=jnp.ones((1, C), jnp.float32), lnb=jnp.zeros((1, C), jnp.float32),
        wp1=nrm(keys[8], (C, 4 * C)),     bp1=nrm(keys[9], (1, 4 * C)),
        grn_g=nrm(keys[10], (1, 4 * C)),  grn_b=nrm(keys[11], (1, 4 * C)),
        wp2=nrm(keys[12], (4 * C, C)),    bp2=nrm(keys[13], (1, C)),
    )


def tsconvnext_reference(x_nct, params, kernel_sizes=(7, 65), eps=1e-6,
                         matmul_dtype=None):
    """Pure-JAX reference replicating the PyTorch forward (for validation).

    matmul_dtype=None      -> full f32 (PyTorch semantics)
    matmul_dtype=bfloat16  -> matmul operands rounded to bf16, f32 accumulation
                              (matches the kernel's MXU numerics closely)
    """
    k0, k1 = kernel_sizes
    N, C, T = x_nct.shape
    cg = C // 2
    prec = lax.Precision.HIGHEST

    def cast(a):
        if matmul_dtype is None:
            return a
        return a.astype(matmul_dtype).astype(jnp.float32)

    def mm(a, w, b):
        return jnp.einsum("ntc,cd->ntd", cast(a), cast(w), precision=prec) + b

    x = jnp.transpose(x_nct, (0, 2, 1))                              # (N, T, C)

    h = mm(x, params["wproj"], params["bproj"])

    def dwconv(z, w, b, k):
        p = (k - 1) // 2
        zp = jnp.pad(z, ((0, 0), (p, p), (0, 0)))
        y = sum(zp[:, i:i + T, :] * w[i] for i in range(k))
        return y + b

    y0 = dwconv(h[:, :, :cg], params["w_dw0"], params["b_dw0"], k0)
    y1 = dwconv(h[:, :, cg:], params["w_dw1"], params["b_dw1"], k1)
    a = _gelu(jnp.concatenate([y0, y1], axis=-1))

    h1 = mm(a, params["w1st"], params["b1st"])
    r1 = h1 + x

    mu = jnp.mean(r1, axis=-1, keepdims=True)
    var = jnp.mean((r1 - mu) ** 2, axis=-1, keepdims=True)
    xn = (r1 - mu) / jnp.sqrt(var + eps) * params["lnw"] + params["lnb"]

    h2 = _gelu(mm(xn, params["wp1"], params["bp1"]))
    gx = jnp.sqrt(jnp.sum(h2 * h2, axis=1, keepdims=True))
    nx = gx / (jnp.mean(gx, axis=-1, keepdims=True) + 1e-6)
    h2 = params["grn_g"] * (h2 * nx) + params["grn_b"] + h2

    h3 = mm(h2, params["wp2"], params["bp2"])
    return jnp.transpose(r1 + h3, (0, 2, 1))


if __name__ == "__main__":
    N, C, T = 2, 16, 32          # batch, dim (channels), sequence length
    kernel_sizes = (7, 65)       # TSConvNeXt default multi-scale kernels

    key = jax.random.PRNGKey(0)
    kx, kp = jax.random.split(key)
    x = jax.random.normal(kx, (N, C, T), jnp.float32)  # PyTorch (N, C, T) layout
    params = init_params(kp, C, kernel_sizes)

    out = tsconvnext_pallas(x, params, kernel_sizes)
    out = jax.block_until_ready(out)
    out_np = np.asarray(out)

    # Tight check vs. a precision-matched (bf16-matmul) reference.
    ref_matched = tsconvnext_reference(x, params, kernel_sizes,
                                       matmul_dtype=jnp.bfloat16)
    np.testing.assert_allclose(out_np, np.asarray(ref_matched), rtol=5e-3, atol=5e-3)

    # Loose check vs. the full-f32 (PyTorch-semantics) reference.
    ref_f32 = tsconvnext_reference(x, params, kernel_sizes, matmul_dtype=None)
    np.testing.assert_allclose(out_np, np.asarray(ref_f32), rtol=3e-2, atol=3e-2)

    print("KERNEL_OK")
</pallas_src>

<mosaic_0001>
module attributes {stable_mosaic.version = 11 : i64} {
  func.func @_tsconvnext_kernel(%arg0: i32, %arg1: memref<1x32x16xf32, #tpu.memory_space<vmem>>, %arg2: memref<16x8xbf16, #tpu.memory_space<vmem>>, %arg3: memref<16x8xbf16, #tpu.memory_space<vmem>>, %arg4: memref<1x8xf32, #tpu.memory_space<vmem>>, %arg5: memref<1x8xf32, #tpu.memory_space<vmem>>, %arg6: memref<7x8xf32, #tpu.memory_space<vmem>>, %arg7: memref<1x8xf32, #tpu.memory_space<vmem>>, %arg8: memref<65x8xf32, #tpu.memory_space<vmem>>, %arg9: memref<1x8xf32, #tpu.memory_space<vmem>>, %arg10: memref<8x16xbf16, #tpu.memory_space<vmem>>, %arg11: memref<8x16xbf16, #tpu.memory_space<vmem>>, %arg12: memref<1x16xf32, #tpu.memory_space<vmem>>, %arg13: memref<1x16xf32, #tpu.memory_space<vmem>>, %arg14: memref<1x16xf32, #tpu.memory_space<vmem>>, %arg15: memref<16x64xbf16, #tpu.memory_space<vmem>>, %arg16: memref<1x64xf32, #tpu.memory_space<vmem>>, %arg17: memref<1x64xf32, #tpu.memory_space<vmem>>, %arg18: memref<1x64xf32, #tpu.memory_space<vmem>>, %arg19: memref<64x16xbf16, #tpu.memory_space<vmem>>, %arg20: memref<1x16xf32, #tpu.memory_space<vmem>>, %arg21: memref<1x32x16xf32, #tpu.memory_space<vmem>>, %arg22: memref<43x8xf32, #tpu.memory_space<vmem>>, %arg23: memref<96x8xf32, #tpu.memory_space<vmem>>) attributes {dimension_semantics = [#tpu.dimension_semantics<parallel>], iteration_bounds = array<i64: 2>, scalar_prefetch = 0 : i64, scratch_operands = 2 : i64, tpu.core_type = #tpu.core_type<tc>, window_params = [{transform_indices = @transform_0, window_bounds = array<i64: 1, 32, 16>}, {pipeline_mode = #tpu.pipeline_mode<synchronous>, transform_indices = @transform_1, window_bounds = array<i64: 16, 8>}, {pipeline_mode = #tpu.pipeline_mode<synchronous>, transform_indices = @transform_2, window_bounds = array<i64: 16, 8>}, {pipeline_mode = #tpu.pipeline_mode<synchronous>, transform_indices = @transform_3, window_bounds = array<i64: 1, 8>}, {pipeline_mode = #tpu.pipeline_mode<synchronous>, transform_indices = @transform_4, window_bounds = array<i64: 1, 8>}, {pipeline_mode = #tpu.pipeline_mode<synchronous>, transform_indices = @transform_5, window_bounds = array<i64: 7, 8>}, {pipeline_mode = #tpu.pipeline_mode<synchronous>, transform_indices = @transform_6, window_bounds = array<i64: 1, 8>}, {pipeline_mode = #tpu.pipeline_mode<synchronous>, transform_indices = @transform_7, window_bounds = array<i64: 65, 8>}, {pipeline_mode = #tpu.pipeline_mode<synchronous>, transform_indices = @transform_8, window_bounds = array<i64: 1, 8>}, {pipeline_mode = #tpu.pipeline_mode<synchronous>, transform_indices = @transform_9, window_bounds = array<i64: 8, 16>}, {pipeline_mode = #tpu.pipeline_mode<synchronous>, transform_indices = @transform_10, window_bounds = array<i64: 8, 16>}, {pipeline_mode = #tpu.pipeline_mode<synchronous>, transform_indices = @transform_11, window_bounds = array<i64: 1, 16>}, {pipeline_mode = #tpu.pipeline_mode<synchronous>, transform_indices = @transform_12, window_bounds = array<i64: 1, 16>}, {pipeline_mode = #tpu.pipeline_mode<synchronous>, transform_indices = @transform_13, window_bounds = array<i64: 1, 16>}, {pipeline_mode = #tpu.pipeline_mode<synchronous>, transform_indices = @transform_14, window_bounds = array<i64: 16, 64>}, {pipeline_mode = #tpu.pipeline_mode<synchronous>, transform_indices = @transform_15, window_bounds = array<i64: 1, 64>}, {pipeline_mode = #tpu.pipeline_mode<synchronous>, transform_indices = @transform_16, window_bounds = array<i64: 1, 64>}, {pipeline_mode = #tpu.pipeline_mode<synchronous>, transform_indices = @transform_17, window_bounds = array<i64: 1, 64>}, {pipeline_mode = #tpu.pipeline_mode<synchronous>, transform_indices = @transform_18, window_bounds = array<i64: 64, 16>}, {pipeline_mode = #tpu.pipeline_mode<synchronous>, transform_indices = @transform_19, window_bounds = array<i64: 1, 16>}, {transform_indices = @transform_20, window_bounds = array<i64: 1, 32, 16>}]} {
    %c0 = arith.constant 0 : index
    %c0_0 = arith.constant 0 : index
    %c0_1 = arith.constant 0 : index
    %0 = vector.load %arg1[%c0, %c0_0, %c0_1] : memref<1x32x16xf32, #tpu.memory_space<vmem>>, vector<1x32x16xf32>
    %1 = vector.shape_cast %0 : vector<1x32x16xf32> to vector<32x16xf32>
    %2 = arith.truncf %1 : vector<32x16xf32> to vector<32x16xbf16>
    %c0_2 = arith.constant 0 : index
    %c0_3 = arith.constant 0 : index
    %3 = vector.load %arg2[%c0_2, %c0_3] : memref<16x8xbf16, #tpu.memory_space<vmem>>, vector<16x8xbf16>
    %cst = arith.constant dense<0.000000e+00> : vector<32x8xf32>
    %4 = tpu.matmul %2, %3, %cst {dimension_numbers = #tpu.dot_dimension_numbers<[1], [0], [0], [1], [0, 0, 1, 1], [], []>} : vector<32x16xbf16>, vector<16x8xbf16>, vector<32x8xf32> -> vector<32x8xf32>
    %c0_4 = arith.constant 0 : index
    %c0_5 = arith.constant 0 : index
    %5 = vector.load %arg4[%c0_4, %c0_5] : memref<1x8xf32, #tpu.memory_space<vmem>>, vector<1x8xf32>
    %6 = vector.broadcast %5 : vector<1x8xf32> to vector<32x8xf32>
    %7 = arith.addf %4, %6 : vector<32x8xf32>
    %c0_6 = arith.constant 0 : index
    %c0_7 = arith.constant 0 : index
    %8 = vector.load %arg3[%c0_6, %c0_7] : memref<16x8xbf16, #tpu.memory_space<vmem>>, vector<16x8xbf16>
    %cst_8 = arith.constant dense<0.000000e+00> : vector<32x8xf32>
    %9 = tpu.matmul %2, %8, %cst_8 {dimension_numbers = #tpu.dot_dimension_numbers<[1], [0], [0], [1], [0, 0, 1, 1], [], []>} : vector<32x16xbf16>, vector<16x8xbf16>, vector<32x8xf32> -> vector<32x8xf32>
    %c0_9 = arith.constant 0 : index
    %c0_10 = arith.constant 0 : index
    %10 = vector.load %arg5[%c0_9, %c0_10] : memref<1x8xf32, #tpu.memory_space<vmem>>, vector<1x8xf32>
    %11 = vector.broadcast %10 : vector<1x8xf32> to vector<32x8xf32>
    %12 = arith.addf %9, %11 : vector<32x8xf32>
    %cst_11 = arith.constant 0.000000e+00 : f32
    %13 = vector.broadcast %cst_11 : f32 to vector<8x8xf32>
    %c0_12 = arith.constant 0 : index
    %c0_13 = arith.constant 0 : index
    %14 = vector.load %arg22[%c0_12, %c0_13] : memref<43x8xf32, #tpu.memory_space<vmem>>, vector<8x8xf32>
    tpu.vector_store %arg22[%c0_12, %c0_13], %13 {strides = array<i32>} : memref<43x8xf32, #tpu.memory_space<vmem>>, vector<8x8xf32>,
    %cst_14 = arith.constant 0.000000e+00 : f32
    %15 = vector.broadcast %cst_14 : f32 to vector<3x8xf32>
    %c40 = arith.constant 40 : index
    %c0_15 = arith.constant 0 : index
    %16 = vector.load %arg22[%c40, %c0_15] : memref<43x8xf32, #tpu.memory_space<vmem>>, vector<3x8xf32>
    tpu.vector_store %arg22[%c40, %c0_15], %15 {strides = array<i32>} : memref<43x8xf32, #tpu.memory_space<vmem>>, vector<3x8xf32>,
    %c8 = arith.constant 8 : index
    %c0_16 = arith.constant 0 : index
    %17 = vector.load %arg22[%c8, %c0_16] : memref<43x8xf32, #tpu.memory_space<vmem>>, vector<32x8xf32>
    tpu.vector_store %arg22[%c8, %c0_16], %7 {strides = array<i32>} : memref<43x8xf32, #tpu.memory_space<vmem>>, vector<32x8xf32>,
    %cst_17 = arith.constant 0.000000e+00 : f32
    %18 = vector.broadcast %cst_17 : f32 to vector<32x8xf32>
    %c0_18 = arith.constant 0 : index
    %c0_19 = arith.constant 0 : index
    %19 = vector.load %arg23[%c0_18, %c0_19] : memref<96x8xf32, #tpu.memory_space<vmem>>, vector<32x8xf32>
    tpu.vector_store %arg23[%c0_18, %c0_19], %18 {strides = array<i32>} : memref<96x8xf32, #tpu.memory_space<vmem>>, vector<32x8xf32>,
    %cst_20 = arith.constant 0.000000e+00 : f32
    %20 = vector.broadcast %cst_20 : f32 to vector<32x8xf32>
    %c64 = arith.constant 64 : index
    %c0_21 = arith.constant 0 : index
    %21 = vector.load %arg23[%c64, %c0_21] : memref<96x8xf32, #tpu.memory_space<vmem>>, vector<32x8xf32>
    tpu.vector_store %arg23[%c64, %c0_21], %20 {strides = array<i32>} : memref<96x8xf32, #tpu.memory_space<vmem>>, vector<32x8xf32>,
    %c32 = arith.constant 32 : index
    %c0_22 = arith.constant 0 : index
    %22 = vector.load %arg23[%c32, %c0_22] : memref<96x8xf32, #tpu.memory_space<vmem>>, vector<32x8xf32>
    tpu.vector_store %arg23[%c32, %c0_22], %12 {strides = array<i32>} : memref<96x8xf32, #tpu.memory_space<vmem>>, vector<32x8xf32>,
    %c0_23 = arith.constant 0 : index
    %c0_24 = arith.constant 0 : index
    %23 = vector.load %arg6[%c0_23, %c0_24] : memref<7x8xf32, #tpu.memory_space<vmem>>, vector<7x8xf32>
    %cst_25 = arith.constant 0.000000e+00 : f32
    %24 = vector.broadcast %cst_25 : f32 to vector<32x8xf32>
    %c5 = arith.constant 5 : index
    %c0_26 = arith.constant 0 : index
    %25 = vector.load %arg22[%c5, %c0_26] : memref<43x8xf32, #tpu.memory_space<vmem>>, vector<32x8xf32>
    %26 = vector.extract_strided_slice %23 {offsets = [0, 0], sizes = [1, 8], strides = [1, 1]} : vector<7x8xf32> to vector<1x8xf32>
    %27 = vector.broadcast %26 : vector<1x8xf32> to vector<32x8xf32>
    %28 = arith.mulf %25, %27 : vector<32x8xf32>
    %29 = arith.addf %24, %28 : vector<32x8xf32>
    %c6 = arith.constant 6 : index
    %c0_27 = arith.constant 0 : index
    %30 = vector.load %arg22[%c6, %c0_27] : memref<43x8xf32, #tpu.memory_space<vmem>>, vector<32x8xf32>
    %31 = vector.extract_strided_slice %23 {offsets = [1, 0], sizes = [1, 8], strides = [1, 1]} : vector<7x8xf32> to vector<1x8xf32>
    %32 = vector.broadcast %31 : vector<1x8xf32> to vector<32x8xf32>
    %33 = arith.mulf %30, %32 : vector<32x8xf32>
    %34 = arith.addf %29, %33 : vector<32x8xf32>
    %c7 = arith.constant 7 : index
    %c0_28 = arith.constant 0 : index
    %35 = vector.load %arg22[%c7, %c0_28] : memref<43x8xf32, #tpu.memory_space<vmem>>, vector<32x8xf32>
    %36 = vector.extract_strided_slice %23 {offsets = [2, 0], sizes = [1, 8], strides = [1, 1]} : vector<7x8xf32> to vector<1x8xf32>
    %37 = vector.broadcast %36 : vector<1x8xf32> to vector<32x8xf32>
    %38 = arith.mulf %35, %37 : vector<32x8xf32>
    %39 = arith.addf %34, %38 : vector<32x8xf32>
    %c8_29 = arith.constant 8 : index
    %c0_30 = arith.constant 0 : index
    %40 = vector.load %arg22[%c8_29, %c0_30] : memref<43x8xf32, #tpu.memory_space<vmem>>, vector<32x8xf32>
    %41 = vector.extract_strided_slice %23 {offsets = [3, 0], sizes = [1, 8], strides = [1, 1]} : vector<7x8xf32> to vector<1x8xf32>
    %42 = vector.broadcast %41 : vector<1x8xf32> to vector<32x8xf32>
    %43 = arith.mulf %40, %42 : vector<32x8xf32>
    %44 = arith.addf %39, %43 : vector<32x8xf32>
    %c9 = arith.constant 9 : index
    %c0_31 = arith.constant 0 : index
    %45 = vector.load %arg22[%c9, %c0_31] : memref<43x8xf32, #tpu.memory_space<vmem>>, vector<32x8xf32>
    %46 = vector.extract_strided_slice %23 {offsets = [4, 0], sizes = [1, 8], strides = [1, 1]} : vector<7x8xf32> to vector<1x8xf32>
    %47 = vector.broadcast %46 : vector<1x8xf32> to vector<32x8xf32>
    %48 = arith.mulf %45, %47 : vector<32x8xf32>
    %49 = arith.addf %44, %48 : vector<32x8xf32>
    %c10 = arith.constant 10 : index
    %c0_32 = arith.constant 0 : index
    %50 = vector.load %arg22[%c10, %c0_32] : memref<43x8xf32, #tpu.memory_space<vmem>>, vector<32x8xf32>
    %51 = vector.extract_strided_slice %23 {offsets = [5, 0], sizes = [1, 8], strides = [1, 1]} : vector<7x8xf32> to vector<1x8xf32>
    %52 = vector.broadcast %51 : vector<1x8xf32> to vector<32x8xf32>
    %53 = arith.mulf %50, %52 : vector<32x8xf32>
    %54 = arith.addf %49, %53 : vector<32x8xf32>
    %c11 = arith.constant 11 : index
    %c0_33 = arith.constant 0 : index
    %55 = vector.load %arg22[%c11, %c0_33] : memref<43x8xf32, #tpu.memory_space<vmem>>, vector<32x8xf32>
    %56 = vector.extract_strided_slice %23 {offsets = [6, 0], sizes = [1, 8], strides = [1, 1]} : vector<7x8xf32> to vector<1x8xf32>
    %57 = vector.broadcast %56 : vector<1x8xf32> to vector<32x8xf32>
    %58 = arith.mulf %55, %57 : vector<32x8xf32>
    %59 = arith.addf %54, %58 : vector<32x8xf32>
    %c0_34 = arith.constant 0 : index
    %c0_35 = arith.constant 0 : index
    %60 = vector.load %arg7[%c0_34, %c0_35] : memref<1x8xf32, #tpu.memory_space<vmem>>, vector<1x8xf32>
    %61 = vector.broadcast %60 : vector<1x8xf32> to vector<32x8xf32>
    %62 = arith.addf %59, %61 : vector<32x8xf32>
    %c0_36 = arith.constant 0 : index
    %c0_37 = arith.constant 0 : index
    %63 = vector.load %arg8[%c0_36, %c0_37] : memref<65x8xf32, #tpu.memory_space<vmem>>, vector<65x8xf32>
    %cst_38 = arith.constant 0.000000e+00 : f32
    %64 = vector.broadcast %cst_38 : f32 to vector<32x8xf32>
    %c0_39 = arith.constant 0 : index
    %c0_40 = arith.constant 0 : index
    %65 = vector.load %arg23[%c0_39, %c0_40] : memref<96x8xf32, #tpu.memory_space<vmem>>, vector<32x8xf32>
    %66 = vector.extract_strided_slice %63 {offsets = [0, 0], sizes = [1, 8], strides = [1, 1]} : vector<65x8xf32> to vector<1x8xf32>
    %67 = vector.broadcast %66 : vector<1x8xf32> to vector<32x8xf32>
    %68 = arith.mulf %65, %67 : vector<32x8xf32>
    %69 = arith.addf %64, %68 : vector<32x8xf32>
    %c1 = arith.constant 1 : index
    %c0_41 = arith.constant 0 : index
    %70 = vector.load %arg23[%c1, %c0_41] : memref<96x8xf32, #tpu.memory_space<vmem>>, vector<32x8xf32>
    %71 = vector.extract_strided_slice %63 {offsets = [1, 0], sizes = [1, 8], strides = [1, 1]} : vector<65x8xf32> to vector<1x8xf32>
    %72 = vector.broadcast %71 : vector<1x8xf32> to vector<32x8xf32>
    %73 = arith.mulf %70, %72 : vector<32x8xf32>
    %74 = arith.addf %69, %73 : vector<32x8xf32>
    %c2 = arith.constant 2 : index
    %c0_42 = arith.constant 0 : index
    %75 = vector.load %arg23[%c2, %c0_42] : memref<96x8xf32, #tpu.memory_space<vmem>>, vector<32x8xf32>
    %76 = vector.extract_strided_slice %63 {offsets = [2, 0], sizes = [1, 8], strides = [1, 1]} : vector<65x8xf32> to vector<1x8xf32>
    %77 = vector.broadcast %76 : vector<1x8xf32> to vector<32x8xf32>
    %78 = arith.mulf %75, %77 : vector<32x8xf32>
    %79 = arith.addf %74, %78 : vector<32x8xf32>
    %c3 = arith.constant 3 : index
    %c0_43 = arith.constant 0 : index
    %80 = vector.load %arg23[%c3, %c0_43] : memref<96x8xf32, #tpu.memory_space<vmem>>, vector<32x8xf32>
    %81 = vector.extract_strided_slice %63 {offsets = [3, 0], sizes = [1, 8], strides = [1, 1]} : vector<65x8xf32> to vector<1x8xf32>
    %82 = vector.broadcast %81 : vector<1x8xf32> to vector<32x8xf32>
    %83 = arith.mulf %80, %82 : vector<32x8xf32>
    %84 = arith.addf %79, %83 : vector<32x8xf32>
    %c4 = arith.constant 4 : index
    %c0_44 = arith.constant 0 : index
    %85 = vector.load %arg23[%c4, %c0_44] : memref<96x8xf32, #tpu.memory_space<vmem>>, vector<32x8xf32>
    %86 = vector.extract_strided_slice %63 {offsets = [4, 0], sizes = [1, 8], strides = [1, 1]} : vector<65x8xf32> to vector<1x8xf32>
    %87 = vector.broadcast %86 : vector<1x8xf32> to vector<32x8xf32>
    %88 = arith.mulf %85, %87 : vector<32x8xf32>
    %89 = arith.addf %84, %88 : vector<32x8xf32>
    %c5_45 = arith.constant 5 : index
    %c0_46 = arith.constant 0 : index
    %90 = vector.load %arg23[%c5_45, %c0_46] : memref<96x8xf32, #tpu.memory_space<vmem>>, vector<32x8xf32>
    %91 = vector.extract_strided_slice %63 {offsets = [5, 0], sizes = [1, 8], strides = [1, 1]} : vector<65x8xf32> to vector<1x8xf32>
    %92 = vector.broadcast %91 : vector<1x8xf32> to vector<32x8xf32>
    %93 = arith.mulf %90, %92 : vector<32x8xf32>
    %94 = arith.addf %89, %93 : vector<32x8xf32>
    %c6_47 = arith.constant 6 : index
    %c0_48 = arith.constant 0 : index
    %95 = vector.load %arg23[%c6_47, %c0_48] : memref<96x8xf32, #tpu.memory_space<vmem>>, vector<32x8xf32>
    %96 = vector.extract_strided_slice %63 {offsets = [6, 0], sizes = [1, 8], strides = [1, 1]} : vector<65x8xf32> to vector<1x8xf32>
    %97 = vector.broadcast %96 : vector<1x8xf32> to vector<32x8xf32>
    %98 = arith.mulf %95, %97 : vector<32x8xf32>
    %99 = arith.addf %94, %98 : vector<32x8xf32>
    %c7_49 = arith.constant 7 : index
    %c0_50 = arith.constant 0 : index
    %100 = vector.load %arg23[%c7_49, %c0_50] : memref<96x8xf32, #tpu.memory_space<vmem>>, vector<32x8xf32>
    %101 = vector.extract_strided_slice %63 {offsets = [7, 0], sizes = [1, 8], strides = [1, 1]} : vector<65x8xf32> to vector<1x8xf32>
    %102 = vector.broadcast %101 : vector<1x8xf32> to vector<32x8xf32>
    %103 = arith.mulf %100, %102 : vector<32x8xf32>
    %104 = arith.addf %99, %103 : vector<32x8xf32>
    %c8_51 = arith.constant 8 : index
    %c0_52 = arith.constant 0 : index
    %105 = vector.load %arg23[%c8_51, %c0_52] : memref<96x8xf32, #tpu.memory_space<vmem>>, vector<32x8xf32>
    %106 = vector.extract_strided_slice %63 {offsets = [8, 0], sizes = [1, 8], strides = [1, 1]} : vector<65x8xf32> to vector<1x8xf32>
    %107 = vector.broadcast %106 : vector<1x8xf32> to vector<32x8xf32>
    %108 = arith.mulf %105, %107 : vector<32x8xf32>
    %109 = arith.addf %104, %108 : vector<32x8xf32>
    %c9_53 = arith.constant 9 : index
    %c0_54 = arith.constant 0 : index
    %110 = vector.load %arg23[%c9_53, %c0_54] : memref<96x8xf32, #tpu.memory_space<vmem>>, vector<32x8xf32>
    %111 = vector.extract_strided_slice %63 {offsets = [9, 0], sizes = [1, 8], strides = [1, 1]} : vector<65x8xf32> to vector<1x8xf32>
    %112 = vector.broadcast %111 : vector<1x8xf32> to vector<32x8xf32>
    %113 = arith.mulf %110, %112 : vector<32x8xf32>
    %114 = arith.addf %109, %113 : vector<32x8xf32>
    %c10_55 = arith.constant 10 : index
    %c0_56 = arith.constant 0 : index
    %115 = vector.load %arg23[%c10_55, %c0_56] : memref<96x8xf32, #tpu.memory_space<vmem>>, vector<32x8xf32>
    %116 = vector.extract_strided_slice %63 {offsets = [10, 0], sizes = [1, 8], strides = [1, 1]} : vector<65x8xf32> to vector<1x8xf32>
    %117 = vector.broadcast %116 : vector<1x8xf32> to vector<32x8xf32>
    %118 = arith.mulf %115, %117 : vector<32x8xf32>
    %119 = arith.addf %114, %118 : vector<32x8xf32>
    %c11_57 = arith.constant 11 : index
    %c0_58 = arith.constant 0 : index
    %120 = vector.load %arg23[%c11_57, %c0_58] : memref<96x8xf32, #tpu.memory_space<vmem>>, vector<32x8xf32>
    %121 = vector.extract_strided_slice %63 {offsets = [11, 0], sizes = [1, 8], strides = [1, 1]} : vector<65x8xf32> to vector<1x8xf32>
    %122 = vector.broadcast %121 : vector<1x8xf32> to vector<32x8xf32>
    %123 = arith.mulf %120, %122 : vector<32x8xf32>
    %124 = arith.addf %119, %123 : vector<32x8xf32>
    %c12 = arith.constant 12 : index
    %c0_59 = arith.constant 0 : index
    %125 = vector.load %arg23[%c12, %c0_59] : memref<96x8xf32, #tpu.memory_space<vmem>>, vector<32x8xf32>
    %126 = vector.extract_strided_slice %63 {offsets = [12, 0], sizes = [1, 8], strides = [1, 1]} : vector<65x8xf32> to vector<1x8xf32>
    %127 = vector.broadcast %126 : vector<1x8xf32> to vector<32x8xf32>
    %128 = arith.mulf %125, %127 : vector<32x8xf32>
    %129 = arith.addf %124, %128 : vector<32x8xf32>
    %c13 = arith.constant 13 : index
    %c0_60 = arith.constant 0 : index
    %130 = vector.load %arg23[%c13, %c0_60] : memref<96x8xf32, #tpu.memory_space<vmem>>, vector<32x8xf32>
    %131 = vector.extract_strided_slice %63 {offsets = [13, 0], sizes = [1, 8], strides = [1, 1]} : vector<65x8xf32> to vector<1x8xf32>
    %132 = vector.broadcast %131 : vector<1x8xf32> to vector<32x8xf32>
    %133 = arith.mulf %130, %132 : vector<32x8xf32>
    %134 = arith.addf %129, %133 : vector<32x8xf32>
    %c14 = arith.constant 14 : index
    %c0_61 = arith.constant 0 : index
    %135 = vector.load %arg23[%c14, %c0_61] : memref<96x8xf32, #tpu.memory_space<vmem>>, vector<32x8xf32>
    %136 = vector.extract_strided_slice %63 {offsets = [14, 0], sizes = [1, 8], strides = [1, 1]} : vector<65x8xf32> to vector<1x8xf32>
    %137 = vector.broadcast %136 : vector<1x8xf32> to vector<32x8xf32>
    %138 = arith.mulf %135, %137 : vector<32x8xf32>
    %139 = arith.addf %134, %138 : vector<32x8xf32>
    %c15 = arith.constant 15 : index
    %c0_62 = arith.constant 0 : index
    %140 = vector.load %arg23[%c15, %c0_62] : memref<96x8xf32, #tpu.memory_space<vmem>>, vector<32x8xf32>
    %141 = vector.extract_strided_slice %63 {offsets = [15, 0], sizes = [1, 8], strides = [1, 1]} : vector<65x8xf32> to vector<1x8xf32>
    %142 = vector.broadcast %141 : vector<1x8xf32> to vector<32x8xf32>
    %143 = arith.mulf %140, %142 : vector<32x8xf32>
    %144 = arith.addf %139, %143 : vector<32x8xf32>
    %c16 = arith.constant 16 : index
    %c0_63 = arith.constant 0 : index
    %145 = vector.load %arg23[%c16, %c0_63] : memref<96x8xf32, #tpu.memory_space<vmem>>, vector<32x8xf32>
    %146 = vector.extract_strided_slice %63 {offsets = [16, 0], sizes = [1, 8], strides = [1, 1]} : vector<65x8xf32> to vector<1x8xf32>
    %147 = vector.broadcast %146 : vector<1x8xf32> to vector<32x8xf32>
    %148 = arith.mulf %145, %147 : vector<32x8xf32>
    %149 = arith.addf %144, %148 : vector<32x8xf32>
    %c17 = arith.constant 17 : index
    %c0_64 = arith.constant 0 : index
    %150 = vector.load %arg23[%c17, %c0_64] : memref<96x8xf32, #tpu.memory_space<vmem>>, vector<32x8xf32>
    %151 = vector.extract_strided_slice %63 {offsets = [17, 0], sizes = [1, 8], strides = [1, 1]} : vector<65x8xf32> to vector<1x8xf32>
    %152 = vector.broadcast %151 : vector<1x8xf32> to vector<32x8xf32>
    %153 = arith.mulf %150, %152 : vector<32x8xf32>
    %154 = arith.addf %149, %153 : vector<32x8xf32>
    %c18 = arith.constant 18 : index
    %c0_65 = arith.constant 0 : index
    %155 = vector.load %arg23[%c18, %c0_65] : memref<96x8xf32, #tpu.memory_space<vmem>>, vector<32x8xf32>
    %156 = vector.extract_strided_slice %63 {offsets = [18, 0], sizes = [1, 8], strides = [1, 1]} : vector<65x8xf32> to vector<1x8xf32>
    %157 = vector.broadcast %156 : vector<1x8xf32> to vector<32x8xf32>
    %158 = arith.mulf %155, %157 : vector<32x8xf32>
    %159 = arith.addf %154, %158 : vector<32x8xf32>
    %c19 = arith.constant 19 : index
    %c0_66 = arith.constant 0 : index
    %160 = vector.load %arg23[%c19, %c0_66] : memref<96x8xf32, #tpu.memory_space<vmem>>, vector<32x8xf32>
    %161 = vector.extract_strided_slice %63 {offsets = [19, 0], sizes = [1, 8], strides = [1, 1]} : vector<65x8xf32> to vector<1x8xf32>
    %162 = vector.broadcast %161 : vector<1x8xf32> to vector<32x8xf32>
    %163 = arith.mulf %160, %162 : vector<32x8xf32>
    %164 = arith.addf %159, %163 : vector<32x8xf32>
    %c20 = arith.constant 20 : index
    %c0_67 = arith.constant 0 : index
    %165 = vector.load %arg23[%c20, %c0_67] : memref<96x8xf32, #tpu.memory_space<vmem>>, vector<32x8xf32>
    %166 = vector.extract_strided_slice %63 {offsets = [20, 0], sizes = [1, 8], strides = [1, 1]} : vector<65x8xf32> to vector<1x8xf32>
    %167 = vector.broadcast %166 : vector<1x8xf32> to vector<32x8xf32>
    %168 = arith.mulf %165, %167 : vector<32x8xf32>
    %169 = arith.addf %164, %168 : vector<32x8xf32>
    %c21 = arith.constant 21 : index
    %c0_68 = arith.constant 0 : index
    %170 = vector.load %arg23[%c21, %c0_68] : memref<96x8xf32, #tpu.memory_space<vmem>>, vector<32x8xf32>
    %171 = vector.extract_strided_slice %63 {offsets = [21, 0], sizes = [1, 8], strides = [1, 1]} : vector<65x8xf32> to vector<1x8xf32>
    %172 = vector.broadcast %171 : vector<1x8xf32> to vector<32x8xf32>
    %173 = arith.mulf %170, %172 : vector<32x8xf32>
    %174 = arith.addf %169, %173 : vector<32x8xf32>
    %c22 = arith.constant 22 : index
    %c0_69 = arith.constant 0 : index
    %175 = vector.load %arg23[%c22, %c0_69] : memref<96x8xf32, #tpu.memory_space<vmem>>, vector<32x8xf32>
    %176 = vector.extract_strided_slice %63 {offsets = [22, 0], sizes = [1, 8], strides = [1, 1]} : vector<65x8xf32> to vector<1x8xf32>
    %177 = vector.broadcast %176 : vector<1x8xf32> to vector<32x8xf32>
    %178 = arith.mulf %175, %177 : vector<32x8xf32>
    %179 = arith.addf %174, %178 : vector<32x8xf32>
    %c23 = arith.constant 23 : index
    %c0_70 = arith.constant 0 : index
    %180 = vector.load %arg23[%c23, %c0_70] : memref<96x8xf32, #tpu.memory_space<vmem>>, vector<32x8xf32>
    %181 = vector.extract_strided_slice %63 {offsets = [23, 0], sizes = [1, 8], strides = [1, 1]} : vector<65x8xf32> to vector<1x8xf32>
    %182 = vector.broadcast %181 : vector<1x8xf32> to vector<32x8xf32>
    %183 = arith.mulf %180, %182 : vector<32x8xf32>
    %184 = arith.addf %179, %183 : vector<32x8xf32>
    %c24 = arith.constant 24 : index
    %c0_71 = arith.constant 0 : index
    %185 = vector.load %arg23[%c24, %c0_71] : memref<96x8xf32, #tpu.memory_space<vmem>>, vector<32x8xf32>
    %186 = vector.extract_strided_slice %63 {offsets = [24, 0], sizes = [1, 8], strides = [1, 1]} : vector<65x8xf32> to vector<1x8xf32>
    %187 = vector.broadcast %186 : vector<1x8xf32> to vector<32x8xf32>
    %188 = arith.mulf %185, %187 : vector<32x8xf32>
    %189 = arith.addf %184, %188 : vector<32x8xf32>
    %c25 = arith.constant 25 : index
    %c0_72 = arith.constant 0 : index
    %190 = vector.load %arg23[%c25, %c0_72] : memref<96x8xf32, #tpu.memory_space<vmem>>, vector<32x8xf32>
    %191 = vector.extract_strided_slice %63 {offsets = [25, 0], sizes = [1, 8], strides = [1, 1]} : vector<65x8xf32> to vector<1x8xf32>
    %192 = vector.broadcast %191 : vector<1x8xf32> to vector<32x8xf32>
    %193 = arith.mulf %190, %192 : vector<32x8xf32>
    %194 = arith.addf %189, %193 : vector<32x8xf32>
    %c26 = arith.constant 26 : index
    %c0_73 = arith.constant 0 : index
    %195 = vector.load %arg23[%c26, %c0_73] : memref<96x8xf32, #tpu.memory_space<vmem>>, vector<32x8xf32>
    %196 = vector.extract_strided_slice %63 {offsets = [26, 0], sizes = [1, 8], strides = [1, 1]} : vector<65x8xf32> to vector<1x8xf32>
    %197 = vector.broadcast %196 : vector<1x8xf32> to vector<32x8xf32>
    %198 = arith.mulf %195, %197 : vector<32x8xf32>
    %199 = arith.addf %194, %198 : vector<32x8xf32>
    %c27 = arith.constant 27 : index
    %c0_74 = arith.constant 0 : index
    %200 = vector.load %arg23[%c27, %c0_74] : memref<96x8xf32, #tpu.memory_space<vmem>>, vector<32x8xf32>
    %201 = vector.extract_strided_slice %63 {offsets = [27, 0], sizes = [1, 8], strides = [1, 1]} : vector<65x8xf32> to vector<1x8xf32>
    %202 = vector.broadcast %201 : vector<1x8xf32> to vector<32x8xf32>
    %203 = arith.mulf %200, %202 : vector<32x8xf32>
    %204 = arith.addf %199, %203 : vector<32x8xf32>
    %c28 = arith.constant 28 : index
    %c0_75 = arith.constant 0 : index
    %205 = vector.load %arg23[%c28, %c0_75] : memref<96x8xf32, #tpu.memory_space<vmem>>, vector<32x8xf32>
    %206 = vector.extract_strided_slice %63 {offsets = [28, 0], sizes = [1, 8], strides = [1, 1]} : vector<65x8xf32> to vector<1x8xf32>
    %207 = vector.broadcast %206 : vector<1x8xf32> to vector<32x8xf32>
    %208 = arith.mulf %205, %207 : vector<32x8xf32>
    %209 = arith.addf %204, %208 : vector<32x8xf32>
    %c29 = arith.constant 29 : index
    %c0_76 = arith.constant 0 : index
    %210 = vector.load %arg23[%c29, %c0_76] : memref<96x8xf32, #tpu.memory_space<vmem>>, vector<32x8xf32>
    %211 = vector.extract_strided_slice %63 {offsets = [29, 0], sizes = [1, 8], strides = [1, 1]} : vector<65x8xf32> to vector<1x8xf32>
    %212 = vector.broadcast %211 : vector<1x8xf32> to vector<32x8xf32>
    %213 = arith.mulf %210, %212 : vector<32x8xf32>
    %214 = arith.addf %209, %213 : vector<32x8xf32>
    %c30 = arith.constant 30 : index
    %c0_77 = arith.constant 0 : index
    %215 = vector.load %arg23[%c30, %c0_77] : memref<96x8xf32, #tpu.memory_space<vmem>>, vector<32x8xf32>
    %216 = vector.extract_strided_slice %63 {offsets = [30, 0], sizes = [1, 8], strides = [1, 1]} : vector<65x8xf32> to vector<1x8xf32>
    %217 = vector.broadcast %216 : vector<1x8xf32> to vector<32x8xf32>
    %218 = arith.mulf %215, %217 : vector<32x8xf32>
    %219 = arith.addf %214, %218 : vector<32x8xf32>
    %c31 = arith.constant 31 : index
    %c0_78 = arith.constant 0 : index
    %220 = vector.load %arg23[%c31, %c0_78] : memref<96x8xf32, #tpu.memory_space<vmem>>, vector<32x8xf32>
    %221 = vector.extract_strided_slice %63 {offsets = [31, 0], sizes = [1, 8], strides = [1, 1]} : vector<65x8xf32> to vector<1x8xf32>
    %222 = vector.broadcast %221 : vector<1x8xf32> to vector<32x8xf32>
    %223 = arith.mulf %220, %222 : vector<32x8xf32>
    %224 = arith.addf %219, %223 : vector<32x8xf32>
    %c32_79 = arith.constant 32 : index
    %c0_80 = arith.constant 0 : index
    %225 = vector.load %arg23[%c32_79, %c0_80] : memref<96x8xf32, #tpu.memory_space<vmem>>, vector<32x8xf32>
    %226 = vector.extract_strided_slice %63 {offsets = [32, 0], sizes = [1, 8], strides = [1, 1]} : vector<65x8xf32> to vector<1x8xf32>
    %227 = vector.broadcast %226 : vector<1x8xf32> to vector<32x8xf32>
    %228 = arith.mulf %225, %227 : vector<32x8xf32>
    %229 = arith.addf %224, %228 : vector<32x8xf32>
    %c33 = arith.constant 33 : index
    %c0_81 = arith.constant 0 : index
    %230 = vector.load %arg23[%c33, %c0_81] : memref<96x8xf32, #tpu.memory_space<vmem>>, vector<32x8xf32>
    %231 = vector.extract_strided_slice %63 {offsets = [33, 0], sizes = [1, 8], strides = [1, 1]} : vector<65x8xf32> to vector<1x8xf32>
    %232 = vector.broadcast %231 : vector<1x8xf32> to vector<32x8xf32>
    %233 = arith.mulf %230, %232 : vector<32x8xf32>
    %234 = arith.addf %229, %233 : vector<32x8xf32>
    %c34 = arith.constant 34 : index
    %c0_82 = arith.constant 0 : index
    %235 = vector.load %arg23[%c34, %c0_82] : memref<96x8xf32, #tpu.memory_space<vmem>>, vector<32x8xf32>
    %236 = vector.extract_strided_slice %63 {offsets = [34, 0], sizes = [1, 8], strides = [1, 1]} : vector<65x8xf32> to vector<1x8xf32>
    %237 = vector.broadcast %236 : vector<1x8xf32> to vector<32x8xf32>
    %238 = arith.mulf %235, %237 : vector<32x8xf32>
    %239 = arith.addf %234, %238 : vector<32x8xf32>
    %c35 = arith.constant 35 : index
    %c0_83 = arith.constant 0 : index
    %240 = vector.load %arg23[%c35, %c0_83] : memref<96x8xf32, #tpu.memory_space<vmem>>, vector<32x8xf32>
    %241 = vector.extract_strided_slice %63 {offsets = [35, 0], sizes = [1, 8], strides = [1, 1]} : vector<65x8xf32> to vector<1x8xf32>
    %242 = vector.broadcast %241 : vector<1x8xf32> to vector<32x8xf32>
    %243 = arith.mulf %240, %242 : vector<32x8xf32>
    %244 = arith.addf %239, %243 : vector<32x8xf32>
    %c36 = arith.constant 36 : index
    %c0_84 = arith.constant 0 : index
    %245 = vector.load %arg23[%c36, %c0_84] : memref<96x8xf32, #tpu.memory_space<vmem>>, vector<32x8xf32>
    %246 = vector.extract_strided_slice %63 {offsets = [36, 0], sizes = [1, 8], strides = [1, 1]} : vector<65x8xf32> to vector<1x8xf32>
    %247 = vector.broadcast %246 : vector<1x8xf32> to vector<32x8xf32>
    %248 = arith.mulf %245, %247 : vector<32x8xf32>
    %249 = arith.addf %244, %248 : vector<32x8xf32>
    %c37 = arith.constant 37 : index
    %c0_85 = arith.constant 0 : index
    %250 = vector.load %arg23[%c37, %c0_85] : memref<96x8xf32, #tpu.memory_space<vmem>>, vector<32x8xf32>
    %251 = vector.extract_strided_slice %63 {offsets = [37, 0], sizes = [1, 8], strides = [1, 1]} : vector<65x8xf32> to vector<1x8xf32>
    %252 = vector.broadcast %251 : vector<1x8xf32> to vector<32x8xf32>
    %253 = arith.mulf %250, %252 : vector<32x8xf32>
    %254 = arith.addf %249, %253 : vector<32x8xf32>
    %c38 = arith.constant 38 : index
    %c0_86 = arith.constant 0 : index
    %255 = vector.load %arg23[%c38, %c0_86] : memref<96x8xf32, #tpu.memory_space<vmem>>, vector<32x8xf32>
    %256 = vector.extract_strided_slice %63 {offsets = [38, 0], sizes = [1, 8], strides = [1, 1]} : vector<65x8xf32> to vector<1x8xf32>
    %257 = vector.broadcast %256 : vector<1x8xf32> to vector<32x8xf32>
    %258 = arith.mulf %255, %257 : vector<32x8xf32>
    %259 = arith.addf %254, %258 : vector<32x8xf32>
    %c39 = arith.constant 39 : index
    %c0_87 = arith.constant 0 : index
    %260 = vector.load %arg23[%c39, %c0_87] : memref<96x8xf32, #tpu.memory_space<vmem>>, vector<32x8xf32>
    %261 = vector.extract_strided_slice %63 {offsets = [39, 0], sizes = [1, 8], strides = [1, 1]} : vector<65x8xf32> to vector<1x8xf32>
    %262 = vector.broadcast %261 : vector<1x8xf32> to vector<32x8xf32>
    %263 = arith.mulf %260, %262 : vector<32x8xf32>
    %264 = arith.addf %259, %263 : vector<32x8xf32>
    %c40_88 = arith.constant 40 : index
    %c0_89 = arith.constant 0 : index
    %265 = vector.load %arg23[%c40_88, %c0_89] : memref<96x8xf32, #tpu.memory_space<vmem>>, vector<32x8xf32>
    %266 = vector.extract_strided_slice %63 {offsets = [40, 0], sizes = [1, 8], strides = [1, 1]} : vector<65x8xf32> to vector<1x8xf32>
    %267 = vector.broadcast %266 : vector<1x8xf32> to vector<32x8xf32>
    %268 = arith.mulf %265, %267 : vector<32x8xf32>
    %269 = arith.addf %264, %268 : vector<32x8xf32>
    %c41 = arith.constant 41 : index
    %c0_90 = arith.constant 0 : index
    %270 = vector.load %arg23[%c41, %c0_90] : memref<96x8xf32, #tpu.memory_space<vmem>>, vector<32x8xf32>
    %271 = vector.extract_strided_slice %63 {offsets = [41, 0], sizes = [1, 8], strides = [1, 1]} : vector<65x8xf32> to vector<1x8xf32>
    %272 = vector.broadcast %271 : vector<1x8xf32> to vector<32x8xf32>
    %273 = arith.mulf %270, %272 : vector<32x8xf32>
    %274 = arith.addf %269, %273 : vector<32x8xf32>
    %c42 = arith.constant 42 : index
    %c0_91 = arith.constant 0 : index
    %275 = vector.load %arg23[%c42, %c0_91] : memref<96x8xf32, #tpu.memory_space<vmem>>, vector<32x8xf32>
    %276 = vector.extract_strided_slice %63 {offsets = [42, 0], sizes = [1, 8], strides = [1, 1]} : vector<65x8xf32> to vector<1x8xf32>
    %277 = vector.broadcast %276 : vector<1x8xf32> to vector<32x8xf32>
    %278 = arith.mulf %275, %277 : vector<32x8xf32>
    %279 = arith.addf %274, %278 : vector<32x8xf32>
    %c43 = arith.constant 43 : index
    %c0_92 = arith.constant 0 : index
    %280 = vector.load %arg23[%c43, %c0_92] : memref<96x8xf32, #tpu.memory_space<vmem>>, vector<32x8xf32>
    %281 = vector.extract_strided_slice %63 {offsets = [43, 0], sizes = [1, 8], strides = [1, 1]} : vector<65x8xf32> to vector<1x8xf32>
    %282 = vector.broadcast %281 : vector<1x8xf32> to vector<32x8xf32>
    %283 = arith.mulf %280, %282 : vector<32x8xf32>
    %284 = arith.addf %279, %283 : vector<32x8xf32>
    %c44 = arith.constant 44 : index
    %c0_93 = arith.constant 0 : index
    %285 = vector.load %arg23[%c44, %c0_93] : memref<96x8xf32, #tpu.memory_space<vmem>>, vector<32x8xf32>
    %286 = vector.extract_strided_slice %63 {offsets = [44, 0], sizes = [1, 8], strides = [1, 1]} : vector<65x8xf32> to vector<1x8xf32>
    %287 = vector.broadcast %286 : vector<1x8xf32> to vector<32x8xf32>
    %288 = arith.mulf %285, %287 : vector<32x8xf32>
    %289 = arith.addf %284, %288 : vector<32x8xf32>
    %c45 = arith.constant 45 : index
    %c0_94 = arith.constant 0 : index
    %290 = vector.load %arg23[%c45, %c0_94] : memref<96x8xf32, #tpu.memory_space<vmem>>, vector<32x8xf32>
    %291 = vector.extract_strided_slice %63 {offsets = [45, 0], sizes = [1, 8], strides = [1, 1]} : vector<65x8xf32> to vector<1x8xf32>
    %292 = vector.broadcast %291 : vector<1x8xf32> to vector<32x8xf32>
    %293 = arith.mulf %290, %292 : vector<32x8xf32>
    %294 = arith.addf %289, %293 : vector<32x8xf32>
    %c46 = arith.constant 46 : index
    %c0_95 = arith.constant 0 : index
    %295 = vector.load %arg23[%c46, %c0_95] : memref<96x8xf32, #tpu.memory_space<vmem>>, vector<32x8xf32>
    %296 = vector.extract_strided_slice %63 {offsets = [46, 0], sizes = [1, 8], strides = [1, 1]} : vector<65x8xf32> to vector<1x8xf32>
    %297 = vector.broadcast %296 : vector<1x8xf32> to vector<32x8xf32>
    %298 = arith.mulf %295, %297 : vector<32x8xf32>
    %299 = arith.addf %294, %298 : vector<32x8xf32>
    %c47 = arith.constant 47 : index
    %c0_96 = arith.constant 0 : index
    %300 = vector.load %arg23[%c47, %c0_96] : memref<96x8xf32, #tpu.memory_space<vmem>>, vector<32x8xf32>
    %301 = vector.extract_strided_slice %63 {offsets = [47, 0], sizes = [1, 8], strides = [1, 1]} : vector<65x8xf32> to vector<1x8xf32>
    %302 = vector.broadcast %301 : vector<1x8xf32> to vector<32x8xf32>
    %303 = arith.mulf %300, %302 : vector<32x8xf32>
    %304 = arith.addf %299, %303 : vector<32x8xf32>
    %c48 = arith.constant 48 : index
    %c0_97 = arith.constant 0 : index
    %305 = vector.load %arg23[%c48, %c0_97] : memref<96x8xf32, #tpu.memory_space<vmem>>, vector<32x8xf32>
    %306 = vector.extract_strided_slice %63 {offsets = [48, 0], sizes = [1, 8], strides = [1, 1]} : vector<65x8xf32> to vector<1x8xf32>
    %307 = vector.broadcast %306 : vector<1x8xf32> to vector<32x8xf32>
    %308 = arith.mulf %305, %307 : vector<32x8xf32>
    %309 = arith.addf %304, %308 : vector<32x8xf32>
    %c49 = arith.constant 49 : index
    %c0_98 = arith.constant 0 : index
    %310 = vector.load %arg23[%c49, %c0_98] : memref<96x8xf32, #tpu.memory_space<vmem>>, vector<32x8xf32>
    %311 = vector.extract_strided_slice %63 {offsets = [49, 0], sizes = [1, 8], strides = [1, 1]} : vector<65x8xf32> to vector<1x8xf32>
    %312 = vector.broadcast %311 : vector<1x8xf32> to vector<32x8xf32>
    %313 = arith.mulf %310, %312 : vector<32x8xf32>
    %314 = arith.addf %309, %313 : vector<32x8xf32>
    %c50 = arith.constant 50 : index
    %c0_99 = arith.constant 0 : index
    %315 = vector.load %arg23[%c50, %c0_99] : memref<96x8xf32, #tpu.memory_space<vmem>>, vector<32x8xf32>
    %316 = vector.extract_strided_slice %63 {offsets = [50, 0], sizes = [1, 8], strides = [1, 1]} : vector<65x8xf32> to vector<1x8xf32>
    %317 = vector.broadcast %316 : vector<1x8xf32> to vector<32x8xf32>
    %318 = arith.mulf %315, %317 : vector<32x8xf32>
    %319 = arith.addf %314, %318 : vector<32x8xf32>
    %c51 = arith.constant 51 : index
    %c0_100 = arith.constant 0 : index
    %320 = vector.load %arg23[%c51, %c0_100] : memref<96x8xf32, #tpu.memory_space<vmem>>, vector<32x8xf32>
    %321 = vector.extract_strided_slice %63 {offsets = [51, 0], sizes = [1, 8], strides = [1, 1]} : vector<65x8xf32> to vector<1x8xf32>
    %322 = vector.broadcast %321 : vector<1x8xf32> to vector<32x8xf32>
    %323 = arith.mulf %320, %322 : vector<32x8xf32>
    %324 = arith.addf %319, %323 : vector<32x8xf32>
    %c52 = arith.constant 52 : index
    %c0_101 = arith.constant 0 : index
    %325 = vector.load %arg23[%c52, %c0_101] : memref<96x8xf32, #tpu.memory_space<vmem>>, vector<32x8xf32>
    %326 = vector.extract_strided_slice %63 {offsets = [52, 0], sizes = [1, 8], strides = [1, 1]} : vector<65x8xf32> to vector<1x8xf32>
    %327 = vector.broadcast %326 : vector<1x8xf32> to vector<32x8xf32>
    %328 = arith.mulf %325, %327 : vector<32x8xf32>
    %329 = arith.addf %324, %328 : vector<32x8xf32>
    %c53 = arith.constant 53 : index
    %c0_102 = arith.constant 0 : index
    %330 = vector.load %arg23[%c53, %c0_102] : memref<96x8xf32, #tpu.memory_space<vmem>>, vector<32x8xf32>
    %331 = vector.extract_strided_slice %63 {offsets = [53, 0], sizes = [1, 8], strides = [1, 1]} : vector<65x8xf32> to vector<1x8xf32>
    %332 = vector.broadcast %331 : vector<1x8xf32> to vector<32x8xf32>
    %333 = arith.mulf %330, %332 : vector<32x8xf32>
    %334 = arith.addf %329, %333 : vector<32x8xf32>
    %c54 = arith.constant 54 : index
    %c0_103 = arith.constant 0 : index
    %335 = vector.load %arg23[%c54, %c0_103] : memref<96x8xf32, #tpu.memory_space<vmem>>, vector<32x8xf32>
    %336 = vector.extract_strided_slice %63 {offsets = [54, 0], sizes = [1, 8], strides = [1, 1]} : vector<65x8xf32> to vector<1x8xf32>
    %337 = vector.broadcast %336 : vector<1x8xf32> to vector<32x8xf32>
    %338 = arith.mulf %335, %337 : vector<32x8xf32>
    %339 = arith.addf %334, %338 : vector<32x8xf32>
    %c55 = arith.constant 55 : index
    %c0_104 = arith.constant 0 : index
    %340 = vector.load %arg23[%c55, %c0_104] : memref<96x8xf32, #tpu.memory_space<vmem>>, vector<32x8xf32>
    %341 = vector.extract_strided_slice %63 {offsets = [55, 0], sizes = [1, 8], strides = [1, 1]} : vector<65x8xf32> to vector<1x8xf32>
    %342 = vector.broadcast %341 : vector<1x8xf32> to vector<32x8xf32>
    %343 = arith.mulf %340, %342 : vector<32x8xf32>
    %344 = arith.addf %339, %343 : vector<32x8xf32>
    %c56 = arith.constant 56 : index
    %c0_105 = arith.constant 0 : index
    %345 = vector.load %arg23[%c56, %c0_105] : memref<96x8xf32, #tpu.memory_space<vmem>>, vector<32x8xf32>
    %346 = vector.extract_strided_slice %63 {offsets = [56, 0], sizes = [1, 8], strides = [1, 1]} : vector<65x8xf32> to vector<1x8xf32>
    %347 = vector.broadcast %346 : vector<1x8xf32> to vector<32x8xf32>
    %348 = arith.mulf %345, %347 : vector<32x8xf32>
    %349 = arith.addf %344, %348 : vector<32x8xf32>
    %c57 = arith.constant 57 : index
    %c0_106 = arith.constant 0 : index
    %350 = vector.load %arg23[%c57, %c0_106] : memref<96x8xf32, #tpu.memory_space<vmem>>, vector<32x8xf32>
    %351 = vector.extract_strided_slice %63 {offsets = [57, 0], sizes = [1, 8], strides = [1, 1]} : vector<65x8xf32> to vector<1x8xf32>
    %352 = vector.broadcast %351 : vector<1x8xf32> to vector<32x8xf32>
    %353 = arith.mulf %350, %352 : vector<32x8xf32>
    %354 = arith.addf %349, %353 : vector<32x8xf32>
    %c58 = arith.constant 58 : index
    %c0_107 = arith.constant 0 : index
    %355 = vector.load %arg23[%c58, %c0_107] : memref<96x8xf32, #tpu.memory_space<vmem>>, vector<32x8xf32>
    %356 = vector.extract_strided_slice %63 {offsets = [58, 0], sizes = [1, 8], strides = [1, 1]} : vector<65x8xf32> to vector<1x8xf32>
    %357 = vector.broadcast %356 : vector<1x8xf32> to vector<32x8xf32>
    %358 = arith.mulf %355, %357 : vector<32x8xf32>
    %359 = arith.addf %354, %358 : vector<32x8xf32>
    %c59 = arith.constant 59 : index
    %c0_108 = arith.constant 0 : index
    %360 = vector.load %arg23[%c59, %c0_108] : memref<96x8xf32, #tpu.memory_space<vmem>>, vector<32x8xf32>
    %361 = vector.extract_strided_slice %63 {offsets = [59, 0], sizes = [1, 8], strides = [1, 1]} : vector<65x8xf32> to vector<1x8xf32>
    %362 = vector.broadcast %361 : vector<1x8xf32> to vector<32x8xf32>
    %363 = arith.mulf %360, %362 : vector<32x8xf32>
    %364 = arith.addf %359, %363 : vector<32x8xf32>
    %c60 = arith.constant 60 : index
    %c0_109 = arith.constant 0 : index
    %365 = vector.load %arg23[%c60, %c0_109] : memref<96x8xf32, #tpu.memory_space<vmem>>, vector<32x8xf32>
    %366 = vector.extract_strided_slice %63 {offsets = [60, 0], sizes = [1, 8], strides = [1, 1]} : vector<65x8xf32> to vector<1x8xf32>
    %367 = vector.broadcast %366 : vector<1x8xf32> to vector<32x8xf32>
    %368 = arith.mulf %365, %367 : vector<32x8xf32>
    %369 = arith.addf %364, %368 : vector<32x8xf32>
    %c61 = arith.constant 61 : index
    %c0_110 = arith.constant 0 : index
    %370 = vector.load %arg23[%c61, %c0_110] : memref<96x8xf32, #tpu.memory_space<vmem>>, vector<32x8xf32>
    %371 = vector.extract_strided_slice %63 {offsets = [61, 0], sizes = [1, 8], strides = [1, 1]} : vector<65x8xf32> to vector<1x8xf32>
    %372 = vector.broadcast %371 : vector<1x8xf32> to vector<32x8xf32>
    %373 = arith.mulf %370, %372 : vector<32x8xf32>
    %374 = arith.addf %369, %373 : vector<32x8xf32>
    %c62 = arith.constant 62 : index
    %c0_111 = arith.constant 0 : index
    %375 = vector.load %arg23[%c62, %c0_111] : memref<96x8xf32, #tpu.memory_space<vmem>>, vector<32x8xf32>
    %376 = vector.extract_strided_slice %63 {offsets = [62, 0], sizes = [1, 8], strides = [1, 1]} : vector<65x8xf32> to vector<1x8xf32>
    %377 = vector.broadcast %376 : vector<1x8xf32> to vector<32x8xf32>
    %378 = arith.mulf %375, %377 : vector<32x8xf32>
    %379 = arith.addf %374, %378 : vector<32x8xf32>
    %c63 = arith.constant 63 : index
    %c0_112 = arith.constant 0 : index
    %380 = vector.load %arg23[%c63, %c0_112] : memref<96x8xf32, #tpu.memory_space<vmem>>, vector<32x8xf32>
    %381 = vector.extract_strided_slice %63 {offsets = [63, 0], sizes = [1, 8], strides = [1, 1]} : vector<65x8xf32> to vector<1x8xf32>
    %382 = vector.broadcast %381 : vector<1x8xf32> to vector<32x8xf32>
    %383 = arith.mulf %380, %382 : vector<32x8xf32>
    %384 = arith.addf %379, %383 : vector<32x8xf32>
    %c64_113 = arith.constant 64 : index
    %c0_114 = arith.constant 0 : index
    %385 = vector.load %arg23[%c64_113, %c0_114] : memref<96x8xf32, #tpu.memory_space<vmem>>, vector<32x8xf32>
    %386 = vector.extract_strided_slice %63 {offsets = [64, 0], sizes = [1, 8], strides = [1, 1]} : vector<65x8xf32> to vector<1x8xf32>
    %387 = vector.broadcast %386 : vector<1x8xf32> to vector<32x8xf32>
    %388 = arith.mulf %385, %387 : vector<32x8xf32>
    %389 = arith.addf %384, %388 : vector<32x8xf32>
    %c0_115 = arith.constant 0 : index
    %c0_116 = arith.constant 0 : index
    %390 = vector.load %arg9[%c0_115, %c0_116] : memref<1x8xf32, #tpu.memory_space<vmem>>, vector<1x8xf32>
    %391 = vector.broadcast %390 : vector<1x8xf32> to vector<32x8xf32>
    %392 = arith.addf %389, %391 : vector<32x8xf32>
    %cst_117 = arith.constant 5.000000e-01 : f32
    %393 = vector.broadcast %cst_117 : f32 to vector<32x8xf32>
    %394 = arith.mulf %393, %62 : vector<32x8xf32>
    %cst_118 = arith.constant 0.707106769 : f32
    %395 = vector.broadcast %cst_118 : f32 to vector<32x8xf32>
    %396 = arith.mulf %62, %395 : vector<32x8xf32>
    %397 = math.erf %396 : vector<32x8xf32>
    %cst_119 = arith.constant 1.000000e+00 : f32
    %398 = vector.broadcast %cst_119 : f32 to vector<32x8xf32>
    %399 = arith.addf %398, %397 : vector<32x8xf32>
    %400 = arith.mulf %394, %399 : vector<32x8xf32>
    %cst_120 = arith.constant 5.000000e-01 : f32
    %401 = vector.broadcast %cst_120 : f32 to vector<32x8xf32>
    %402 = arith.mulf %401, %392 : vector<32x8xf32>
    %cst_121 = arith.constant 0.707106769 : f32
    %403 = vector.broadcast %cst_121 : f32 to vector<32x8xf32>
    %404 = arith.mulf %392, %403 : vector<32x8xf32>
    %405 = math.erf %404 : vector<32x8xf32>
    %cst_122 = arith.constant 1.000000e+00 : f32
    %406 = vector.broadcast %cst_122 : f32 to vector<32x8xf32>
    %407 = arith.addf %406, %405 : vector<32x8xf32>
    %408 = arith.mulf %402, %407 : vector<32x8xf32>
    %409 = arith.truncf %400 : vector<32x8xf32> to vector<32x8xbf16>
    %c0_123 = arith.constant 0 : index
    %c0_124 = arith.constant 0 : index
    %410 = vector.load %arg10[%c0_123, %c0_124] : memref<8x16xbf16, #tpu.memory_space<vmem>>, vector<8x16xbf16>
    %cst_125 = arith.constant dense<0.000000e+00> : vector<32x16xf32>
    %411 = tpu.matmul %409, %410, %cst_125 {dimension_numbers = #tpu.dot_dimension_numbers<[1], [0], [0], [1], [0, 0, 1, 1], [], []>} : vector<32x8xbf16>, vector<8x16xbf16>, vector<32x16xf32> -> vector<32x16xf32>
    %412 = arith.truncf %408 : vector<32x8xf32> to vector<32x8xbf16>
    %c0_126 = arith.constant 0 : index
    %c0_127 = arith.constant 0 : index
    %413 = vector.load %arg11[%c0_126, %c0_127] : memref<8x16xbf16, #tpu.memory_space<vmem>>, vector<8x16xbf16>
    %cst_128 = arith.constant dense<0.000000e+00> : vector<32x16xf32>
    %414 = tpu.matmul %412, %413, %cst_128 {dimension_numbers = #tpu.dot_dimension_numbers<[1], [0], [0], [1], [0, 0, 1, 1], [], []>} : vector<32x8xbf16>, vector<8x16xbf16>, vector<32x16xf32> -> vector<32x16xf32>
    %415 = arith.addf %411, %414 : vector<32x16xf32>
    %c0_129 = arith.constant 0 : index
    %c0_130 = arith.constant 0 : index
    %416 = vector.load %arg12[%c0_129, %c0_130] : memref<1x16xf32, #tpu.memory_space<vmem>>, vector<1x16xf32>
    %417 = vector.broadcast %416 : vector<1x16xf32> to vector<32x16xf32>
    %418 = arith.addf %415, %417 : vector<32x16xf32>
    %419 = arith.addf %418, %1 : vector<32x16xf32>
    %cst_131 = arith.constant dense<0.000000e+00> : vector<32xf32>
    %420 = vector.multi_reduction <add>, %419, %cst_131 [1] : vector<32x16xf32> to vector<32xf32>
    %421 = vector.shape_cast %420 : vector<32xf32> to vector<32x1xf32>
    %cst_132 = arith.constant 1.600000e+01 : f32
    %422 = vector.broadcast %cst_132 : f32 to vector<32x1xf32>
    %423 = arith.divf %421, %422 : vector<32x1xf32>
    %424 = vector.broadcast %423 : vector<32x1xf32> to vector<32x16xf32>
    %425 = arith.subf %419, %424 : vector<32x16xf32>
    %426 = arith.mulf %425, %425 : vector<32x16xf32>
    %cst_133 = arith.constant dense<0.000000e+00> : vector<32xf32>
    %427 = vector.multi_reduction <add>, %426, %cst_133 [1] : vector<32x16xf32> to vector<32xf32>
    %428 = vector.shape_cast %427 : vector<32xf32> to vector<32x1xf32>
    %cst_134 = arith.constant 1.600000e+01 : f32
    %429 = vector.broadcast %cst_134 : f32 to vector<32x1xf32>
    %430 = arith.divf %428, %429 : vector<32x1xf32>
    %431 = vector.broadcast %423 : vector<32x1xf32> to vector<32x16xf32>
    %432 = arith.subf %419, %431 : vector<32x16xf32>
    %cst_135 = arith.constant 9.99999997E-7 : f32
    %433 = vector.broadcast %cst_135 : f32 to vector<32x1xf32>
    %434 = arith.addf %430, %433 : vector<32x1xf32>
    %435 = math.sqrt %434 : vector<32x1xf32>
    %436 = vector.broadcast %435 : vector<32x1xf32> to vector<32x16xf32>
    %437 = arith.divf %432, %436 : vector<32x16xf32>
    %c0_136 = arith.constant 0 : index
    %c0_137 = arith.constant 0 : index
    %438 = vector.load %arg13[%c0_136, %c0_137] : memref<1x16xf32, #tpu.memory_space<vmem>>, vector<1x16xf32>
    %439 = vector.broadcast %438 : vector<1x16xf32> to vector<32x16xf32>
    %440 = arith.mulf %437, %439 : vector<32x16xf32>
    %c0_138 = arith.constant 0 : index
    %c0_139 = arith.constant 0 : index
    %441 = vector.load %arg14[%c0_138, %c0_139] : memref<1x16xf32, #tpu.memory_space<vmem>>, vector<1x16xf32>
    %442 = vector.broadcast %441 : vector<1x16xf32> to vector<32x16xf32>
    %443 = arith.addf %440, %442 : vector<32x16xf32>
    %444 = arith.truncf %443 : vector<32x16xf32> to vector<32x16xbf16>
    %c0_140 = arith.constant 0 : index
    %c0_141 = arith.constant 0 : index
    %445 = vector.load %arg15[%c0_140, %c0_141] : memref<16x64xbf16, #tpu.memory_space<vmem>>, vector<16x64xbf16>
    %cst_142 = arith.constant dense<0.000000e+00> : vector<32x64xf32>
    %446 = tpu.matmul %444, %445, %cst_142 {dimension_numbers = #tpu.dot_dimension_numbers<[1], [0], [0], [1], [0, 0, 1, 1], [], []>} : vector<32x16xbf16>, vector<16x64xbf16>, vector<32x64xf32> -> vector<32x64xf32>
    %c0_143 = arith.constant 0 : index
    %c0_144 = arith.constant 0 : index
    %447 = vector.load %arg16[%c0_143, %c0_144] : memref<1x64xf32, #tpu.memory_space<vmem>>, vector<1x64xf32>
    %448 = vector.broadcast %447 : vector<1x64xf32> to vector<32x64xf32>
    %449 = arith.addf %446, %448 : vector<32x64xf32>
    %cst_145 = arith.constant 5.000000e-01 : f32
    %450 = vector.broadcast %cst_145 : f32 to vector<32x64xf32>
    %451 = arith.mulf %450, %449 : vector<32x64xf32>
    %cst_146 = arith.constant 0.707106769 : f32
    %452 = vector.broadcast %cst_146 : f32 to vector<32x64xf32>
    %453 = arith.mulf %449, %452 : vector<32x64xf32>
    %454 = math.erf %453 : vector<32x64xf32>
    %cst_147 = arith.constant 1.000000e+00 : f32
    %455 = vector.broadcast %cst_147 : f32 to vector<32x64xf32>
    %456 = arith.addf %455, %454 : vector<32x64xf32>
    %457 = arith.mulf %451, %456 : vector<32x64xf32>
    %458 = arith.mulf %457, %457 : vector<32x64xf32>
    %cst_148 = arith.constant dense<0.000000e+00> : vector<64xf32>
    %459 = vector.multi_reduction <add>, %458, %cst_148 [0] : vector<32x64xf32> to vector<64xf32>
    %460 = vector.shape_cast %459 : vector<64xf32> to vector<1x64xf32>
    %461 = math.sqrt %460 : vector<1x64xf32>
    %cst_149 = arith.constant dense<0.000000e+00> : vector<1xf32>
    %462 = vector.multi_reduction <add>, %461, %cst_149 [1] : vector<1x64xf32> to vector<1xf32>
    %463 = vector.shape_cast %462 : vector<1xf32> to vector<1x1xf32>
    %cst_150 = arith.constant 6.400000e+01 : f32
    %464 = vector.broadcast %cst_150 : f32 to vector<1x1xf32>
    %465 = arith.divf %463, %464 : vector<1x1xf32>
    %cst_151 = arith.constant 9.99999997E-7 : f32
    %466 = vector.broadcast %cst_151 : f32 to vector<1x1xf32>
    %467 = arith.addf %465, %466 : vector<1x1xf32>
    %468 = vector.broadcast %467 : vector<1x1xf32> to vector<1x64xf32>
    %469 = arith.divf %461, %468 : vector<1x64xf32>
    %c0_152 = arith.constant 0 : index
    %c0_153 = arith.constant 0 : index
    %470 = vector.load %arg17[%c0_152, %c0_153] : memref<1x64xf32, #tpu.memory_space<vmem>>, vector<1x64xf32>
    %471 = vector.broadcast %469 : vector<1x64xf32> to vector<32x64xf32>
    %472 = arith.mulf %457, %471 : vector<32x64xf32>
    %473 = vector.broadcast %470 : vector<1x64xf32> to vector<32x64xf32>
    %474 = arith.mulf %473, %472 : vector<32x64xf32>
    %c0_154 = arith.constant 0 : index
    %c0_155 = arith.constant 0 : index
    %475 = vector.load %arg18[%c0_154, %c0_155] : memref<1x64xf32, #tpu.memory_space<vmem>>, vector<1x64xf32>
    %476 = vector.broadcast %475 : vector<1x64xf32> to vector<32x64xf32>
    %477 = arith.addf %474, %476 : vector<32x64xf32>
    %478 = arith.addf %477, %457 : vector<32x64xf32>
    %479 = arith.truncf %478 : vector<32x64xf32> to vector<32x64xbf16>
    %c0_156 = arith.constant 0 : index
    %c0_157 = arith.constant 0 : index
    %480 = vector.load %arg19[%c0_156, %c0_157] : memref<64x16xbf16, #tpu.memory_space<vmem>>, vector<64x16xbf16>
    %cst_158 = arith.constant dense<0.000000e+00> : vector<32x16xf32>
    %481 = tpu.matmul %479, %480, %cst_158 {dimension_numbers = #tpu.dot_dimension_numbers<[1], [0], [0], [1], [0, 0, 1, 1], [], []>} : vector<32x64xbf16>, vector<64x16xbf16>, vector<32x16xf32> -> vector<32x16xf32>
    %c0_159 = arith.constant 0 : index
    %c0_160 = arith.constant 0 : index
    %482 = vector.load %arg20[%c0_159, %c0_160] : memref<1x16xf32, #tpu.memory_space<vmem>>, vector<1x16xf32>
    %483 = vector.broadcast %482 : vector<1x16xf32> to vector<32x16xf32>
    %484 = arith.addf %481, %483 : vector<32x16xf32>
    %485 = arith.addf %419, %484 : vector<32x16xf32>
    %c0_161 = arith.constant 0 : index
    %c0_162 = arith.constant 0 : index
    %c0_163 = arith.constant 0 : index
    %486 = vector.load %arg21[%c0_161, %c0_162, %c0_163] : memref<1x32x16xf32, #tpu.memory_space<vmem>>, vector<1x32x16xf32>
    %487 = vector.shape_cast %486 : vector<1x32x16xf32> to vector<32x16xf32>
    %488 = vector.shape_cast %485 : vector<32x16xf32> to vector<1x32x16xf32>
    tpu.vector_store %arg21[%c0_161, %c0_162, %c0_163], %488 {strides = array<i32>} : memref<1x32x16xf32, #tpu.memory_space<vmem>>, vector<1x32x16xf32>,
    return
  }
  func.func @transform_0(%arg0: i32) -> (i32, i32, i32) {
    %c0_i32 = arith.constant 0 : i32
    %c0_i32_0 = arith.constant 0 : i32
    %c0_i32_1 = arith.constant 0 : i32
    return %arg0, %c0_i32, %c0_i32_0 : i32, i32, i32
  }
  func.func @transform_1(%arg0: i32) -> (i32, i32) {
    %c0_i32 = arith.constant 0 : i32
    %c0_i32_0 = arith.constant 0 : i32
    %c0_i32_1 = arith.constant 0 : i32
    return %c0_i32, %c0_i32_0 : i32, i32
  }
  func.func @transform_2(%arg0: i32) -> (i32, i32) {
    %c0_i32 = arith.constant 0 : i32
    %c0_i32_0 = arith.constant 0 : i32
    %c0_i32_1 = arith.constant 0 : i32
    return %c0_i32, %c0_i32_0 : i32, i32
  }
  func.func @transform_3(%arg0: i32) -> (i32, i32) {
    %c0_i32 = arith.constant 0 : i32
    %c0_i32_0 = arith.constant 0 : i32
    %c0_i32_1 = arith.constant 0 : i32
    return %c0_i32, %c0_i32_0 : i32, i32
  }
  func.func @transform_4(%arg0: i32) -> (i32, i32) {
    %c0_i32 = arith.constant 0 : i32
    %c0_i32_0 = arith.constant 0 : i32
    %c0_i32_1 = arith.constant 0 : i32
    return %c0_i32, %c0_i32_0 : i32, i32
  }
  func.func @transform_5(%arg0: i32) -> (i32, i32) {
    %c0_i32 = arith.constant 0 : i32
    %c0_i32_0 = arith.constant 0 : i32
    %c0_i32_1 = arith.constant 0 : i32
    return %c0_i32, %c0_i32_0 : i32, i32
  }
  func.func @transform_6(%arg0: i32) -> (i32, i32) {
    %c0_i32 = arith.constant 0 : i32
    %c0_i32_0 = arith.constant 0 : i32
    %c0_i32_1 = arith.constant 0 : i32
    return %c0_i32, %c0_i32_0 : i32, i32
  }
  func.func @transform_7(%arg0: i32) -> (i32, i32) {
    %c0_i32 = arith.constant 0 : i32
    %c0_i32_0 = arith.constant 0 : i32
    %c0_i32_1 = arith.constant 0 : i32
    return %c0_i32, %c0_i32_0 : i32, i32
  }
  func.func @transform_8(%arg0: i32) -> (i32, i32) {
    %c0_i32 = arith.constant 0 : i32
    %c0_i32_0 = arith.constant 0 : i32
    %c0_i32_1 = arith.constant 0 : i32
    return %c0_i32, %c0_i32_0 : i32, i32
  }
  func.func @transform_9(%arg0: i32) -> (i32, i32) {
    %c0_i32 = arith.constant 0 : i32
    %c0_i32_0 = arith.constant 0 : i32
    %c0_i32_1 = arith.constant 0 : i32
    return %c0_i32, %c0_i32_0 : i32, i32
  }
  func.func @transform_10(%arg0: i32) -> (i32, i32) {
    %c0_i32 = arith.constant 0 : i32
    %c0_i32_0 = arith.constant 0 : i32
    %c0_i32_1 = arith.constant 0 : i32
    return %c0_i32, %c0_i32_0 : i32, i32
  }
  func.func @transform_11(%arg0: i32) -> (i32, i32) {
    %c0_i32 = arith.constant 0 : i32
    %c0_i32_0 = arith.constant 0 : i32
    %c0_i32_1 = arith.constant 0 : i32
    return %c0_i32, %c0_i32_0 : i32, i32
  }
  func.func @transform_12(%arg0: i32) -> (i32, i32) {
    %c0_i32 = arith.constant 0 : i32
    %c0_i32_0 = arith.constant 0 : i32
    %c0_i32_1 = arith.constant 0 : i32
    return %c0_i32, %c0_i32_0 : i32, i32
  }
  func.func @transform_13(%arg0: i32) -> (i32, i32) {
    %c0_i32 = arith.constant 0 : i32
    %c0_i32_0 = arith.constant 0 : i32
    %c0_i32_1 = arith.constant 0 : i32
    return %c0_i32, %c0_i32_0 : i32, i32
  }
  func.func @transform_14(%arg0: i32) -> (i32, i32) {
    %c0_i32 = arith.constant 0 : i32
    %c0_i32_0 = arith.constant 0 : i32
    %c0_i32_1 = arith.constant 0 : i32
    return %c0_i32, %c0_i32_0 : i32, i32
  }
  func.func @transform_15(%arg0: i32) -> (i32, i32) {
    %c0_i32 = arith.constant 0 : i32
    %c0_i32_0 = arith.constant 0 : i32
    %c0_i32_1 = arith.constant 0 : i32
    return %c0_i32, %c0_i32_0 : i32, i32
  }
  func.func @transform_16(%arg0: i32) -> (i32, i32) {
    %c0_i32 = arith.constant 0 : i32
    %c0_i32_0 = arith.constant 0 : i32
    %c0_i32_1 = arith.constant 0 : i32
    return %c0_i32, %c0_i32_0 : i32, i32
  }
  func.func @transform_17(%arg0: i32) -> (i32, i32) {
    %c0_i32 = arith.constant 0 : i32
    %c0_i32_0 = arith.constant 0 : i32
    %c0_i32_1 = arith.constant 0 : i32
    return %c0_i32, %c0_i32_0 : i32, i32
  }
  func.func @transform_18(%arg0: i32) -> (i32, i32) {
    %c0_i32 = arith.constant 0 : i32
    %c0_i32_0 = arith.constant 0 : i32
    %c0_i32_1 = arith.constant 0 : i32
    return %c0_i32, %c0_i32_0 : i32, i32
  }
  func.func @transform_19(%arg0: i32) -> (i32, i32) {
    %c0_i32 = arith.constant 0 : i32
    %c0_i32_0 = arith.constant 0 : i32
    %c0_i32_1 = arith.constant 0 : i32
    return %c0_i32, %c0_i32_0 : i32, i32
  }
  func.func @transform_20(%arg0: i32) -> (i32, i32, i32) {
    %c0_i32 = arith.constant 0 : i32
    %c0_i32_0 = arith.constant 0 : i32
    %c0_i32_1 = arith.constant 0 : i32
    return %arg0, %c0_i32, %c0_i32_0 : i32, i32, i32
  }
}

</mosaic_0001>

<bundles_post_ra>
// kernel: tpu_custom_call.1
= control target key start
LH: loop header
LB: loop body
LE: loop exit
PB: predicated region body
PF: predicated region fallthrough
CT: control target
= control target key end

     0   :  { %s3854_s0 = inlined_call_operand.vmem [shape: f32[2,32,16], index: 0, kind: input, shape index: {}]   ;;  %s3855_s1 = inlined_call_operand.vmem [shape: bf16[16,8], index: 1, kind: input, shape index: {}]   ;;  %s3856_s2 = inlined_call_operand.vmem [shape: bf16[16,8], index: 2, kind: input, shape index: {}]   ;;  %s3857_s3 = inlined_call_operand.vmem [shape: f32[1,8], index: 3, kind: input, shape index: {}]   ;;  %s3858_s4 = inlined_call_operand.vmem [shape: f32[1,8], index: 4, kind: input, shape index: {}]   ;;  %s3859_s5 = inlined_call_operand.vmem [shape: f32[7,8], index: 5, kind: input, shape index: {}]   ;;  %s3860_s6 = inlined_call_operand.vmem [shape: f32[1,8], index: 6, kind: input, shape index: {}]   ;;  %s3861_s7 = inlined_call_operand.vmem [shape: f32[65,8], index: 7, kind: input, shape index: {}]   ;;  %s3862_s8 = inlined_call_operand.vmem [shape: f32[1,8], index: 8, kind: input, shape index: {}]   ;;  %s3863_s9 = inlined_call_operand.vmem [shape: bf16[8,16], index: 9, kind: input, shape index: {}]   ;;  %s3864_s10 = inlined_call_operand.vmem [shape: bf16[8,16], index: 10, kind: input, shape index: {}]   ;;  %s3865_s11 = inlined_call_operand.vmem [shape: f32[1,16], index: 11, kind: input, shape index: {}]   ;;  %s3866_s12 = inlined_call_operand.vmem [shape: f32[1,16], index: 12, kind: input, shape index: {}]   ;;  %s3867_s13 = inlined_call_operand.vmem [shape: f32[1,16], index: 13, kind: input, shape index: {}]   ;;  %s3868_s14 = inlined_call_operand.vmem [shape: bf16[16,64], index: 14, kind: input, shape index: {}]   ;;  %s3869_s15 = inlined_call_operand.vmem [shape: f32[1,64], index: 15, kind: input, shape index: {}]   ;;  %s3870_s16 = inlined_call_operand.vmem [shape: f32[1,64], index: 16, kind: input, shape index: {}]   ;;  %s3871_s17 = inlined_call_operand.vmem [shape: f32[1,64], index: 17, kind: input, shape index: {}]   ;;  %s3872_s18 = inlined_call_operand.vmem [shape: bf16[64,16], index: 18, kind: input, shape index: {}]   ;;  %s3873_s19 = inlined_call_operand.vmem [shape: f32[1,16], index: 19, kind: input, shape index: {}]   ;;  %s3874_s20 = inlined_call_operand.vmem [shape: f32[2,32,16], index: 20, kind: output, shape index: {}]  }
   0x1   :  { %3925 = sst [smem:[#allocation62_spill]] %s3854_s0 }
   0x2   :  { %3926 = sst [smem:[#allocation63_spill]] %s3855_s1  ;;  %s2691_s1 = smov 0  }
   0x3   :  { %3927 = sst [smem:[#allocation64_spill]] %s3856_s2 }
   0x4   :  { %3928 = sst [smem:[#allocation65_spill]] %s3857_s3 }
   0x5   :  { %3929 = sst [smem:[#allocation66_spill]] %s3858_s4 }
   0x6 LB: > { %s2400_s22 = sadd.s32 4294967295, %s2583_s1   ;;  %p2404_p0 = scmp.ge.s32.totalorder %s2583_s1, 1  ;;  %s2583_s1 = sphi %s2691_s1, %s30_s1  }
   0x7   : > { %p562_p1 = scmp.lt.s32.totalorder %s2583_s1, 3 }
   0x9   : > { %p563_p2 = pnand %p2404_p0, %p562_p1 }
   0xb   : > { %566 = sbr.rel (%p563_p2) target bundleno = 1638 (0x666), region = 100 }
  0x12   : > { %s3930_s2 = sld [smem:[#allocation64_spill]]  ;;  %p620_p3 = scmp.lt.s32.totalorder %s2400_s22, 1  ;;  %vm652_vm0 = vcmask 130048   ;;  %vm772_vm1 = vcmask 64512   ;;  %v3875_v8 = vmov 0.0   ;;  %v797_v9 = vlaneseq  ;;  %v916_v13 = vld [vmem:[%s3861_s7] sm:$0xff] }
  0x13   : > { %s3931_s26 = sld [smem:[#allocation63_spill]]  ;;  %s3932_s29 = sld [smem:[#allocation62_spill]]  ;;  %780 = vst.msk [vmem:[#allocation3] sm:$0xff] %vm772_vm1, %v3875_v8  ;;  %781 = vst.msk [vmem:[#allocation3 + $0x8] sm:$0xff] %vm772_vm1, %v3875_v8  ;;  %v917_v47 = vld [vmem:[%s3861_s7 + $0x8] sm:$0xff]  ;;  %vm1857_vm2 = vcmask 1043456  }
  0x14   : > { %s4070_s22 = smov (!%p620_p3, %s2400_s22), 1  ;;  %782 = vst.msk [vmem:[#allocation3 + $0x10] sm:$0xff] %vm772_vm1, %v3875_v8  ;;  %783 = vst.msk [vmem:[#allocation3 + $0x18] sm:$0xff] %vm772_vm1, %v3875_v8  ;;  %v798_v10 = vshrl.u32 %v797_v9, 7  ;;  %s3942_s23 = sld [smem:[#allocation65_spill]]  ;;  %vm774_vm3 = vcmask 59392  }
  0x15   : > { %s2442_s27 = sshll.u32 %s4070_s22, 5  ;;  %773 = vst.msk [vmem:[#allocation2] sm:$0xff] %vm772_vm1, %v3875_v8  ;;  %784 = vst.msk [vmem:[#allocation3 + $0x40] sm:$0xff] %vm772_vm1, %v3875_v8  ;;  %vm2182_vm12 = vcmask 523264  }
  0x16   : > { %785 = vst.msk [vmem:[#allocation3 + $0x48] sm:$0xff] %vm772_vm1, %v3875_v8  ;;  %786 = vst.msk [vmem:[#allocation3 + $0x50] sm:$0xff] %vm772_vm1, %v3875_v8  ;;  %v2741_v11 = vsub.s32 0, %v798_v10  ;;  %v2743_v12 = vsub.s32 1, %v798_v10  ;;  %v2748_v14 = vsub.s32 2, %v798_v10  ;;  %v2756_v19 = vsub.s32 3, %v798_v10 }
  0x17   : > { %787 = vst.msk [vmem:[#allocation3 + $0x58] sm:$0xff] %vm772_vm1, %v3875_v8  ;;  %v2763_v24 = vsub.s32 4, %v798_v10  ;;  %v2769_v29 = vsub.s32 5, %v798_v10  ;;  %v2775_v34 = vsub.s32 6, %v798_v10  ;;  %v2785_v42 = vsub.s32 7, %v798_v10 }
  0x18   : > { %v2522_v0 = vld [vmem:[%s3930_s2] sm:$0xff]   ;;  %3933 = vst [vmem:[#allocation4_spill] sm:$0xff] %v2741_v11  ;;  %3934 = vst [vmem:[#allocation5_spill] sm:$0xff] %v2743_v12  ;;  %v2751_v15 = vrot.slane %v916_v13, %v2741_v11  ;;  %v2754_v16 = vrot.slane %v916_v13, %v2743_v12  ;;  %v2761_v22 = vrot.slane %v916_v13, %v2748_v14 }
  0x19   : > { %v2523_v1 = vld [vmem:[%s3931_s26] sm:$0xff]   ;;  %2471 = vmatprep.subr.bf16.mxu1 %v2522_v0  ;;  %s2713_s30 = scalar_lea.vmem %s3932_s29, %s2442_s27  ;;  %3935 = vst [vmem:[#allocation6_spill] sm:$0xff] %v2748_v14  ;;  %3936 = vst [vmem:[#allocation7_spill] sm:$0xff] %v2756_v19  ;;  %v2767_v27 = vrot.slane %v916_v13, %v2756_v19  ;;  %v2773_v32 = vrot.slane %v916_v13, %v2763_v24  ;;  %v2779_v37 = vrot.slane %v916_v13, %v2769_v29  ;;  %s3941_s29 = sld [smem:[#allocation66_spill]] }
  0x1a   : > { %2472 = vmatpush3.bf16.msra.mxu1 %v2522_v0  ;;  %2465 = vmatprep.subr.bf16.mxu0 %v2523_v1  ;;  %v631_v2 = vld [vmem:[%s2713_s30] sm:$0xff]  ;;  %v632_v3 = vld [vmem:[%s2713_s30 + $0x8] sm:$0xff]  ;;  %v633_v4 = vld [vmem:[%s2713_s30 + $0x10] sm:$0xff]  ;;  %3937 = vst [vmem:[#allocation8_spill] sm:$0xff] %v2763_v24  ;;  %v2783_v41 = vrot.slane %v916_v13, %v2775_v34  ;;  %v2789_v46 = vrot.slane %v916_v13, %v2785_v42 }
  0x1b   : > { %2466 = vmatpush3.bf16.msra.mxu0 %v2523_v1  ;;  %v635_v5 = vpack.c.bf16 %v632_v3, %v631_v2  ;;  %v634_v6 = vld [vmem:[%s2713_s30 + $0x18] sm:$0xff]  ;;  %v925_v17 = vld [vmem:[#allocation3] sm:$0xff]  ;;  %3938 = vst [vmem:[#allocation9_spill] sm:$0xff] %v2769_v29  ;;  %3939 = vst [vmem:[#allocation10_spill] sm:$0xff] %v2775_v34  ;;  %v2796_v51 = vrot.slane %v917_v47, %v2741_v11  ;;  %v2800_v56 = vrot.slane %v917_v47, %v2743_v12 }
  0x1c   : > { %v636_v7 = vpack.c.bf16 %v634_v6, %v633_v4  ;;  %v941_v18 = vld [vmem:[#allocation3 + $0x1] sm:$0xff]  ;;  %v933_v20 = vmul.f32 %v2751_v15, %v925_v17  ;;  %v942_v53 = vld [vmem:[#allocation3 + $0x9] sm:$0xff]  ;;  %v2806_v62 = vrot.slane %v917_v47, %v2748_v14  ;;  %v2811_v4 = vrot.slane %v917_v47, %v2756_v19 }
  0x1d   : > { %2473 = vmatprep.mubr.msk.bf16.mxu1 %vm652_vm0, %v635_v5  ;;  %2467 = vmatprep.mubr.msk.bf16.mxu0 %vm652_vm0, %v635_v5  ;;  %v949_v21 = vmul.f32 %v2754_v16, %v941_v18  ;;  %v957_v23 = vld [vmem:[#allocation3 + $0x2] sm:$0xff]  ;;  %3940 = vst [vmem:[#allocation11_spill] sm:$0xff] %v2800_v56  ;;  %v950_v58 = vmul.f32 %v2754_v16, %v942_v53  ;;  %v958_v59 = vld [vmem:[#allocation3 + $0xa] sm:$0xff] }
  0x1e   : > { %2474 = vmatmul.mubr.msk.bf16.vlgmr.msra.gmra.mrb[0].mxu1 %vm652_vm0, %v636_v7  ;;  %2468 = vmatmul.mubr.msk.bf16.vlgmr.msra.gmra.mrb[0].mxu0 %vm652_vm0, %v636_v7  ;;  %v965_v26 = vmul.f32 %v2761_v22, %v957_v23  ;;  %v973_v28 = vld [vmem:[#allocation3 + $0x3] sm:$0xff]  ;;  %v1071_v61 = vmul.f32 %v2800_v56, %v942_v53  ;;  %v966_v0 = vmul.f32 %v2761_v22, %v958_v59  ;;  %v974_v1 = vld [vmem:[#allocation3 + $0xb] sm:$0xff] }
  0x1f   : > { %v953_v25 = vadd.f32 %v949_v21, %v933_v20  ;;  %v981_v31 = vmul.f32 %v2767_v27, %v973_v28  ;;  %v989_v33 = vld [vmem:[#allocation3 + $0x4] sm:$0xff]  ;;  %v1084_v3 = vmul.f32 %v2806_v62, %v958_v59  ;;  %v982_v6 = vmul.f32 %v2767_v27, %v974_v1  ;;  %v990_v7 = vld [vmem:[#allocation3 + $0xc] sm:$0xff] }
  0x20   : > { %v997_v36 = vmul.f32 %v2773_v32, %v989_v33  ;;  %v1005_v38 = vld [vmem:[#allocation3 + $0x5] sm:$0xff]  ;;  %v1097_v10 = vmul.f32 %v2811_v4, %v974_v1  ;;  %v2816_v13 = vrot.slane %v917_v47, %v2763_v24  ;;  %v998_v18 = vmul.f32 %v2773_v32, %v990_v7  ;;  %v1006_v20 = vld [vmem:[#allocation3 + $0xd] sm:$0xff] }
  0x21   : > { %v969_v30 = vadd.f32 %v965_v26, %v953_v25  ;;  %v1013_v40 = vmul.f32 %v2779_v37, %v1005_v38  ;;  %v1021_v43 = vld [vmem:[#allocation3 + $0x6] sm:$0xff]  ;;  %v2821_v25 = vrot.slane %v917_v47, %v2769_v29  ;;  %v1014_v28 = vmul.f32 %v2779_v37, %v1006_v20 }
  0x22   : > { %v1029_v45 = vmul.f32 %v2783_v41, %v1021_v43  ;;  %v1037_v48 = vld [vmem:[#allocation3 + $0x7] sm:$0xff]  ;;  %v1110_v23 = vmul.f32 %v2816_v13, %v990_v7 }
  0x23   : > { %v985_v35 = vadd.f32 %v981_v31, %v969_v30  ;;  %v1045_v50 = vmul.f32 %v2789_v46, %v1037_v48  ;;  %v926_v52 = vld [vmem:[#allocation3 + $0x8] sm:$0xff]  ;;  %v1123_v33 = vmul.f32 %v2821_v25, %v1006_v20 }
  0x24   : > { %v1058_v55 = vmul.f32 %v2796_v51, %v926_v52  ;;  %v934_v57 = vmul.f32 %v2751_v15, %v926_v52  ;;  %v1022_v30 = vld [vmem:[#allocation3 + $0xe] sm:$0xff] }
  0x25   : > { %v1001_v39 = vadd.f32 %v997_v36, %v985_v35  ;;  %v2826_v35 = vrot.slane %v917_v47, %v2775_v34  ;;  %v1030_v38 = vmul.f32 %v2783_v41, %v1022_v30 }
  0x26   : > { %v954_v63 = vadd.f32 %v950_v58, %v934_v57 }
  0x27   : > { %v1017_v44 = vadd.f32 %v1013_v40, %v1001_v39  ;;  %v1038_v39 = vld [vmem:[#allocation3 + $0xf] sm:$0xff]  ;;  %v1136_v43 = vmul.f32 %v2826_v35, %v1022_v30 }
  0x28   : > { %v970_v5 = vadd.f32 %v966_v0, %v954_v63  ;;  %v959_v0 = vld [vmem:[#allocation3 + $0x12] sm:$0xff] }
  0x29   : > { %v1033_v49 = vadd.f32 %v1029_v45, %v1017_v44  ;;  %v2831_v44 = vrot.slane %v917_v47, %v2785_v42  ;;  %v918_v45 = vld [vmem:[%s3861_s7 + $0x10] sm:$0xff]  ;;  %v991_v30 = vld [vmem:[#allocation3 + $0x14] sm:$0xff] }
  0x2a   : > { %v986_v17 = vadd.f32 %v982_v6, %v970_v5  ;;  %v2851_v6 = vrot.slane %v918_v45, %v2748_v14 }
  0x2b   : > { %v1049_v54 = vadd.f32 %v1045_v50, %v1033_v49  ;;  %v1046_v49 = vmul.f32 %v2789_v46, %v1038_v39  ;;  %v927_v50 = vld [vmem:[#allocation3 + $0x10] sm:$0xff]  ;;  %v1149_v53 = vmul.f32 %v2831_v44, %v1038_v39  ;;  %v2863_v39 = vrot.slane %v918_v45, %v2763_v24 }
  0x2c   : > { %v1002_v26 = vadd.f32 %v998_v18, %v986_v17  ;;  %v1059_v58 = vmul.f32 %v2796_v51, %v927_v50  ;;  %v1085_v18 = vmul.f32 %v2806_v62, %v959_v0 }
  0x2d   : > { %v1062_v60 = vadd.f32 %v1058_v55, %v1049_v54  ;;  %v2839_v54 = vrot.slane %v918_v45, %v2741_v11  ;;  %v943_v55 = vld [vmem:[#allocation3 + $0x11] sm:$0xff] }
  0x2e   : > { %v1018_v36 = vadd.f32 %v1014_v28, %v1002_v26  ;;  %v951_v63 = vmul.f32 %v2754_v16, %v943_v55 }
  0x2f   : > { %v1075_v2 = vadd.f32 %v1071_v61, %v1062_v60  ;;  %v1162_v59 = vmul.f32 %v2839_v54, %v927_v50  ;;  %v2844_v60 = vrot.slane %v918_v45, %v2743_v12  ;;  %v935_v61 = vmul.f32 %v2751_v15, %v927_v50 }
  0x30   : > { %v1034_v48 = vadd.f32 %v1030_v38, %v1018_v36  ;;  %v1111_v50 = vmul.f32 %v2816_v13, %v991_v30 }
  0x31   : > { %v1088_v9 = vadd.f32 %v1084_v3, %v1075_v2  ;;  %v1072_v2 = vmul.f32 %v2800_v56, %v943_v55  ;;  %v1175_v5 = vmul.f32 %v2844_v60, %v943_v55  ;;  %v955_v7 = vadd.f32 %v951_v63, %v935_v61 }
  0x32   : > { %v1050_v57 = vadd.f32 %v1046_v49, %v1034_v48  ;;  %v1007_v48 = vld [vmem:[#allocation3 + $0x15] sm:$0xff]  ;;  %v2869_v55 = vrot.slane %v918_v45, %v2769_v29 }
  0x33   : > { %v1101_v21 = vadd.f32 %v1097_v10, %v1088_v9  ;;  %v967_v9 = vmul.f32 %v2761_v22, %v959_v0  ;;  %v975_v10 = vld [vmem:[#allocation3 + $0x13] sm:$0xff]  ;;  %v1124_v61 = vmul.f32 %v2821_v25, %v1007_v48 }
  0x34   : > { %v1063_v1 = vadd.f32 %v1059_v58, %v1050_v57  ;;  %v983_v28 = vmul.f32 %v2767_v27, %v975_v10  ;;  %v1015_v58 = vmul.f32 %v2779_v37, %v1007_v48 }
  0x35   : > { %v1114_v31 = vadd.f32 %v1110_v23, %v1101_v21  ;;  %v1188_v21 = vmul.f32 %v2851_v6, %v959_v0  ;;  %v2857_v23 = vrot.slane %v918_v45, %v2756_v19  ;;  %v971_v26 = vadd.f32 %v967_v9, %v955_v7 }
  0x36   : > { %v1076_v17 = vadd.f32 %v1072_v2, %v1063_v1  ;;  %v1227_v0 = vmul.f32 %v2869_v55, %v1007_v48  ;;  %v2875_v1 = vrot.slane %v918_v45, %v2775_v34 }
  0x37   : > { %v1127_v40 = vadd.f32 %v1123_v33, %v1114_v31  ;;  %v1098_v33 = vmul.f32 %v2811_v4, %v975_v10  ;;  %v1201_v38 = vmul.f32 %v2857_v23, %v975_v10 }
  0x38   : > { %v1089_v31 = vadd.f32 %v1085_v18, %v1076_v17  ;;  %v2881_v18 = vrot.slane %v918_v45, %v2785_v42  ;;  %v2409_v45 = vld [vmem:[%s3942_s23] ss:$0 sm:$0xff] }
  0x39   : > { %v1140_v52 = vadd.f32 %v1136_v43, %v1127_v40  ;;  %v987_v40 = vadd.f32 %v983_v28, %v971_v26  ;;  %v999_v43 = vmul.f32 %v2773_v32, %v991_v30  ;;  %v2413_v28 = vld [vmem:[%s3941_s29] ss:$0 sm:$0xff] }
  0x3a   : > { %v1102_v49 = vadd.f32 %v1098_v33, %v1089_v31 }
  0x3b   : > { %v1153_v47 = vadd.f32 %v1149_v53, %v1140_v52  ;;  %v1214_v53 = vmul.f32 %v2863_v39, %v991_v30  ;;  %v1003_v57 = vadd.f32 %v999_v43, %v987_v40  ;;  %v928_v30 = vld [vmem:[#allocation3 + $0x18] sm:$0xff] }
  0x3d   : > { %v1166_v3 = vadd.f32 %v1162_v59, %v1153_v47  ;;  %v1023_v47 = vld [vmem:[#allocation3 + $0x16] sm:$0xff]  ;;  %v1115_v59 = vadd.f32 %v1111_v50, %v1102_v49  ;;  %v1019_v2 = vadd.f32 %v1015_v58, %v1003_v57 }
  0x3e   : > { %v1137_v9 = vmul.f32 %v2826_v35, %v1023_v47  ;;  %v1240_v17 = vmul.f32 %v2875_v1, %v1023_v47 }
  0x3f   : > { %v1179_v20 = vadd.f32 %v1175_v5, %v1166_v3  ;;  %v1031_v3 = vmul.f32 %v2783_v41, %v1023_v47  ;;  %v1039_v5 = vld [vmem:[#allocation3 + $0x17] sm:$0xff]  ;;  %v1128_v7 = vadd.f32 %v1124_v61, %v1115_v59 }
  0x40   : > { %v1047_v26 = vmul.f32 %v2789_v46, %v1039_v5  ;;  %v1150_v33 = vmul.f32 %v2831_v44, %v1039_v5  ;;  %v1253_v40 = vmul.f32 %v2881_v18, %v1039_v5  ;;  %v920_v47 = vld [vmem:[%s3861_s7 + $0x20] sm:$0xff] }
  0x41   : > { %v1192_v36 = vadd.f32 %v1188_v21, %v1179_v20  ;;  %v919_v20 = vld [vmem:[%s3861_s7 + $0x18] sm:$0xff]  ;;  %v1035_v21 = vadd.f32 %v1031_v3, %v1019_v2  ;;  %v1141_v31 = vadd.f32 %v1137_v9, %v1128_v7 }
  0x43   : > { %v1205_v52 = vadd.f32 %v1201_v38, %v1192_v36  ;;  %v2895_v36 = vrot.slane %v919_v20, %v2741_v11  ;;  %v1154_v61 = vadd.f32 %v1150_v33, %v1141_v31  ;;  %v2909_v33 = vrot.slane %v920_v47, %v2741_v11 }
  0x45   : > { %v1218_v63 = vadd.f32 %v1214_v53, %v1205_v52  ;;  %3943 = vst [vmem:[#allocation12_spill] sm:$0xff] %v2895_v36  ;;  %v1051_v52 = vadd.f32 %v1047_v26, %v1035_v21  ;;  %v1060_v53 = vmul.f32 %v2796_v51, %v928_v30  ;;  %v1266_v7 = vmul.f32 %v2895_v36, %v928_v30 }
  0x46   : > { %3944 = vst [vmem:[#allocation13_spill] sm:$0xff] %v2909_v33 }
  0x47   : > { %v1231_v10 = vadd.f32 %v1227_v0, %v1218_v63  ;;  %v1163_v63 = vmul.f32 %v2839_v54, %v928_v30 }
  0x49   : > { %v1244_v38 = vadd.f32 %v1240_v17, %v1231_v10 }
  0x4b   : > { %v1257_v5 = vadd.f32 %v1253_v40, %v1244_v38  ;;  %v1064_v38 = vadd.f32 %v1060_v53, %v1051_v52  ;;  %v2914_v40 = vadd.f32 %v1163_v63, %v1154_v61  ;;  %v2939_v52 = vrot.slane %v919_v20, %v2785_v42  ;;  %v921_v53 = vld [vmem:[%s3861_s7 + $0x28] sm:$0xff]  ;;  %v922_v61 = vld [vmem:[%s3861_s7 + $0x30] sm:$0xff] }
  0x4c   : > { %v2960_v63 = vrot.slane %v920_v47, %v2769_v29  ;;  %v2990_v8 = vrot.slane %v921_v53, %v2775_v34  ;;  %v3015_v33 = vrot.slane %v922_v61, %v2769_v29 }
  0x4d   : > { %3946 = vst [vmem:[#allocation15_spill] sm:$0xff] %v2939_v52 }
  0x4e   : > { %3951 = vst [vmem:[#allocation20_spill] sm:$0xff] %v2960_v63  ;;  %3957 = vst [vmem:[#allocation26_spill] sm:$0xff] %v3015_v33 }
  0xf1   : > { %v2475_v43 = vpop.f32.mrb[0].mxu1  ;;  %v2469_v48 = vpop.f32.mrb[0].mxu0 }
  0xf2   : > { %v766_v49 = vadd.f32 %v2475_v43, %v2413_v28  ;;  %v757_v50 = vpop.f32.mrb[1].mxu1  ;;  %v702_v57 = vadd.f32 %v2469_v48, %v2409_v45  ;;  %v693_v58 = vpop.f32.mrb[1].mxu0  ;;  %v936_v43 = vmul.f32 %v2751_v15, %v928_v30  ;;  %v2917_v48 = vrot.slane %v919_v20, %v2743_v12 }
  0xf3   : > { %v758_v59 = vadd.f32 %v2413_v28, %v757_v50  ;;  %v2476_v0 = vpop.f32.mrb[2].mxu1  ;;  %v694_v2 = vadd.f32 %v2409_v45, %v693_v58  ;;  %v2470_v3 = vpop.f32.mrb[2].mxu0  ;;  %v2927_v15 = vadd.f32 %v1266_v7, %v1257_v5  ;;  %v2930_v30 = vrot.slane %v919_v20, %v2763_v24 }
  0xf4   : > { %790 = vst.msk [vmem:[#allocation3 + $0x30] sm:$0xff] %vm772_vm1, %v766_v49  ;;  %v769_v9 = vadd.f32 %v2476_v0, %v2413_v28  ;;  %v760_v10 = vpop.f32.mrb[3].mxu1  ;;  %778 = vst.msk [vmem:[#allocation2 + $0x18] sm:$0xff] %vm772_vm1, %v702_v57  ;;  %v705_v17 = vadd.f32 %v2470_v3, %v2409_v45  ;;  %v696_v21 = vpop.f32.mrb[3].mxu0  ;;  %v2933_v49 = vrot.slane %v919_v20, %v2769_v29 }
  0xf5   : > { %788 = vst.msk [vmem:[#allocation3 + $0x20] sm:$0xff] %vm772_vm1, %v758_v59  ;;  %v761_v26 = vadd.f32 %v2413_v28, %v760_v10  ;;  %776 = vst.msk [vmem:[#allocation2 + $0x8] sm:$0xff] %vm772_vm1, %v694_v2  ;;  %v697_v31 = vadd.f32 %v2409_v45, %v696_v21  ;;  %v2920_v28 = vrot.slane %v919_v20, %v2748_v14 }
  0xf6   : > { %791 = vst.msk [vmem:[#allocation3 + $0x38] sm:$0xff] %vm772_vm1, %v769_v9  ;;  %779 = vst.msk [vmem:[#allocation2 + $0x20] sm:$0xff] %vm772_vm1, %v705_v17  ;;  %v2923_v45 = vrot.slane %v919_v20, %v2756_v19  ;;  %v2936_v50 = vrot.slane %v919_v20, %v2775_v34  ;;  %v2945_v57 = vrot.slane %v920_v47, %v2743_v12 }
  0xf7   : > { %789 = vst.msk [vmem:[#allocation3 + $0x28] sm:$0xff] %vm772_vm1, %v761_v26  ;;  %777 = vst.msk [vmem:[#allocation2 + $0x10] sm:$0xff] %vm772_vm1, %v697_v31  ;;  %v2948_v58 = vrot.slane %v920_v47, %v2748_v14  ;;  %v2951_v59 = vrot.slane %v920_v47, %v2756_v19  ;;  %v2957_v20 = vrot.slane %v920_v47, %v2763_v24 }
  0xf8   : > { %3945 = vst [vmem:[#allocation14_spill] sm:$0xff] %v2936_v50  ;;  %3947 = vst [vmem:[#allocation16_spill] sm:$0xff] %v2945_v57  ;;  %v2963_v0 = vrot.slane %v921_v53, %v2743_v12  ;;  %v2966_v2 = vrot.slane %v921_v53, %v2748_v14  ;;  %v2969_v3 = vrot.slane %v921_v53, %v2756_v19 }
  0xf9   : > { %3948 = vst [vmem:[#allocation17_spill] sm:$0xff] %v2948_v58  ;;  %3949 = vst [vmem:[#allocation18_spill] sm:$0xff] %v2951_v59  ;;  %v2972_v5 = vrot.slane %v922_v61, %v2756_v19  ;;  %v2975_v7 = vrot.slane %v920_v47, %v2775_v34  ;;  %v2978_v9 = vrot.slane %v920_v47, %v2785_v42  ;;  %v2997_v47 = vld [vmem:[%s3861_s7 + $0x38] sm:$0xff] }
  0xfa   : > { %3950 = vst [vmem:[#allocation19_spill] sm:$0xff] %v2957_v20  ;;  %v2981_v21 = vrot.slane %v921_v53, %v2741_v11  ;;  %v2984_v26 = vrot.slane %v921_v53, %v2763_v24  ;;  %v2987_v31 = vrot.slane %v921_v53, %v2769_v29  ;;  %v3003_v20 = vrot.slane %v922_v61, %v2741_v11 }
  0xfb   : > { %3952 = vst [vmem:[#allocation21_spill] sm:$0xff] %v2972_v5  ;;  %3953 = vst [vmem:[#allocation22_spill] sm:$0xff] %v2975_v7  ;;  %v3006_v58 = vrot.slane %v922_v61, %v2743_v12  ;;  %v3009_v57 = vrot.slane %v922_v61, %v2748_v14  ;;  %v3031_v33 = vrot.slane %v2997_v47, %v2743_v12 }
  0xfc   : > { %3954 = vst [vmem:[#allocation23_spill] sm:$0xff] %v2978_v9  ;;  %v944_v10 = vld [vmem:[#allocation3 + $0x19] sm:$0xff]  ;;  %v3000_v9 = vrot.slane %v921_v53, %v2785_v42  ;;  %v3046_v12 = vrot.slane %v2997_v47, %v2763_v24 }
  0xfd   : > { %v960_v17 = vld [vmem:[#allocation3 + $0x1a] sm:$0xff]  ;;  %v952_v63 = vmul.f32 %v2754_v16, %v944_v10  ;;  %v1073_v7 = vmul.f32 %v2800_v56, %v944_v10  ;;  %3955 = vst [vmem:[#allocation24_spill] sm:$0xff] %v3006_v58  ;;  %3956 = vst [vmem:[#allocation25_spill] sm:$0xff] %v3009_v57  ;;  %v3012_v16 = vrot.slane %v922_v61, %v2763_v24 }
  0xfe   : > { %v976_v59 = vld [vmem:[#allocation3 + $0x1b] sm:$0xff]  ;;  %v968_v53 = vmul.f32 %v2761_v22, %v960_v17  ;;  %v1086_v5 = vmul.f32 %v2806_v62, %v960_v17  ;;  %v3020_v56 = vrot.slane %v922_v61, %v2775_v34  ;;  %v3023_v58 = vrot.slane %v922_v61, %v2785_v42  ;;  %3961 = vst [vmem:[#allocation30_spill] sm:$0xff] %v3031_v33 }
  0xff   : > { %v956_v52 = vadd.f32 %v952_v63, %v936_v43  ;;  %v1077_v36 = vadd.f32 %v1073_v7, %v1064_v38  ;;  %v992_v50 = vld [vmem:[#allocation3 + $0x1c] sm:$0xff]  ;;  %v3027_v57 = vrot.slane %v2997_v47, %v2741_v11  ;;  %v984_v22 = vmul.f32 %v2767_v27, %v976_v59  ;;  %3964 = vst [vmem:[#allocation33_spill] sm:$0xff] %v3046_v12 }
 0x100   : > { %3958 = vst [vmem:[#allocation27_spill] sm:$0xff] %v3020_v56  ;;  %3959 = vst [vmem:[#allocation28_spill] sm:$0xff] %v3023_v58  ;;  %v1099_v63 = vmul.f32 %v2811_v4, %v976_v59  ;;  %v1008_v7 = vld [vmem:[#allocation3 + $0x1d] sm:$0xff]  ;;  %v1176_v56 = vmul.f32 %v2844_v60, %v944_v10  ;;  %v3038_v61 = vrot.slane %v2997_v47, %v2748_v14 }
 0x101   : > { %3960 = vst [vmem:[#allocation29_spill] sm:$0xff] %v3027_v57  ;;  %v972_v43 = vadd.f32 %v968_v53, %v956_v52  ;;  %v1090_v38 = vadd.f32 %v1086_v5, %v1077_v36  ;;  %v3042_v11 = vrot.slane %v2997_v47, %v2756_v19  ;;  %v1000_v27 = vmul.f32 %v2773_v32, %v992_v50  ;;  %v3050_v53 = vld [vmem:[#allocation3 + $0x1e] sm:$0xff] }
 0x102   : > { %3962 = vst [vmem:[#allocation31_spill] sm:$0xff] %v3038_v61  ;;  %v1112_v5 = vmul.f32 %v2816_v13, %v992_v50  ;;  %v1180_v33 = vadd.f32 %v1176_v56, %v2914_v40  ;;  %v1189_v14 = vmul.f32 %v2851_v6, %v960_v17  ;;  %v1279_v61 = vmul.f32 %v2917_v48, %v944_v10 }
 0x103   : > { %3963 = vst [vmem:[#allocation32_spill] sm:$0xff] %v3042_v11  ;;  %v988_v52 = vadd.f32 %v984_v22, %v972_v43  ;;  %v1103_v36 = vadd.f32 %v1099_v63, %v1090_v38  ;;  %v3057_v19 = vrot.slane %v2997_v47, %v2769_v29  ;;  %v1016_v43 = vmul.f32 %v2779_v37, %v1008_v7  ;;  %v3061_v38 = vld [vmem:[#allocation3 + $0x1f] sm:$0xff] }
 0x104   : > { %v1125_v32 = vmul.f32 %v2821_v25, %v1008_v7  ;;  %v1193_v63 = vadd.f32 %v1189_v14, %v1180_v33  ;;  %v1202_v12 = vmul.f32 %v2857_v23, %v976_v59  ;;  %v1283_v56 = vadd.f32 %v1279_v61, %v2927_v15  ;;  %v3072_v33 = vld [vmem:[#allocation3 + $0x40] sm:$0xff] }
 0x105   : > { %3965 = vst [vmem:[#allocation34_spill] sm:$0xff] %v3057_v19  ;;  %v1004_v24 = vadd.f32 %v1000_v27, %v988_v52  ;;  %v1116_v22 = vadd.f32 %v1112_v5, %v1103_v36  ;;  %v1292_v40 = vmul.f32 %v2920_v28, %v960_v17  ;;  %v1032_v29 = vmul.f32 %v2783_v41, %v3050_v53  ;;  %v3076_v17 = vld [vmem:[#allocation3 + $0x41] sm:$0xff] }
 0x106   : > { %v1138_v37 = vmul.f32 %v2826_v35, %v3050_v53  ;;  %v1206_v52 = vadd.f32 %v1202_v12, %v1193_v63  ;;  %v1215_v27 = vmul.f32 %v2863_v39, %v992_v50  ;;  %v1305_v14 = vmul.f32 %v2923_v45, %v976_v59  ;;  %3966 = vst [vmem:[#allocation35_spill] sm:$0xff] %v3072_v33  ;;  %v3082_v61 = vld [vmem:[#allocation3 + $0x20] sm:$0xff] }
 0x107   : > { %v1020_v10 = vadd.f32 %v1016_v43, %v1004_v24  ;;  %v1129_v19 = vadd.f32 %v1125_v32, %v1116_v22  ;;  %v1296_v36 = vadd.f32 %v1292_v40, %v1283_v56  ;;  %v1048_v15 = vmul.f32 %v2789_v46, %v3061_v38  ;;  %3967 = vst [vmem:[#allocation36_spill] sm:$0xff] %v3076_v17  ;;  %v3086_v32 = vld [vmem:[#allocation3 + $0x42] sm:$0xff] }
 0x108   : > { %v3080_v41 = vrot.slane %v2997_v47, %v2775_v34  ;;  %v1219_v12 = vadd.f32 %v1215_v27, %v1206_v52  ;;  %v1228_v43 = vmul.f32 %v2869_v55, %v1008_v7  ;;  %v1318_v59 = vmul.f32 %v2930_v30, %v992_v50  ;;  %3969 = vst [vmem:[#allocation38_spill] sm:$0xff] %v3086_v32  ;;  %v3096_v56 = vld [vmem:[#allocation3 + $0x44] sm:$0xff] }
 0x109   : > { %v1036_v5 = vadd.f32 %v1032_v29, %v1020_v10  ;;  %v1142_v24 = vadd.f32 %v1138_v37, %v1129_v19  ;;  %v1309_v22 = vadd.f32 %v1305_v14, %v1296_v36  ;;  %v3088_v29 = vld [vmem:[#allocation3 + $0x43] sm:$0xff]  ;;  %v1151_v19 = vmul.f32 %v2831_v44, %v3061_v38  ;;  %3972 = vst [vmem:[#allocation41_spill] sm:$0xff] %v3096_v56 }
 0x10a   : > { %3968 = vst [vmem:[#allocation37_spill] sm:$0xff] %v3080_v41  ;;  %3970 = vst [vmem:[#allocation39_spill] sm:$0xff] %v3088_v29  ;;  %v3094_v63 = vmul.f32 %v2981_v21, %v3072_v33  ;;  %v3098_v40 = vld [vmem:[#allocation3 + $0x45] sm:$0xff]  ;;  %v3102_v10 = vrot.slane %v2997_v47, %v2785_v42  ;;  %v1232_v50 = vadd.f32 %v1228_v43, %v1219_v12 }
 0x10b   : > { %v1052_v46 = vadd.f32 %v1048_v15, %v1036_v5  ;;  %3973 = vst [vmem:[#allocation42_spill] sm:$0xff] %v3098_v40  ;;  %v1241_v37 = vmul.f32 %v2875_v1, %v3050_v53  ;;  %v1322_v52 = vadd.f32 %v1318_v59, %v1309_v22  ;;  %v3108_v27 = vmul.f32 %v2963_v0, %v3076_v17  ;;  %v3110_v36 = vld [vmem:[#allocation3 + $0x46] sm:$0xff] }
 0x10c   : > { %3971 = vst [vmem:[#allocation40_spill] sm:$0xff] %v3094_v63  ;;  %3974 = vst [vmem:[#allocation43_spill] sm:$0xff] %v3102_v10  ;;  %v3112_v14 = vld [vmem:[#allocation3 + $0x47] sm:$0xff]  ;;  %v1061_v5 = vmul.f32 %v2796_v51, %v3082_v61  ;;  %v1155_v15 = vadd.f32 %v1151_v19, %v1142_v24  ;;  %v3118_v42 = vmul.f32 %v2966_v2, %v3086_v32 }
 0x10d   : > { %3975 = vst [vmem:[#allocation44_spill] sm:$0xff] %v3108_v27  ;;  %3976 = vst [vmem:[#allocation45_spill] sm:$0xff] %v3110_v36  ;;  %v3122_v47 = vmul.f32 %v2969_v3, %v3088_v29  ;;  %v3124_v12 = vld [vmem:[#allocation3 + $0x48] sm:$0xff]  ;;  %v1245_v43 = vadd.f32 %v1241_v37, %v1232_v50  ;;  %v1331_v22 = vmul.f32 %v2933_v49, %v1008_v7 }
 0x10e   : > { %3977 = vst [vmem:[#allocation46_spill] sm:$0xff] %v3112_v14  ;;  %3978 = vst [vmem:[#allocation47_spill] sm:$0xff] %v3118_v42  ;;  %v3127_v59 = vld [vmem:[#allocation3 + $0x21] sm:$0xff]  ;;  %v3131_v34 = vmul.f32 %v2984_v26, %v3096_v56  ;;  %v3135_v51 = vmul.f32 %v2987_v31, %v3098_v40  ;;  %v3137_v24 = vld [vmem:[#allocation3 + $0x49] sm:$0xff]  ;;  %v1065_v19 = vadd.f32 %v1061_v5, %v1052_v46 }
 0x10f   : > { %3979 = vst [vmem:[#allocation48_spill] sm:$0xff] %v3122_v47  ;;  %3980 = vst [vmem:[#allocation49_spill] sm:$0xff] %v3124_v12  ;;  %v1164_v10 = vmul.f32 %v2839_v54, %v3082_v61  ;;  %v3143_v50 = vmul.f32 %v2990_v8, %v3110_v36  ;;  %v3147_v7 = vmul.f32 %v3000_v9, %v3112_v14  ;;  %v3149_v37 = vld [vmem:[#allocation3 + $0x4a] sm:$0xff]  ;;  %v3153_v41 = vld [vmem:[#allocation3 + $0x22] sm:$0xff] }
 0x110   : > { %3981 = vst [vmem:[#allocation50_spill] sm:$0xff] %v3131_v34  ;;  %3982 = vst [vmem:[#allocation51_spill] sm:$0xff] %v3135_v51  ;;  %v1254_v34 = vmul.f32 %v2881_v18, %v3061_v38  ;;  %v1335_v51 = vadd.f32 %v1331_v22, %v1322_v52  ;;  %v3157_v46 = vmul.f32 %v3003_v20, %v3072_v33  ;;  %v3989_v47 = vld [vmem:[#allocation11_spill] sm:$0xff]  ;;  %v3990_v42 = vld [vmem:[#allocation24_spill] sm:$0xff] }
 0x111   : > { %3983 = vst [vmem:[#allocation52_spill] sm:$0xff] %v3137_v24  ;;  %3984 = vst [vmem:[#allocation53_spill] sm:$0xff] %v3143_v50  ;;  %v3161_v5 = vmul.f32 %v3003_v20, %v3124_v12  ;;  %v1168_v50 = vadd.f32 %v1164_v10, %v1155_v15  ;;  %v3167_v27 = vmul.f32 %v3990_v42, %v3076_v17  ;;  %v3173_v22 = vld [vmem:[#allocation3 + $0x4b] sm:$0xff]  ;;  %v3177_v12 = vld [vmem:[#allocation3 + $0x23] sm:$0xff] }
 0x112   : > { %3985 = vst [vmem:[#allocation54_spill] sm:$0xff] %v3147_v7  ;;  %3986 = vst [vmem:[#allocation55_spill] sm:$0xff] %v3149_v37  ;;  %v1074_v7 = vmul.f32 %v3989_v47, %v3127_v59  ;;  %v3171_v52 = vmul.f32 %v3990_v42, %v3137_v24  ;;  %v1258_v11 = vadd.f32 %v1254_v34, %v1245_v43  ;;  %v3995_v10 = vld [vmem:[#allocation25_spill] sm:$0xff] }
 0x113   : > { %3987 = vst [vmem:[#allocation56_spill] sm:$0xff] %v3157_v46  ;;  %3988 = vst [vmem:[#allocation57_spill] sm:$0xff] %v3161_v5  ;;  %v3994_v46 = vld [vmem:[#allocation14_spill] sm:$0xff]  ;;  %v3181_v15 = vmul.f32 %v3995_v10, %v3086_v32  ;;  %v3185_v47 = vmul.f32 %v3995_v10, %v3149_v37  ;;  %v1177_v34 = vmul.f32 %v2844_v60, %v3127_v59  ;;  %v3998_v43 = vld [vmem:[#allocation21_spill] sm:$0xff] }
 0x114   : > { %3991 = vst [vmem:[#allocation11_spill] sm:$0xff] %v3167_v27  ;;  %3992 = vst [vmem:[#allocation24_spill] sm:$0xff] %v3171_v52  ;;  %v1344_v63 = vmul.f32 %v3994_v46, %v3050_v53  ;;  %v1078_v5 = vadd.f32 %v1074_v7, %v1065_v19  ;;  %v1087_v52 = vmul.f32 %v2806_v62, %v3153_v41  ;;  %v4000_v27 = vld [vmem:[#allocation12_spill] sm:$0xff] }
 0x115   : > { %3993 = vst [vmem:[#allocation58_spill] sm:$0xff] %v3173_v22  ;;  %3996 = vst [vmem:[#allocation14_spill] sm:$0xff] %v3181_v15  ;;  %v3193_v53 = vmul.f32 %v3998_v43, %v3088_v29  ;;  %v1267_v24 = vmul.f32 %v4000_v27, %v3082_v61  ;;  %v3197_v15 = vld [vmem:[#allocation3 + $0x24] sm:$0xff]  ;;  %v3205_v62 = vmul.f32 %v3012_v16, %v3096_v56 }
 0x116   : > { %3997 = vst [vmem:[#allocation25_spill] sm:$0xff] %v3185_v47  ;;  %v1348_v32 = vadd.f32 %v1344_v63, %v1335_v51  ;;  %v3201_v47 = vmul.f32 %v3998_v43, %v3173_v22  ;;  %v1091_v19 = vadd.f32 %v1087_v52, %v1078_v5  ;;  %v1100_v7 = vmul.f32 %v2811_v4, %v3177_v12  ;;  %v4003_v63 = vld [vmem:[#allocation15_spill] sm:$0xff]  ;;  %v3213_v17 = vld [vmem:[#allocation3 + $0x25] sm:$0xff]  ;;  %v3223_v52 = vld [vmem:[#allocation3 + $0x30] sm:$0xff] }
 0x117   : > { %3999 = vst [vmem:[#allocation21_spill] sm:$0xff] %v3193_v53  ;;  %4002 = vst [vmem:[#allocation59_spill] sm:$0xff] %v3205_v62  ;;  %v1181_v29 = vadd.f32 %v1177_v34, %v1168_v50  ;;  %v1190_v53 = vmul.f32 %v2851_v6, %v3153_v41  ;;  %v1271_v37 = vadd.f32 %v1267_v24, %v1258_v11  ;;  %v4006_v62 = vld [vmem:[#allocation27_spill] sm:$0xff]  ;;  %v3229_v34 = vld [vmem:[#allocation3 + $0x26] sm:$0xff] }
 0x118   : > { %4001 = vst [vmem:[#allocation12_spill] sm:$0xff] %v3201_v47  ;;  %v1357_v51 = vmul.f32 %v4003_v63, %v3061_v38  ;;  %v4004_v47 = vld [vmem:[#allocation26_spill] sm:$0xff]  ;;  %v3221_v5 = vmul.f32 %v4006_v62, %v3110_v36  ;;  %v1104_v4 = vadd.f32 %v1100_v7, %v1091_v19  ;;  %v1113_v50 = vmul.f32 %v2816_v13, %v3197_v15 }
 0x119   : > { %v3217_v22 = vmul.f32 %v4004_v47, %v3098_v40  ;;  %v1194_v11 = vadd.f32 %v1190_v53, %v1181_v29  ;;  %v1203_v38 = vmul.f32 %v2857_v23, %v3177_v12  ;;  %v3235_v36 = vmul.f32 %v3023_v58, %v3112_v14 }
 0x11a   : > { %4007 = vst [vmem:[#allocation26_spill] sm:$0xff] %v3221_v5  ;;  %v1361_v24 = vadd.f32 %v1357_v51, %v1348_v32  ;;  %v3239_v19 = vmul.f32 %v3027_v57, %v3072_v33  ;;  %v1117_v7 = vadd.f32 %v1113_v50, %v1104_v4  ;;  %v1126_v13 = vmul.f32 %v2821_v25, %v3213_v17  ;;  %v4010_v51 = vld [vmem:[#allocation13_spill] sm:$0xff] }
 0x11b   : > { %4005 = vst [vmem:[#allocation15_spill] sm:$0xff] %v3217_v22  ;;  %v1280_v22 = vmul.f32 %v2917_v48, %v3127_v59  ;;  %4008 = vst [vmem:[#allocation60_spill] sm:$0xff] %v3235_v36  ;;  %v1207_v29 = vadd.f32 %v1203_v38, %v1194_v11  ;;  %v1216_v32 = vmul.f32 %v2863_v39, %v3197_v15  ;;  %v3251_v36 = vld [vmem:[#allocation3 + $0x27] sm:$0xff] }
 0x11c   : > { %4009 = vst [vmem:[#allocation61_spill] sm:$0xff] %v3239_v19  ;;  %v3247_v53 = vmul.f32 %v4000_v27, %v3223_v52  ;;  %v1370_v5 = vmul.f32 %v4010_v51, %v3082_v61  ;;  %v1293_v4 = vmul.f32 %v2920_v28, %v3153_v41  ;;  %v1130_v50 = vadd.f32 %v1126_v13, %v1117_v7  ;;  %v3263_v61 = vld [vmem:[#allocation3 + $0x28] sm:$0xff] }
 0x11d   : > { %v1284_v14 = vadd.f32 %v1280_v22, %v1271_v37  ;;  %v1139_v25 = vmul.f32 %v2826_v35, %v3229_v34  ;;  %v1220_v11 = vadd.f32 %v1216_v32, %v1207_v29  ;;  %v1229_v38 = vmul.f32 %v2869_v55, %v3213_v17  ;;  %v3271_v29 = vld [vmem:[#allocation3 + $0x29] sm:$0xff] }
 0x11e   : > { %v3261_v33 = vmul.f32 %v4010_v51, %v3223_v52  ;;  %v1374_v40 = vadd.f32 %v1370_v5, %v1361_v24  ;;  %v1306_v37 = vmul.f32 %v2923_v45, %v3177_v12  ;;  %v1152_v7 = vmul.f32 %v2831_v44, %v3251_v36  ;;  %v4011_v24 = vld [vmem:[#allocation16_spill] sm:$0xff] }
 0x11f   : > { %v1297_v19 = vadd.f32 %v1293_v4, %v1284_v14  ;;  %v1143_v22 = vadd.f32 %v1139_v25, %v1130_v50  ;;  %v1233_v35 = vadd.f32 %v1229_v38, %v1220_v11  ;;  %v1242_v13 = vmul.f32 %v2875_v1, %v3229_v34  ;;  %v3285_v38 = vld [vmem:[#allocation3 + $0x2a] sm:$0xff] }
 0x120   : > { %v1319_v5 = vmul.f32 %v2930_v30, %v3197_v15  ;;  %v1383_v14 = vmul.f32 %v4011_v24, %v3127_v59  ;;  %v3279_v4 = vmul.f32 %v2981_v21, %v3223_v52  ;;  %v1165_v44 = vmul.f32 %v2839_v54, %v3263_v61  ;;  %v4012_v59 = vld [vmem:[#allocation17_spill] sm:$0xff] }
 0x121   : > { %v1310_v32 = vadd.f32 %v1306_v37, %v1297_v19  ;;  %v1156_v50 = vadd.f32 %v1152_v7, %v1143_v22  ;;  %v1246_v25 = vadd.f32 %v1242_v13, %v1233_v35  ;;  %v1255_v11 = vmul.f32 %v2881_v18, %v3251_v36  ;;  %v3295_v35 = vld [vmem:[#allocation3 + $0x2b] sm:$0xff] }
 0x122   : > { %v1332_v37 = vmul.f32 %v2933_v49, %v3213_v17  ;;  %v1387_v56 = vadd.f32 %v1383_v14, %v1374_v40  ;;  %v1396_v57 = vmul.f32 %v4012_v59, %v3153_v41  ;;  %v1178_v22 = vmul.f32 %v2844_v60, %v3271_v29  ;;  %v4013_v40 = vld [vmem:[#allocation18_spill] sm:$0xff] }
 0x123   : > { %v1323_v19 = vadd.f32 %v1319_v5, %v1310_v32  ;;  %v1169_v58 = vadd.f32 %v1165_v44, %v1156_v50  ;;  %v1259_v7 = vadd.f32 %v1255_v11, %v1246_v25  ;;  %v1268_v54 = vmul.f32 %v4000_v27, %v3263_v61  ;;  %v3305_v44 = vld [vmem:[#allocation3 + $0x2c] sm:$0xff] }
 0x124   : > { %v1345_v32 = vmul.f32 %v3994_v46, %v3229_v34  ;;  %v1400_v5 = vadd.f32 %v1396_v57, %v1387_v56  ;;  %v1409_v14 = vmul.f32 %v4013_v40, %v3177_v12  ;;  %v1191_v41 = vmul.f32 %v2851_v6, %v3285_v38  ;;  %v4014_v57 = vld [vmem:[#allocation19_spill] sm:$0xff] }
 0x125   : > { %v1336_v13 = vadd.f32 %v1332_v37, %v1323_v19  ;;  %v1182_v62 = vadd.f32 %v1178_v22, %v1169_v58  ;;  %v1272_v50 = vadd.f32 %v1268_v54, %v1259_v7  ;;  %v1281_v60 = vmul.f32 %v2917_v48, %v3271_v29  ;;  %v3315_v37 = vld [vmem:[#allocation3 + $0x2d] sm:$0xff] }
 0x126   : > { %v1358_v25 = vmul.f32 %v4003_v63, %v3251_v36  ;;  %v1413_v11 = vadd.f32 %v1409_v14, %v1400_v5  ;;  %v1422_v56 = vmul.f32 %v4014_v57, %v3197_v15  ;;  %v1204_v58 = vmul.f32 %v2857_v23, %v3295_v35  ;;  %v3325_v14 = vld [vmem:[#allocation3 + $0x2e] sm:$0xff] }
 0x127   : > { %v1349_v27 = vadd.f32 %v1345_v32, %v1336_v13  ;;  %v1195_v19 = vadd.f32 %v1191_v41, %v1182_v62  ;;  %v1285_v12 = vadd.f32 %v1281_v60, %v1272_v50  ;;  %v1294_v6 = vmul.f32 %v2920_v28, %v3285_v38  ;;  %v4015_v13 = vld [vmem:[#allocation20_spill] sm:$0xff] }
 0x128   : > { %v1371_v7 = vmul.f32 %v4010_v51, %v3263_v61  ;;  %v1426_v54 = vadd.f32 %v1422_v56, %v1413_v11  ;;  %v1435_v32 = vmul.f32 %v4015_v13, %v3213_v17  ;;  %v1217_v15 = vmul.f32 %v2863_v39, %v3305_v44 }
 0x129   : > { %v1362_v22 = vadd.f32 %v1358_v25, %v1349_v27  ;;  %v1208_v5 = vadd.f32 %v1204_v58, %v1195_v19  ;;  %v1298_v62 = vadd.f32 %v1294_v6, %v1285_v12  ;;  %v1307_v23 = vmul.f32 %v2923_v45, %v3295_v35  ;;  %v4016_v27 = vld [vmem:[#allocation22_spill] sm:$0xff] }
 0x12a   : > { %v1384_v50 = vmul.f32 %v4011_v24, %v3271_v29  ;;  %v1439_v60 = vadd.f32 %v1435_v32, %v1426_v54  ;;  %v1448_v25 = vmul.f32 %v4016_v27, %v3229_v34  ;;  %v1230_v17 = vmul.f32 %v2869_v55, %v3315_v37  ;;  %v3335_v19 = vld [vmem:[#allocation3 + $0x2f] sm:$0xff] }
 0x12b   : > { %v1375_v41 = vadd.f32 %v1371_v7, %v1362_v22  ;;  %v1221_v11 = vadd.f32 %v1217_v15, %v1208_v5  ;;  %v1311_v56 = vadd.f32 %v1307_v23, %v1298_v62  ;;  %v1320_v39 = vmul.f32 %v2930_v30, %v3305_v44  ;;  %v4017_v22 = vld [vmem:[#allocation23_spill] sm:$0xff] }
 0x12c   : > { %v1397_v12 = vmul.f32 %v4012_v59, %v3285_v38  ;;  %v1452_v6 = vadd.f32 %v1448_v25, %v1439_v60  ;;  %v1461_v7 = vmul.f32 %v4017_v22, %v3251_v36  ;;  %v1243_v34 = vmul.f32 %v2875_v1, %v3325_v14  ;;  %v3353_v60 = vld [vmem:[#allocation3 + $0x31] sm:$0xff] }
 0x12d   : > { %v1388_v58 = vadd.f32 %v1384_v50, %v1375_v41  ;;  %v1234_v54 = vadd.f32 %v1230_v17, %v1221_v11  ;;  %v1324_v32 = vadd.f32 %v1320_v39, %v1311_v56  ;;  %v1333_v55 = vmul.f32 %v2933_v49, %v3315_v37  ;;  %v3355_v25 = vld [vmem:[#allocation3 + $0x32] sm:$0xff] }
 0x12e   : > { %v1410_v15 = vmul.f32 %v4013_v40, %v3295_v35  ;;  %v1465_v62 = vadd.f32 %v1461_v7, %v1452_v6  ;;  %v1474_v23 = vmul.f32 %v2981_v21, %v3263_v61  ;;  %v1256_v36 = vmul.f32 %v2881_v18, %v3335_v19  ;;  %v3367_v6 = vld [vmem:[#allocation3 + $0x33] sm:$0xff] }
 0x12f   : > { %v1401_v5 = vadd.f32 %v1397_v12, %v1388_v58  ;;  %v1247_v41 = vadd.f32 %v1243_v34, %v1234_v54  ;;  %v1337_v50 = vadd.f32 %v1333_v55, %v1324_v32  ;;  %v1346_v1 = vmul.f32 %v3994_v46, %v3325_v14 }
 0x130   : > { %v1423_v17 = vmul.f32 %v4014_v57, %v3305_v44  ;;  %v1487_v56 = vmul.f32 %v2963_v0, %v3271_v29  ;;  %v1478_v61 = vadd.f32 %v1474_v23, %v1465_v62  ;;  %v1359_v18 = vmul.f32 %v4003_v63, %v3335_v19 }
 0x131   : > { %v1414_v11 = vadd.f32 %v1410_v15, %v1401_v5  ;;  %v1260_v39 = vadd.f32 %v1256_v36, %v1247_v41  ;;  %v1350_v58 = vadd.f32 %v1346_v1, %v1337_v50  ;;  %v3365_v12 = vmul.f32 %v3003_v20, %v3223_v52  ;;  %v3378_v15 = vld [vmem:[#allocation3 + $0x34] sm:$0xff] }
 0x132   : > { %v1436_v54 = vmul.f32 %v4015_v13, %v3315_v37  ;;  %v1500_v34 = vmul.f32 %v2966_v2, %v3285_v38  ;;  %v1491_v29 = vadd.f32 %v1487_v56, %v1478_v61  ;;  %v1282_v32 = vmul.f32 %v2917_v48, %v3353_v60  ;;  %v3386_v48 = vld [vmem:[#allocation3 + $0x35] sm:$0xff] }
 0x133   : > { %v1427_v7 = vadd.f32 %v1423_v17, %v1414_v11  ;;  %v1295_v55 = vmul.f32 %v2920_v28, %v3355_v25  ;;  %v1273_v5 = vadd.f32 %v3247_v53, %v1260_v39  ;;  %v1363_v52 = vadd.f32 %v1359_v18, %v1350_v58  ;;  %v3391_v1 = vld [vmem:[#allocation3 + $0x36] sm:$0xff] }
 0x134   : > { %v1513_v23 = vmul.f32 %v2969_v3, %v3295_v35  ;;  %v1449_v41 = vmul.f32 %v4016_v27, %v3325_v14  ;;  %v1504_v38 = vadd.f32 %v1500_v34, %v1491_v29  ;;  %v1308_v36 = vmul.f32 %v2923_v45, %v3367_v6  ;;  %v3403_v18 = vld [vmem:[#allocation3 + $0x37] sm:$0xff] }
 0x135   : > { %v1440_v62 = vadd.f32 %v1436_v54, %v1427_v7  ;;  %v1385_v28 = vmul.f32 %v4011_v24, %v3353_v60  ;;  %v1286_v53 = vadd.f32 %v1282_v32, %v1273_v5  ;;  %v1376_v50 = vadd.f32 %v3261_v33, %v1363_v52 }
 0x136   : > { %v1462_v35 = vmul.f32 %v4017_v22, %v3335_v19  ;;  %v1517_v17 = vadd.f32 %v1513_v23, %v1504_v38  ;;  %v1526_v56 = vmul.f32 %v2984_v26, %v3305_v44  ;;  %v1321_v45 = vmul.f32 %v2930_v30, %v3378_v15 }
 0x137   : > { %v1453_v11 = vadd.f32 %v1449_v41, %v1440_v62  ;;  %v1398_v61 = vmul.f32 %v4012_v59, %v3355_v25  ;;  %v1299_v39 = vadd.f32 %v1295_v55, %v1286_v53  ;;  %v1389_v58 = vadd.f32 %v1385_v28, %v1376_v50  ;;  %v3411_v55 = vld [vmem:[#allocation3 + $0x38] sm:$0xff] }
 0x138   : > { %v1334_v33 = vmul.f32 %v2933_v49, %v3386_v48  ;;  %v1530_v54 = vadd.f32 %v1526_v56, %v1517_v17  ;;  %v1539_v34 = vmul.f32 %v2987_v31, %v3315_v37  ;;  %v1347_v44 = vmul.f32 %v3994_v46, %v3391_v1  ;;  %v3420_v46 = vld [vmem:[#allocation3 + $0x39] sm:$0xff] }
 0x139   : > { %v1466_v7 = vadd.f32 %v1462_v35, %v1453_v11  ;;  %v1411_v30 = vmul.f32 %v4013_v40, %v3367_v6  ;;  %v1312_v29 = vadd.f32 %v1308_v36, %v1299_v39  ;;  %v1402_v32 = vadd.f32 %v1398_v61, %v1389_v58 }
 0x13a   : > { %v1488_v49 = vmul.f32 %v2963_v0, %v3353_v60  ;;  %v1543_v52 = vadd.f32 %v1539_v34, %v1530_v54  ;;  %v1552_v62 = vmul.f32 %v2990_v8, %v3325_v14  ;;  %v1360_v37 = vmul.f32 %v4003_v63, %v3403_v18  ;;  %v1847_v54 = vld [vmem:[%s3863_s9] sm:$0xf] }
 0x13b   : > { %v1479_v5 = vadd.f32 %v3279_v4, %v1466_v7  ;;  %v1424_v23 = vmul.f32 %v4014_v57, %v3378_v15  ;;  %v1325_v41 = vadd.f32 %v1321_v45, %v1312_v29  ;;  %v1415_v38 = vadd.f32 %v1411_v30, %v1402_v32  ;;  %v3453_v32 = vld [vmem:[#allocation3 + $0x3a] sm:$0xff] }
 0x13c   : > { %v1501_v36 = vmul.f32 %v2966_v2, %v3355_v25  ;;  %v1556_v53 = vadd.f32 %v1552_v62, %v1543_v52  ;;  %v1565_v4 = vmul.f32 %v3000_v9, %v3335_v19  ;;  %v1373_v14 = vmul.f32 %v4010_v51, %v3411_v55  ;;  %v1850_v19 = vld [vmem:[%s3864_s10] sm:$0xf] }
 0x13d   : > { %v1492_v28 = vadd.f32 %v1488_v49, %v1479_v5  ;;  %v1437_v63 = vmul.f32 %v4015_v13, %v3386_v48  ;;  %v1428_v50 = vadd.f32 %v1424_v23, %v1415_v38  ;;  %v1338_v11 = vadd.f32 %v1334_v33, %v1325_v41  ;;  %2511 = vmatprep.subr.msk.bf16.mxu0 %vm1857_vm2, %v1850_v19 }
 0x13e   : > { %v1386_v35 = vmul.f32 %v4011_v24, %v3420_v46  ;;  %v1514_v17 = vmul.f32 %v2969_v3, %v3367_v6  ;;  %v1569_v45 = vadd.f32 %v1565_v4, %v1556_v53  ;;  %v1450_v51 = vmul.f32 %v4016_v27, %v3391_v1 }
 0x13f   : > { %v1505_v56 = vadd.f32 %v1501_v36, %v1492_v28  ;;  %v1351_v61 = vadd.f32 %v1347_v44, %v1338_v11  ;;  %v1441_v39 = vadd.f32 %v1437_v63, %v1428_v50  ;;  %v1527_v58 = vmul.f32 %v2984_v26, %v3378_v15  ;;  %v3468_v36 = vld [vmem:[#allocation3 + $0x3c] sm:$0xff] }
 0x140   : > { %v1582_v24 = vadd.f32 %v3365_v12, %v1569_v45  ;;  %v1591_v7 = vmul.f32 %v3990_v42, %v3353_v60  ;;  %v1463_v30 = vmul.f32 %v4017_v22, %v3403_v18  ;;  %v1859_v29 = vsel %vm1857_vm2, %v1850_v19, 0  ;;  %v3455_v12 = vld [vmem:[#allocation3 + $0x3b] sm:$0xff] }
 0x141   : > { %v1518_v33 = vadd.f32 %v1514_v17, %v1505_v56  ;;  %v1364_v34 = vadd.f32 %v1360_v37, %v1351_v61  ;;  %v1454_v44 = vadd.f32 %v1450_v51, %v1441_v39  ;;  %v1540_v60 = vmul.f32 %v2987_v31, %v3386_v48  ;;  %2478 = vmatpush3.bf16.msra.mxu0 %v1859_v29  ;;  %v3484_v45 = vld [vmem:[#allocation3 + $0x3d] sm:$0xff] }
 0x142   : > { %v1595_v5 = vadd.f32 %v1591_v7, %v1582_v24  ;;  %v1604_v52 = vmul.f32 %v3995_v10, %v3355_v25  ;;  %v1489_v62 = vmul.f32 %v2963_v0, %v3420_v46  ;;  %v1476_v41 = vmul.f32 %v2981_v21, %v3411_v55  ;;  %2512 = vmatprep.subr.msk.bf16.mxu0 %vm1857_vm2, %v1847_v54  ;;  %v4018_v7 = vld [vmem:[#allocation27_spill] sm:$0xff] }
 0x143   : > { %v1531_v49 = vadd.f32 %v1527_v58, %v1518_v33  ;;  %v1377_v37 = vadd.f32 %v1373_v14, %v1364_v34  ;;  %v1467_v23 = vadd.f32 %v1463_v30, %v1454_v44  ;;  %v1617_v38 = vmul.f32 %v3998_v43, %v3367_v6  ;;  %v3494_v33 = vld [vmem:[#allocation3 + $0x3e] sm:$0xff] }
 0x144   : > { %v1553_v25 = vmul.f32 %v2990_v8, %v3391_v1  ;;  %v1608_v53 = vadd.f32 %v1604_v52, %v1595_v5  ;;  %v1399_v0 = vmul.f32 %v4012_v59, %v3453_v32  ;;  %v1412_v14 = vmul.f32 %v4013_v40, %v3455_v12  ;;  %v3505_v29 = vld [vmem:[#allocation3 + $0x3f] sm:$0xff] }
 0x145   : > { %v1544_v28 = vadd.f32 %v1540_v60, %v1531_v49  ;;  %v1390_v4 = vadd.f32 %v1386_v35, %v1377_v37  ;;  %v1480_v21 = vadd.f32 %v1476_v41, %v1467_v23  ;;  %v1566_v50 = vmul.f32 %v3000_v9, %v3403_v18  ;;  %v4020_v41 = vld [vmem:[#allocation29_spill] sm:$0xff] }
 0x146   : > { %v1621_v6 = vadd.f32 %v1617_v38, %v1608_v53  ;;  %v1630_v11 = vmul.f32 %v3012_v16, %v3378_v15  ;;  %v1425_v56 = vmul.f32 %v4014_v57, %v3468_v36  ;;  %v1502_v59 = vmul.f32 %v2966_v2, %v3453_v32 }
 0x147   : > { %v1557_v63 = vadd.f32 %v1553_v25, %v1544_v28  ;;  %v1403_v17 = vadd.f32 %v1399_v0, %v1390_v4  ;;  %v1493_v35 = vadd.f32 %v1489_v62, %v1480_v21  ;;  %v1579_v19 = vmul.f32 %v3003_v20, %v3411_v55  ;;  %v4021_v4 = vld [vmem:[#allocation30_spill] sm:$0xff]  ;;  %v4022_v21 = vld [vmem:[#allocation49_spill] sm:$0xff] }
 0x148   : > { %v1634_v61 = vadd.f32 %v1630_v11, %v1621_v6  ;;  %v1643_v39 = vmul.f32 %v4004_v47, %v3386_v48  ;;  %v1515_v58 = vmul.f32 %v2969_v3, %v3455_v12  ;;  %v1592_v57 = vmul.f32 %v3990_v42, %v3420_v46  ;;  %v4023_v6 = vld [vmem:[#allocation31_spill] sm:$0xff] }
 0x149   : > { %v1570_v40 = vadd.f32 %v1566_v50, %v1557_v63  ;;  %v1416_v51 = vadd.f32 %v1412_v14, %v1403_v17  ;;  %v1506_v15 = vadd.f32 %v1502_v59, %v1493_v35  ;;  %v1656_v34 = vmul.f32 %v4018_v7, %v3391_v1  ;;  %v4019_v1 = vld [vmem:[#allocation28_spill] sm:$0xff] }
 0x14a   : > { %v1647_v24 = vadd.f32 %v1643_v39, %v1634_v61  ;;  %v3499_v20 = vsel %vm1857_vm2, %v1847_v54, 0  ;;  %v1438_v48 = vmul.f32 %v4015_v13, %v3484_v45  ;;  %v1528_v3 = vmul.f32 %v2984_v26, %v3468_v36  ;;  %v4024_v17 = vld [vmem:[#allocation40_spill] sm:$0xff] }
 0x14b   : > { %v1583_v2 = vadd.f32 %v1579_v19, %v1570_v40  ;;  %v1429_v44 = vadd.f32 %v1425_v56, %v1416_v51  ;;  %v1519_v30 = vadd.f32 %v1515_v58, %v1506_v15  ;;  %v1605_v49 = vmul.f32 %v3995_v10, %v3453_v32  ;;  %v4025_v35 = vld [vmem:[#allocation36_spill] sm:$0xff] }
 0x14c   : > { %v1660_v60 = vadd.f32 %v1656_v34, %v1647_v24  ;;  %v1669_v5 = vmul.f32 %v4019_v1, %v3403_v18  ;;  %v1451_v52 = vmul.f32 %v4016_v27, %v3494_v33  ;;  %v1541_v13 = vmul.f32 %v2987_v31, %v3484_v45  ;;  %v4026_v40 = vld [vmem:[#allocation52_spill] sm:$0xff]  ;;  %v4030_v24 = vld [vmem:[#allocation38_spill] sm:$0xff] }
 0x14d   : > { %v1596_v42 = vadd.f32 %v1592_v57, %v1583_v2  ;;  %v1442_v54 = vadd.f32 %v1438_v48, %v1429_v44  ;;  %v1532_v62 = vadd.f32 %v1528_v3, %v1519_v30  ;;  %v1618_v26 = vmul.f32 %v3998_v43, %v3455_v12  ;;  %v4027_v51 = vld [vmem:[#allocation32_spill] sm:$0xff]  ;;  %v4031_v44 = vld [vmem:[#allocation55_spill] sm:$0xff] }
 0x14e   : > { %v1673_v23 = vadd.f32 %v1669_v5, %v1660_v60  ;;  %v1682_v10 = vmul.f32 %v4020_v41, %v3411_v55  ;;  %v1464_v18 = vmul.f32 %v4017_v22, %v3505_v29  ;;  %v1554_v27 = vmul.f32 %v2990_v8, %v3494_v33  ;;  %v4028_v58 = vld [vmem:[#allocation44_spill] sm:$0xff]  ;;  %v4033_v5 = vld [vmem:[#allocation47_spill] sm:$0xff] }
 0x14f   : > { %v1609_v37 = vadd.f32 %v1605_v49, %v1596_v42  ;;  %v1455_v38 = vadd.f32 %v1451_v52, %v1442_v54  ;;  %v1545_v28 = vadd.f32 %v1541_v13, %v1532_v62  ;;  %v1631_v31 = vmul.f32 %v3012_v16, %v3468_v36  ;;  %v4029_v57 = vld [vmem:[#allocation56_spill] sm:$0xff]  ;;  %v4032_v49 = vld [vmem:[#allocation33_spill] sm:$0xff]  ;;  %v4034_v52 = vld [vmem:[#allocation11_spill] sm:$0xff] }
 0x150   : > { %v1686_v53 = vadd.f32 %v1682_v10, %v1673_v23  ;;  %v1695_v43 = vmul.f32 %v4021_v4, %v3420_v46  ;;  %v1567_v55 = vmul.f32 %v3000_v9, %v3505_v29  ;;  %v3531_v22 = vmul.f32 %v4020_v41, %v4022_v21  ;;  %v4035_v13 = vld [vmem:[#allocation39_spill] sm:$0xff]  ;;  %v3574_v10 = vld [vmem:[%s3861_s7 + $0x40] ss:$0 sm:$0xff] }
 0x151   : > { %v1622_v25 = vadd.f32 %v1618_v26, %v1609_v37  ;;  %v1468_v0 = vadd.f32 %v1464_v18, %v1455_v38  ;;  %v1558_v14 = vadd.f32 %v1554_v27, %v1545_v28  ;;  %v1644_v8 = vmul.f32 %v4004_v47, %v3484_v45  ;;  %v4036_v26 = vld [vmem:[#allocation41_spill] sm:$0xff]  ;;  %v4037_v18 = vld [vmem:[#allocation34_spill] sm:$0xff]  ;;  %v4038_v27 = vld [vmem:[#allocation48_spill] sm:$0xff] }
 0x152   : > { %v1699_v50 = vadd.f32 %v1695_v43, %v1686_v53  ;;  %v1708_v11 = vmul.f32 %v4023_v6, %v3453_v32  ;;  %v1696_v59 = vmul.f32 %v4021_v4, %v4025_v35  ;;  %v3542_v9 = vmul.f32 %v4021_v4, %v4026_v40  ;;  %v4040_v43 = vld [vmem:[#allocation4_spill] sm:$0xff]  ;;  %v793_v35 = vld [vmem:[#allocation2 + $0x5] sm:$0xff] }
 0x153   : > { %v1635_v63 = vadd.f32 %v1631_v31, %v1622_v25  ;;  %v1481_v56 = vadd.f32 %v4024_v17, %v1468_v0  ;;  %v1571_v46 = vadd.f32 %v1567_v55, %v1558_v14  ;;  %v1657_v61 = vmul.f32 %v4018_v7, %v3494_v33  ;;  %v4039_v31 = vld [vmem:[#allocation14_spill] sm:$0xff]  ;;  %v4041_v14 = vld [vmem:[#allocation5_spill] sm:$0xff] }
 0x154   : > { %v1712_v39 = vadd.f32 %v1708_v11, %v1699_v50  ;;  %v1721_v15 = vmul.f32 %v4027_v51, %v3455_v12  ;;  %v1709_v34 = vmul.f32 %v4023_v6, %v4030_v24  ;;  %v3554_v48 = vmul.f32 %v4023_v6, %v4031_v44  ;;  %v3563_v12 = vld [vmem:[%s3859_s5] sm:$0x7f]  ;;  %v794_v24 = vld [vmem:[#allocation2 + $0xd] sm:$0xff] }
 0x155   : > { %v1648_v19 = vadd.f32 %v1644_v8, %v1635_v63  ;;  %v1494_v32 = vadd.f32 %v4028_v58, %v1481_v56  ;;  %v1584_v2 = vadd.f32 %v4029_v57, %v1571_v46  ;;  %v1670_v3 = vmul.f32 %v4019_v1, %v3505_v29  ;;  %v4043_v8 = vld [vmem:[#allocation61_spill] sm:$0xff]  ;;  %v4044_v11 = vld [vmem:[#allocation42_spill] sm:$0xff]  ;;  %v4049_v57 = vld [vmem:[#allocation35_spill] sm:$0xff] }
 0x156   : > { %v1725_v42 = vadd.f32 %v1721_v15, %v1712_v39  ;;  %v1734_v60 = vmul.f32 %v4032_v49, %v3468_v36  ;;  %v1722_v37 = vmul.f32 %v4027_v51, %v4035_v13  ;;  %v1735_v23 = vmul.f32 %v4032_v49, %v4036_v26  ;;  %v4045_v56 = vld [vmem:[#allocation37_spill] sm:$0xff]  ;;  %v809_v40 = vld [vmem:[#allocation2 + $0x6] sm:$0xff]  ;;  %v810_v44 = vld [vmem:[#allocation2 + $0xe] sm:$0xff] }
 0x157   : > { %v1661_v30 = vadd.f32 %v1657_v61, %v1648_v19  ;;  %v1507_v54 = vadd.f32 %v4033_v5, %v1494_v32  ;;  %v1597_v62 = vadd.f32 %v4034_v52, %v1584_v2  ;;  %v1747_v28 = vmul.f32 %v4037_v18, %v3484_v45  ;;  %v4046_v19 = vld [vmem:[#allocation50_spill] sm:$0xff]  ;;  %v4047_v39 = vld [vmem:[#allocation21_spill] sm:$0xff] }
 0x158   : > { %v1738_v38 = vadd.f32 %v1734_v60, %v1725_v42  ;;  %v3582_v0 = vrot.slane %v3563_v12, %v4040_v43  ;;  %v3586_v55 = vrot.slane %v3563_v12, %v4041_v14  ;;  %v4042_v63 = vmov 0.0   ;;  %v4048_v58 = vld [vmem:[#allocation45_spill] sm:$0xff]  ;;  %v4050_v42 = vld [vmem:[#allocation43_spill] sm:$0xff] }
 0x159   : > { %v1674_v36 = vadd.f32 %v1670_v3, %v1661_v30  ;;  %v1520_v25 = vadd.f32 %v4038_v27, %v1507_v54  ;;  %v1610_v53 = vadd.f32 %v4039_v31, %v1597_v62  ;;  %775 = vst.msk [vmem:[#allocation2 + $0x28] sm:$0x7] %vm774_vm3, %v4042_v63  ;;  %v1748_v45 = vmul.f32 %v4037_v18, %v4044_v11  ;;  %v4052_v54 = vld [vmem:[#allocation51_spill] sm:$0xff]  ;;  %v1625_v26 = vld [vmem:[#allocation3 + $0x4c] sm:$0xff] }
 0x15a   : > { %v1751_v17 = vadd.f32 %v1747_v28, %v1738_v38  ;;  %v1760_v46 = vmul.f32 %v4045_v56, %v3494_v33  ;;  %v1761_v32 = vmul.f32 %v4045_v56, %v4048_v58  ;;  %v1786_v2 = vmul.f32 %v3574_v10, %v4049_v57  ;;  %v4051_v33 = vld [vmem:[#allocation6_spill] sm:$0xff]  ;;  %v4053_v62 = vld [vmem:[#allocation59_spill] sm:$0xff]  ;;  %v4054_v31 = vld [vmem:[#allocation53_spill] sm:$0xff] }
 0x15b   : > { %v1687_v50 = vadd.f32 %v4043_v8, %v1674_v36  ;;  %v1533_v61 = vadd.f32 %v4046_v19, %v1520_v25  ;;  %v1623_v15 = vadd.f32 %v4047_v39, %v1610_v53  ;;  %v1773_v60 = vmul.f32 %v4050_v42, %v3505_v29  ;;  %v825_v29 = vld [vmem:[#allocation2 + $0x7] sm:$0xff]  ;;  %v1638_v11 = vld [vmem:[#allocation3 + $0x4d] sm:$0xff] }
 0x15c   : > { %v1764_v3 = vadd.f32 %v1760_v46, %v1751_v17  ;;  %v3604_v5 = vrot.slane %v3563_v12, %v4051_v33  ;;  %v801_v36 = vmul.f32 %v3582_v0, %v793_v35  ;;  %v817_v38 = vmul.f32 %v3586_v55, %v809_v40  ;;  %v4055_v43 = vld [vmem:[#allocation15_spill] sm:$0xff]  ;;  %v4056_v63 = vld [vmem:[#allocation46_spill] sm:$0xff] }
 0x15d   : > { %v1700_v30 = vadd.f32 %v1696_v59, %v1687_v50  ;;  %v1546_v52 = vadd.f32 %v4052_v54, %v1533_v61  ;;  %v1636_v13 = vadd.f32 %v4053_v62, %v1623_v15  ;;  %v802_v59 = vmul.f32 %v3582_v0, %v794_v24  ;;  %v826_v17 = vld [vmem:[#allocation2 + $0xf] sm:$0xff]  ;;  %v1651_v40 = vld [vmem:[#allocation3 + $0x4e] sm:$0xff] }
 0x15e   : > { %v1777_v27 = vadd.f32 %v1773_v60, %v1764_v3  ;;  %v818_v25 = vmul.f32 %v3586_v55, %v810_v44  ;;  %v1774_v8 = vmul.f32 %v4050_v42, %v4056_v63  ;;  %v1787_v50 = vmul.f32 %v3574_v10, %v4022_v21  ;;  %v3619_v19 = vld [vmem:[#allocation3 + $0x4f] sm:$0xff]  ;;  %v4057_v61 = vld [vmem:[#allocation7_spill] sm:$0xff]  ;;  %v4061_v62 = vld [vmem:[#allocation60_spill] sm:$0xff] }
 0x15f   : > { %v1713_v28 = vadd.f32 %v1709_v34, %v1700_v30  ;;  %v1559_v53 = vadd.f32 %v4054_v31, %v1546_v52  ;;  %v1649_v14 = vadd.f32 %v4055_v43, %v1636_v13  ;;  %v1633_v35 = vmul.f32 %v3012_v16, %v1625_v26  ;;  %v4058_v15 = vld [vmem:[#allocation54_spill] sm:$0xff]  ;;  %v841_v44 = vld [vmem:[#allocation2 + $0x8] sm:$0xff]  ;;  %v4060_v54 = vld [vmem:[#allocation57_spill] sm:$0xff] }
 0x160   : > { %v1790_v34 = vadd.f32 %v1786_v2, %v1777_v27  ;;  %v3623_v39 = vrot.slane %v3563_v12, %v4057_v61  ;;  %v4059_v57 = vld [vmem:[#allocation26_spill] sm:$0xff]  ;;  %v821_v2 = vadd.f32 %v817_v38, %v801_v36  ;;  %v833_v16 = vmul.f32 %v3604_v5, %v825_v29  ;;  %v842_v36 = vld [vmem:[#allocation2 + $0x10] sm:$0xff] }
 0x161   : > { %v1726_v46 = vadd.f32 %v1722_v37, %v1713_v28  ;;  %v1572_v58 = vadd.f32 %v4058_v15, %v1559_v53  ;;  %v1662_v24 = vadd.f32 %v4059_v57, %v1649_v14  ;;  %v3630_v21 = vld [vmem:[%s3862_s8] ss:$0 sm:$0xff]  ;;  %v1646_v3 = vmul.f32 %v4004_v47, %v1638_v11  ;;  %v4063_v53 = vld [vmem:[#allocation8_spill] sm:$0xff] }
 0x162   : > { %v3632_v37 = vld [vmem:[#allocation3 + $0x50] sm:$0xff]  ;;  %v822_v60 = vadd.f32 %v818_v25, %v802_v59  ;;  %v834_v33 = vmul.f32 %v3604_v5, %v826_v17  ;;  %v1659_v28 = vmul.f32 %v4018_v7, %v1651_v40  ;;  %v3642_v27 = vmul.f32 %v4019_v1, %v3619_v19  ;;  %v4062_v59 = vld [vmem:[#allocation24_spill] sm:$0xff] }
 0x163   : > { %v1739_v30 = vadd.f32 %v1735_v23, %v1726_v46  ;;  %v1585_v52 = vadd.f32 %v4060_v54, %v1572_v58  ;;  %v1675_v13 = vadd.f32 %v4061_v62, %v1662_v24  ;;  %v3645_v29 = vadd.f32 %v3630_v21, %v1790_v34  ;;  %v4065_v46 = vld [vmem:[#allocation25_spill] sm:$0xff]  ;;  %v873_v62 = vld [vmem:[#allocation2 + $0xa] sm:$0xff] }
 0x164   : > { %v3649_v47 = vmul.f32 %v4020_v41, %v3632_v37  ;;  %v849_v23 = vmul.f32 %v3623_v39, %v841_v44  ;;  %v837_v7 = vadd.f32 %v833_v16, %v821_v2  ;;  %v3656_v1 = vrot.slane %v3563_v12, %v4063_v53  ;;  %v857_v41 = vld [vmem:[#allocation2 + $0x9] sm:$0xff]  ;;  %v795_v58 = vld [vmem:[#allocation2 + $0x15] sm:$0xff] }
 0x165   : > { %v1752_v38 = vadd.f32 %v1748_v45, %v1739_v30  ;;  %v1598_v25 = vadd.f32 %v4062_v59, %v1585_v52  ;;  %v1688_v31 = vadd.f32 %v3531_v22, %v1675_v13  ;;  %v4064_v45 = vld [vmem:[#allocation58_spill] sm:$0xff]  ;;  %v838_v63 = vadd.f32 %v834_v33, %v822_v60  ;;  %v811_v57 = vld [vmem:[#allocation2 + $0x16] sm:$0xff] }
 0x166   : > { %v1723_v14 = vmul.f32 %v4027_v51, %v4064_v45  ;;  %v850_v17 = vmul.f32 %v3623_v39, %v842_v36  ;;  %v1736_v15 = vmul.f32 %v4032_v49, %v1625_v26  ;;  %v1749_v22 = vmul.f32 %v4037_v18, %v1638_v11  ;;  %v4066_v16 = vld [vmem:[#allocation9_spill] sm:$0xff]  ;;  %v4067_v33 = vld [vmem:[#allocation12_spill] sm:$0xff]  ;;  %v1690_v59 = vld [vmem:[#allocation3 + $0x51] sm:$0xff] }
 0x167   : > { %v1765_v43 = vadd.f32 %v1761_v32, %v1752_v38  ;;  %v1611_v34 = vadd.f32 %v4065_v46, %v1598_v25  ;;  %v1701_v61 = vadd.f32 %v3542_v9, %v1688_v31  ;;  %v1829_v32 = vmul.f32 0.70710677, %v3645_v29  ;;  %v796_v30 = vld [vmem:[#allocation2 + $0x1d] sm:$0xff]  ;;  %v858_v52 = vld [vmem:[#allocation2 + $0x11] sm:$0xff] }
 0x168   : > { %v1762_v2 = vmul.f32 %v4045_v56, %v1651_v40  ;;  %v3669_v44 = vrot.slane %v3563_v12, %v4066_v16  ;;  %v812_v60 = vld [vmem:[#allocation2 + $0x1e] sm:$0xff]  ;;  %v853_v26 = vadd.f32 %v849_v23, %v837_v7  ;;  %v865_v11 = vmul.f32 %v3656_v1, %v857_v41  ;;  %v889_v46 = vld [vmem:[#allocation2 + $0xb] sm:$0xff] }
 0x169   : > { %v1778_v24 = vadd.f32 %v1774_v8, %v1765_v43  ;;  %v1624_v54 = vadd.f32 %v4067_v33, %v1611_v34  ;;  %v1714_v9 = vadd.f32 %v3554_v48, %v1701_v61  ;;  %v854_v13 = vadd.f32 %v850_v17, %v838_v63  ;;  %v827_v43 = vld [vmem:[#allocation2 + $0x17] sm:$0xff]  ;;  %v828_v7 = vld [vmem:[#allocation2 + $0x1f] sm:$0xff] }
 0x16a   : > { %v803_v36 = vmul.f32 %v3582_v0, %v795_v58  ;;  %v819_v40 = vmul.f32 %v3586_v55, %v811_v57  ;;  %v804_v31 = vmul.f32 %v3582_v0, %v796_v30  ;;  %v820_v53 = vmul.f32 %v3586_v55, %v812_v60  ;;  %v4068_v41 = vld [vmem:[#allocation10_spill] sm:$0xff] }
 0x16b   : > { %v1791_v8 = vadd.f32 %v1787_v50, %v1778_v24  ;;  %v1637_v38 = vadd.f32 %v1633_v35, %v1624_v54  ;;  %v1727_v25 = vadd.f32 %v1723_v14, %v1714_v9  ;;  %2529 = verf.f32 %v1829_v32  ;;  %v874_v35 = vld [vmem:[#allocation2 + $0x12] sm:$0xff]  ;;  %v1703_v32 = vld [vmem:[#allocation3 + $0x52] sm:$0xff] }
 0x16c   : > { %v866_v23 = vmul.f32 %v3656_v1, %v858_v52  ;;  %v881_v50 = vmul.f32 %v3669_v44, %v873_v62  ;;  %v869_v17 = vadd.f32 %v865_v11, %v853_v26  ;;  %v3685_v14 = vrot.slane %v3563_v12, %v4068_v41  ;;  %v844_v60 = vld [vmem:[#allocation2 + $0x20] sm:$0xff] }
 0x16d   : > { %v3679_v48 = vadd.f32 %v3630_v21, %v1791_v8  ;;  %v1650_v45 = vadd.f32 %v1646_v3, %v1637_v38  ;;  %v1740_v63 = vadd.f32 %v1736_v15, %v1727_v25  ;;  %v1698_v55 = vmul.f32 %v4021_v4, %v1690_v59  ;;  %v843_v15 = vld [vmem:[#allocation2 + $0x18] sm:$0xff]  ;;  %v1716_v33 = vld [vmem:[#allocation3 + $0x53] sm:$0xff] }
 0x16e   : > { %v823_v34 = vadd.f32 %v819_v40, %v803_v36  ;;  %v835_v61 = vmul.f32 %v3604_v5, %v827_v43  ;;  %v824_v24 = vadd.f32 %v820_v53, %v804_v31  ;;  %v836_v3 = vmul.f32 %v3604_v5, %v828_v7  ;;  %v859_v8 = vld [vmem:[#allocation2 + $0x19] sm:$0xff]  ;;  %v860_v40 = vld [vmem:[#allocation2 + $0x21] sm:$0xff] }
 0x16f   : > { %v1830_v0 = vmul.f32 0.70710677, %v3679_v48  ;;  %v1663_v58 = vadd.f32 %v1659_v28, %v1650_v45  ;;  %v1753_v57 = vadd.f32 %v1749_v22, %v1740_v63  ;;  %v1775_v12 = vmul.f32 %v4050_v42, %v3619_v19  ;;  %v890_v28 = vld [vmem:[#allocation2 + $0x13] sm:$0xff]  ;;  %v1742_v59 = vld [vmem:[#allocation3 + $0x55] sm:$0xff] }
 0x170   : > { %v870_v16 = vadd.f32 %v866_v23, %v854_v13  ;;  %v882_v30 = vmul.f32 %v3669_v44, %v874_v35  ;;  %v885_v9 = vadd.f32 %v881_v50, %v869_v17  ;;  %v897_v22 = vmul.f32 %v3685_v14, %v889_v46  ;;  %v1755_v25 = vld [vmem:[#allocation3 + $0x56] sm:$0xff]  ;;  %v875_v63 = vld [vmem:[#allocation2 + $0x1a] sm:$0xff] }
 0x171   : > { %2531 = verf.f32 %v1830_v0  ;;  %v1676_v4 = vadd.f32 %v3642_v27, %v1663_v58  ;;  %v1766_v54 = vadd.f32 %v1762_v2, %v1753_v57  ;;  %v839_v26 = vadd.f32 %v835_v61, %v823_v34  ;;  %v1729_v27 = vld [vmem:[#allocation3 + $0x54] sm:$0xff] }
 0x172   : > { %v851_v5 = vmul.f32 %v3623_v39, %v843_v15  ;;  %v1711_v11 = vmul.f32 %v4023_v6, %v1703_v32  ;;  %v840_v19 = vadd.f32 %v836_v3, %v824_v24  ;;  %v852_v62 = vmul.f32 %v3623_v39, %v844_v60  ;;  %v2417_v39 = vld [vmem:[%s3860_s6] ss:$0 sm:$0xff]  ;;  %v876_v17 = vld [vmem:[#allocation2 + $0x22] sm:$0xff] }
 0x173   : > { %v1689_v52 = vadd.f32 %v3649_v47, %v1676_v4  ;;  %v1724_v13 = vmul.f32 %v4027_v51, %v1716_v33  ;;  %v886_v36 = vadd.f32 %v882_v30, %v870_v16  ;;  %v898_v2 = vmul.f32 %v3685_v14, %v890_v28  ;;  %v1768_v46 = vld [vmem:[#allocation3 + $0x57] sm:$0xff] }
 0x174   : > { %v1779_v31 = vadd.f32 %v1775_v12, %v1766_v54  ;;  %v1788_v47 = vmul.f32 %v3574_v10, %v3632_v37  ;;  %v901_v53 = vadd.f32 %v897_v22, %v885_v9  ;;  %v855_v43 = vadd.f32 %v851_v5, %v839_v26  ;;  %v1781_v32 = vld [vmem:[#allocation3 + $0x58] sm:$0xff]  ;;  %v891_v12 = vld [vmem:[#allocation2 + $0x1b] sm:$0xff] }
 0x175   : > { %v1702_v38 = vadd.f32 %v1698_v55, %v1689_v52  ;;  %v2530_v6 = vpop.eup %2529  ;;  %v867_v51 = vmul.f32 %v3656_v1, %v859_v8  ;;  %v1737_v50 = vmul.f32 %v4032_v49, %v1729_v27  ;;  %v856_v7 = vadd.f32 %v852_v62, %v840_v19  ;;  %v892_v60 = vld [vmem:[#allocation2 + $0x23] sm:$0xff] }
 0x176   : > { %v868_v45 = vmul.f32 %v3656_v1, %v860_v40  ;;  %v1750_v35 = vmul.f32 %v4037_v18, %v1742_v59  ;;  %v1763_v37 = vmul.f32 %v4045_v56, %v1755_v25  ;;  %v902_v41 = vadd.f32 %v898_v2, %v886_v36 }
 0x177   : > { %v1715_v23 = vadd.f32 %v1711_v11, %v1702_v38  ;;  %v1837_v0 = vadd.f32 1.0, %v2530_v6  ;;  %v1792_v34 = vadd.f32 %v1788_v47, %v1779_v31  ;;  %v912_v61 = vadd.f32 %v2417_v39, %v901_v53 }
 0x178   : > { %v1825_v57 = vmul.f32 0.5, %v3645_v29  ;;  %v871_v24 = vadd.f32 %v867_v51, %v855_v43  ;;  %v883_v49 = vmul.f32 %v3669_v44, %v875_v63  ;;  %v884_v1 = vmul.f32 %v3669_v44, %v876_v17 }
 0x179   : > { %v1728_v55 = vadd.f32 %v1724_v13, %v1715_v23  ;;  %v1826_v3 = vmul.f32 0.5, %v3679_v48  ;;  %v872_v56 = vadd.f32 %v868_v45, %v856_v7  ;;  %v1776_v16 = vmul.f32 %v4050_v42, %v1768_v46 }
 0x17a   : > { %v913_v30 = vadd.f32 %v2417_v39, %v902_v41  ;;  %v1841_v4 = vmul.f32 %v1837_v0, %v1825_v57  ;;  %v1803_v29 = vadd.f32 %v3630_v21, %v1792_v34  ;;  %v1789_v9 = vmul.f32 %v3574_v10, %v1781_v32 }
 0x17b   : > { %v2532_v58 = vpop.eup %2531  ;;  %v1741_v18 = vadd.f32 %v1737_v50, %v1728_v55  ;;  %v1809_v28 = vmul.f32 0.70710677, %v912_v61  ;;  %v887_v44 = vadd.f32 %v883_v49, %v871_v24  ;;  %v899_v48 = vmul.f32 %v3685_v14, %v891_v12  ;;  %v2424_v24 = vld [vmem:[%s3865_s11] ss:$0 sm:$0xff] }
 0x17c   : > { %v1838_v15 = vadd.f32 1.0, %v2532_v58  ;;  %v888_v5 = vadd.f32 %v884_v1, %v872_v56  ;;  %v900_v52 = vmul.f32 %v3685_v14, %v892_v60  ;;  %v1810_v11 = vmul.f32 0.70710677, %v913_v30 }
 0x17d   : > { %v1754_v54 = vadd.f32 %v1750_v35, %v1741_v18  ;;  %v1831_v19 = vmul.f32 0.70710677, %v1803_v29  ;;  %v903_v62 = vadd.f32 %v899_v48, %v887_v44  ;;  %2533 = verf.f32 %v1809_v28  ;;  %v2573_v18 = vld [vmem:[%s2713_s30 + $0x10] sm:$0xff] }
 0x17e   : > { %v1842_v33 = vmul.f32 %v1838_v15, %v1826_v3  ;;  %v904_v13 = vadd.f32 %v900_v52, %v888_v5  ;;  %2535 = verf.f32 %v1810_v11  ;;  %v1805_v31 = vmul.f32 0.5, %v912_v61 }
 0x17f   : > { %v1767_v26 = vadd.f32 %v1763_v37, %v1754_v54  ;;  %2537 = verf.f32 %v1831_v19  ;;  %v914_v27 = vadd.f32 %v2417_v39, %v903_v62  ;;  %v1806_v47 = vmul.f32 0.5, %v913_v30 }
 0x180   : > { %v1848_v22 = vpack.c.bf16 %v1842_v33, %v1841_v4  ;;  %v915_v2 = vadd.f32 %v2417_v39, %v904_v13  ;;  %v1827_v23 = vmul.f32 0.5, %v1803_v29  ;;  %v2575_v4 = vld [vmem:[%s2713_s30 + $0x18] sm:$0xff]  ;;  %v2576_v29 = vld [vmem:[%s2713_s30 + $0x8] sm:$0xff] }
 0x181   : > { %v1780_v42 = vadd.f32 %v1776_v16, %v1767_v26  ;;  %v1811_v40 = vmul.f32 0.70710677, %v914_v27  ;;  %v1807_v0 = vmul.f32 0.5, %v914_v27  ;;  %v2574_v16 = vld [vmem:[%s2713_s30] sm:$0xff]  ;;  %s629_s30 = scalar_lea.vmem %s3874_s20, %s2442_s27 }
 0x182   : > { %2479 = vmatprep.mubr.msk.bf16.mxu0 %vm772_vm1, %v1848_v22  ;;  %v1812_v38 = vmul.f32 0.70710677, %v915_v2  ;;  %v1808_v55 = vmul.f32 0.5, %v915_v2 }
 0x183   : > { %v1793_v8 = vadd.f32 %v1789_v9, %v1780_v42 }
 0x185   : > { %v1804_v10 = vadd.f32 %v3630_v21, %v1793_v8 }
 0x187   : > { %v1832_v36 = vmul.f32 0.70710677, %v1804_v10  ;;  %v2534_v14 = vpop.eup %2533  ;;  %v1828_v21 = vmul.f32 0.5, %v1804_v10 }
 0x188   : > { %v2536_v59 = vpop.eup %2535  ;;  %v1817_v53 = vadd.f32 1.0, %v2534_v14 }
 0x189   : > { %2539 = verf.f32 %v1832_v36  ;;  %v2538_v25 = vpop.eup %2537  ;;  %v1818_v6 = vadd.f32 1.0, %v2536_v59 }
 0x18a   : > { %2541 = verf.f32 %v1811_v40  ;;  %v1839_v43 = vadd.f32 1.0, %v2538_v25  ;;  %v1821_v7 = vmul.f32 %v1817_v53, %v1805_v31 }
 0x18b   : > { %2543 = verf.f32 %v1812_v38  ;;  %v1822_v45 = vmul.f32 %v1818_v6, %v1806_v47  ;;  %v2524_v47 = vld [vmem:[%s3868_s14] sm:$0xff]  }
 0x18c   : > { %v1843_v39 = vmul.f32 %v1839_v43, %v1827_v23  ;;  %2489 = vmatprep.subr.bf16.mxu1 %v2524_v47 }
 0x18d   : > { %v1845_v41 = vpack.c.bf16 %v1822_v45, %v1821_v7  ;;  %2490 = vmatpush3.bf16.msra.mxu1 %v2524_v47 }
 0x193   : > { %v2540_v51 = vpop.eup %2539 }
 0x194   : > { %v1840_v50 = vadd.f32 1.0, %v2540_v51  ;;  %v2542_v17 = vpop.eup %2541 }
 0x195   : > { %v2544_v37 = vpop.eup %2543  ;;  %v1819_v46 = vadd.f32 1.0, %v2542_v17 }
 0x196   : > { %v1844_v63 = vmul.f32 %v1840_v50, %v1828_v21  ;;  %v1820_v34 = vadd.f32 1.0, %v2544_v37 }
 0x197   : > { %v1823_v61 = vmul.f32 %v1819_v46, %v1807_v0 }
 0x198   : > { %v1849_v35 = vpack.c.bf16 %v1844_v63, %v1843_v39  ;;  %v1824_v58 = vmul.f32 %v1820_v34, %v1808_v55 }
 0x19a   : > { %2480 = vmatmul.mubr.msk.bf16.vlgmr.msra.gmra.mrb[4].mxu0 %vm772_vm1, %v1849_v35  ;;  %v1846_v57 = vpack.c.bf16 %v1824_v58, %v1823_v61 }
 0x19b   : > { %2484 = vmatpush3.bf16.msra.mxu0 %v3499_v20  ;;  %2485 = vmatprep.mubr.msk.bf16.mxu0 %vm772_vm1, %v1845_v41 }
 0x1a6   : > { %2486 = vmatmul.mubr.msk.bf16.vlgmr.msra.gmra.mrb[4].mxu0 %vm772_vm1, %v1846_v57 }
 0x279   : > { %v2487_v20 = vpop.f32.mrb[4].mxu0 }
 0x27a   : > { %v1977_v49 = vadd.f32 %v2487_v20, %v2424_v24  ;;  %v1953_v1 = vpop.f32.mrb[5].mxu0 }
 0x27b   : > { %v1975_v3 = vadd.f32 %v2424_v24, %v1953_v1  ;;  %v2488_v15 = vpop.f32.mrb[6].mxu0 }
 0x27c   : > { %v3731_v32 = vadd.f32 %v2573_v18, %v1977_v49  ;;  %v1978_v56 = vadd.f32 %v2488_v15, %v2424_v24  ;;  %v1956_v12 = vpop.f32.mrb[7].mxu0 }
 0x27d   : > { %v3734_v30 = vadd.f32 %v2574_v16, %v1975_v3  ;;  %v1976_v60 = vadd.f32 %v2424_v24, %v1956_v12 }
 0x27e   : > { %v3737_v33 = vadd.f32 %v2575_v4, %v1978_v56  ;;  %v1989_v54 = vsel %vm652_vm0, %v3731_v32, 0.0 }
 0x27f   : > { %v3742_v9 = vadd.f32 %v2576_v29, %v1976_v60  ;;  %1990 = vadd.xlane.f32.xlu1 %v1989_v54  ;;  %v1983_v28 = vsel %vm652_vm0, %v3734_v30, 0.0  ;;  %v2425_v54 = vld [vmem:[%s3866_s12] ss:$0 sm:$0xff] }
 0x280   : > { %1984 = vadd.xlane.f32.xlu0 %v1983_v28  ;;  %v1992_v44 = vsel %vm652_vm0, %v3737_v33, 0.0 }
 0x281   : > { %v1986_v48 = vsel %vm652_vm0, %v3742_v9, 0.0 }
 0x283   : > { %1993 = vadd.xlane.f32.xlu1 %v1992_v44 }
 0x284   : > { %1987 = vadd.xlane.f32.xlu0 %v1986_v48 }
 0x30c   : > { %v1991_v22 = vpop.xlane.xlu1 %1990 }
 0x30d   : > { %v1998_v26 = vmul.f32 0.0625, %v1991_v22  ;;  %v1985_v5 = vpop.xlane.xlu0 %1984  ;;  %v2426_v22 = vld [vmem:[%s3867_s13] ss:$0 sm:$0xff] }
 0x30e   : > { %v1996_v52 = vmul.f32 0.0625, %v1985_v5 }
 0x30f   : > { %v3751_v11 = vsub.f32 %v3731_v32, %v1998_v26 }
 0x310   : > { %v3754_v42 = vsub.f32 %v3734_v30, %v1996_v52  ;;  %v1994_v19 = vpop.xlane.xlu1 %1993 }
 0x311   : > { %v1999_v62 = vmul.f32 0.0625, %v1994_v19  ;;  %v1988_v8 = vpop.xlane.xlu0 %1987  ;;  %v2006_v40 = vmul.f32 %v3751_v11, %v3751_v11 }
 0x312   : > { %v1997_v13 = vmul.f32 0.0625, %v1988_v8  ;;  %v2004_v10 = vmul.f32 %v3754_v42, %v3754_v42 }
 0x313   : > { %v3759_v27 = vsub.f32 %v3737_v33, %v1999_v62  ;;  %v2014_v14 = vsel %vm652_vm0, %v2006_v40, 0.0 }
 0x314   : > { %v3762_v36 = vsub.f32 %v3742_v9, %v1997_v13  ;;  %v2008_v2 = vsel %vm652_vm0, %v2004_v10, 0.0 }
 0x315   : > { %2009 = vadd.xlane.f32.xlu0 %v2008_v2  ;;  %v2007_v25 = vmul.f32 %v3759_v27, %v3759_v27 }
 0x316   : > { %v2005_v38 = vmul.f32 %v3762_v36, %v3762_v36 }
 0x317   : > { %v2017_v31 = vsel %vm652_vm0, %v2007_v25, 0.0 }
 0x318   : > { %v2011_v59 = vsel %vm652_vm0, %v2005_v38, 0.0 }
 0x319   : > { %2015 = vadd.xlane.f32.xlu0 %v2014_v14  ;;  %2012 = vadd.xlane.f32.xlu1 %v2011_v59 }
 0x31d   : > { %2018 = vadd.xlane.f32.xlu1 %v2017_v31 }
 0x3a2   : > { %v2010_v53 = vpop.xlane.xlu0 %2009 }
 0x3a3   : > { %v2020_v6 = vmul.f32 0.0625, %v2010_v53 }
 0x3a5   : > { %v2024_v43 = vadd.f32 1e-06, %v2020_v6 }
 0x3a6   : > { %v2013_v51 = vpop.xlane.xlu1 %2012  ;;  %v2016_v23 = vpop.xlane.xlu0 %2015 }
 0x3a7   : > { %2545 = vrsqrt.f32 %v2024_v43  ;;  %v2021_v21 = vmul.f32 0.0625, %v2013_v51  ;;  %v2022_v50 = vmul.f32 0.0625, %v2016_v23  ;;  %vm2030_vm4 = vcmp.eq.f32.partialorder %v2024_v43, inf }
 0x3a8   : > { %v2033_v41 = vand.u32 2147483648, %v2024_v43  ;;  %vm2032_vm5 = vcmp.eq.f32.partialorder %v2024_v43, 0.0 }
 0x3a9   : > { %v2025_v7 = vadd.f32 1e-06, %v2021_v21  ;;  %v2026_v45 = vadd.f32 1e-06, %v2022_v50 }
 0x3aa   : > { %v2019_v39 = vpop.xlane.xlu1 %2018 }
 0x3ab   : > { %v2023_v63 = vmul.f32 0.0625, %v2019_v39  ;;  %2547 = vrsqrt.f32 %v2025_v7  ;;  %vm2037_vm6 = vcmp.eq.f32.partialorder %v2025_v7, inf  ;;  %v2040_v58 = vand.u32 2147483648, %v2025_v7 }
 0x3ac   : > { %2549 = vrsqrt.f32 %v2026_v45  ;;  %vm2039_vm7 = vcmp.eq.f32.partialorder %v2025_v7, 0.0  ;;  %vm2044_vm8 = vcmp.eq.f32.partialorder %v2026_v45, inf  ;;  %v2047_v20 = vand.u32 2147483648, %v2026_v45 }
 0x3ad   : > { %v2027_v17 = vadd.f32 1e-06, %v2023_v63  ;;  %vm2046_vm9 = vcmp.eq.f32.partialorder %v2026_v45, 0.0 }
 0x3af   : > { %2551 = vrsqrt.f32 %v2027_v17  ;;  %vm2051_vm10 = vcmp.eq.f32.partialorder %v2027_v17, inf  ;;  %v2054_v56 = vand.u32 2147483648, %v2027_v17  ;;  %vm2053_vm11 = vcmp.eq.f32.partialorder %v2027_v17, 0.0 }
 0x3b1   : > { %v2546_v35 = vpop.eup %2545 }
 0x3b2   : > { %v2029_v37 = vmul.f32 %v2546_v35, %v2024_v43 }
 0x3b4   : > { %v2031_v0 = vsel %vm2030_vm4, %v2024_v43, %v2029_v37 }
 0x3b5   : > { %v2034_v55 = vsel %vm2032_vm5, %v2033_v41, %v2031_v0  ;;  %v2548_v46 = vpop.eup %2547 }
 0x3b6   : > { %2553 = vrcp.f32 %v2034_v55  ;;  %v2550_v34 = vpop.eup %2549  ;;  %v2036_v61 = vmul.f32 %v2548_v46, %v2025_v7 }
 0x3b7   : > { %v2043_v57 = vmul.f32 %v2550_v34, %v2026_v45 }
 0x3b8   : > { %v2038_v24 = vsel %vm2037_vm6, %v2025_v7, %v2036_v61 }
 0x3b9   : > { %v2552_v49 = vpop.eup %2551  ;;  %v2041_v1 = vsel %vm2039_vm7, %v2040_v58, %v2038_v24  ;;  %v2045_v3 = vsel %vm2044_vm8, %v2026_v45, %v2043_v57 }
 0x3ba   : > { %2555 = vrcp.f32 %v2041_v1  ;;  %v2048_v15 = vsel %vm2046_vm9, %v2047_v20, %v2045_v3  ;;  %v2050_v18 = vmul.f32 %v2552_v49, %v2027_v17 }
 0x3bb   : > { %2557 = vrcp.f32 %v2048_v15 }
 0x3bc   : > { %v2052_v12 = vsel %vm2051_vm10, %v2027_v17, %v2050_v18 }
 0x3bd   : > { %v2055_v16 = vsel %vm2053_vm11, %v2054_v56, %v2052_v12 }
 0x3be   : > { %2559 = vrcp.f32 %v2055_v16 }
 0x3c0   : > { %v2554_v60 = vpop.eup %2553 }
 0x3c1   : > { %v2057_v4 = vmul.f32 %v2554_v60, %v3754_v42 }
 0x3c3   : > { %v2071_v48 = vmul.f32 %v2425_v54, %v2057_v4 }
 0x3c4   : > { %v2556_v29 = vpop.eup %2555 }
 0x3c5   : > { %v2558_v28 = vpop.eup %2557  ;;  %v2059_v44 = vmul.f32 %v2556_v29, %v3762_v36  ;;  %v2082_v19 = vadd.f32 %v2426_v22, %v2071_v48 }
 0x3c6   : > { %v2061_v26 = vmul.f32 %v2558_v28, %v3751_v11  ;;  %v2427_v11 = vld [vmem:[%s3869_s15] ss:$0 sm:$0xff] }
 0x3c7   : > { %v2072_v5 = vmul.f32 %v2425_v54, %v2059_v44 }
 0x3c8   : > { %v2560_v52 = vpop.eup %2559  ;;  %v2073_v8 = vmul.f32 %v2425_v54, %v2061_v26 }
 0x3c9   : > { %v2083_v62 = vadd.f32 %v2426_v22, %v2072_v5  ;;  %v2063_v42 = vmul.f32 %v2560_v52, %v3759_v27 }
 0x3ca   : > { %v2084_v2 = vadd.f32 %v2426_v22, %v2073_v8  ;;  %v2527_v8 = vld [vmem:[%s3872_s18 + $0x10] sm:$0xff]  }
 0x3cb   : > { %v2086_v13 = vpack.c.bf16 %v2083_v62, %v2082_v19  ;;  %v2074_v10 = vmul.f32 %v2425_v54, %v2063_v42  ;;  %v2525_v62 = vld [vmem:[%s3872_s18] sm:$0xff]   ;;  %v2526_v42 = vld [vmem:[%s3872_s18 + $0x8] sm:$0xff]  }
 0x3cc   : > { %2495 = vmatprep.subr.bf16.mxu1 %v2525_v62 }
 0x3cd   : > { %2491 = vmatprep.mubr.msk.bf16.mxu1 %vm652_vm0, %v2086_v13  ;;  %v2085_v36 = vadd.f32 %v2426_v22, %v2074_v10  ;;  %v2528_v13 = vld [vmem:[%s3872_s18 + $0x18] sm:$0xff]  }
 0x3cf   : > { %v2087_v40 = vpack.c.bf16 %v2085_v36, %v2084_v2 }
 0x3d1   : > { %2492 = vmatmul.mubr.msk.bf16.vlgmr.msra.gmra.mrb[4].mxu1 %vm652_vm0, %v2087_v40 }
 0x3d2   : > { %2496 = vmatpush3.bf16.msra.mxu1 %v2525_v62 }
 0x3d3   : > { %2497 = vmatprep.subr.bf16.mxu1 %v2526_v42 }
 0x3d6   : > { %2498 = vmatpush3.bf16.msra.mxu1 %v2526_v42 }
 0x3d7   : > { %2499 = vmatprep.subr.bf16.mxu1 %v2527_v8 }
 0x3da   : > { %2500 = vmatpush3.bf16.msra.mxu1 %v2527_v8 }
 0x3db   : > { %2501 = vmatprep.subr.bf16.mxu1 %v2528_v13 }
 0x3de   : > { %2502 = vmatpush3.bf16.msra.mxu1 %v2528_v13 }
 0x4a4   : > { %v2493_v38 = vpop.f32.mrb[4].mxu1 }
 0x4a5   : > { %v2152_v14 = vadd.f32 %v2493_v38, %v2427_v11  ;;  %v2143_v59 = vpop.f32.mrb[5].mxu1  ;;  %v2431_v38 = vld [vmem:[%s3870_s16] ss:$0 sm:$0xff] }
 0x4a6   : > { %v2144_v25 = vadd.f32 %v2427_v11, %v2143_v59  ;;  %v2494_v31 = vpop.f32.mrb[6].mxu1 }
 0x4a7   : > { %v2164_v27 = vmul.f32 0.70710677, %v2152_v14  ;;  %v2155_v47 = vadd.f32 %v2494_v31, %v2427_v11  ;;  %v2146_v53 = vpop.f32.mrb[7].mxu1  ;;  %v2160_v39 = vmul.f32 0.5, %v2152_v14 }
 0x4a8   : > { %v2162_v6 = vmul.f32 0.70710677, %v2144_v25  ;;  %v2147_v43 = vadd.f32 %v2427_v11, %v2146_v53  ;;  %v2158_v63 = vmul.f32 0.5, %v2144_v25 }
 0x4a9   : > { %2561 = verf.f32 %v2164_v27  ;;  %v2165_v51 = vmul.f32 0.70710677, %v2155_v47  ;;  %v2161_v37 = vmul.f32 0.5, %v2155_v47  ;;  %v2432_v27 = vld [vmem:[%s3871_s17] ss:$0 sm:$0xff] }
 0x4aa   : > { %2563 = verf.f32 %v2162_v6  ;;  %v2163_v23 = vmul.f32 0.70710677, %v2147_v43  ;;  %v2159_v46 = vmul.f32 0.5, %v2147_v43 }
 0x4ab   : > { %2565 = verf.f32 %v2165_v51 }
 0x4ac   : > { %2567 = verf.f32 %v2163_v23 }
 0x4b3   : > { %v2562_v21 = vpop.eup %2561 }
 0x4b4   : > { %v2564_v50 = vpop.eup %2563  ;;  %v2172_v7 = vadd.f32 1.0, %v2562_v21 }
 0x4b5   : > { %v2566_v45 = vpop.eup %2565  ;;  %v2170_v17 = vadd.f32 1.0, %v2564_v50 }
 0x4b6   : > { %v2568_v35 = vpop.eup %2567  ;;  %v2173_v41 = vadd.f32 1.0, %v2566_v45  ;;  %v3792_v0 = vmul.f32 %v2172_v7, %v2160_v39 }
 0x4b7   : > { %v3794_v55 = vmul.f32 %v2170_v17, %v2158_v63  ;;  %v2171_v34 = vadd.f32 1.0, %v2568_v35 }
 0x4b8   : > { %v3798_v58 = vmul.f32 %v2173_v41, %v2161_v37  ;;  %v2180_v24 = vmul.f32 %v3792_v0, %v3792_v0  ;;  %v2433_v37 = vld [vmem:[%s3873_s19] ss:$0 sm:$0xff] }
 0x4b9   : > { %v2178_v61 = vmul.f32 %v3794_v55, %v3794_v55  ;;  %v2175_v57 = vmul.f32 %v2171_v34, %v2159_v46 }
 0x4ba   : > { %v2181_v1 = vmul.f32 %v3798_v58, %v3798_v58  ;;  %v2186_v18 = vsel %vm2182_vm12, %v2180_v24, 0.0 }
 0x4bb   : > { %v2179_v20 = vmul.f32 %v2175_v57, %v2175_v57  ;;  %v2183_v49 = vsel %vm2182_vm12, %v2178_v61, 0.0 }
 0x4bc   : > { %v2188_v12 = vsel %vm2182_vm12, %v2181_v1, 0.0 }
 0x4bd   : > { %v2184_v3 = vsel %vm2182_vm12, %v2179_v20, 0.0 }
 0x4be   : > { %v2185_v15 = vadd.f32 %v2184_v3, %v2183_v49 }
 0x4c0   : > { %v2187_v56 = vadd.f32 %v2186_v18, %v2185_v15 }
 0x4c2   : > { %v2189_v16 = vadd.f32 %v2188_v12, %v2187_v56 }
 0x4c4   : > { %v2190_v60 = vrot.slane %v2189_v16, 4 }
 0x4c6   : > { %v2191_v4 = vadd.f32 %v2190_v60, %v2189_v16 }
 0x4c8   : > { %v2192_v54 = vrot.slane %v2191_v4, 2 }
 0x4ca   : > { %v2193_v29 = vadd.f32 %v2192_v54, %v2191_v4 }
 0x4cc   : > { %v2194_v28 = vrot.slane %v2193_v29, 1 }
 0x4ce   : > { %v2195_v44 = vadd.f32 %v2194_v28, %v2193_v29 }
 0x4d0   : > { %2569 = vrsqrt.f32 %v2195_v44  ;;  %vm2198_vm13 = vcmp.eq.f32.partialorder %v2195_v44, inf  ;;  %v2201_v26 = vand.u32 2147483648, %v2195_v44  ;;  %vm2200_vm14 = vcmp.eq.f32.partialorder %v2195_v44, 0.0 }
 0x4da   : > { %v2570_v48 = vpop.eup %2569 }
 0x4db   : > { %v2197_v22 = vmul.f32 %v2570_v48, %v2195_v44 }
 0x4dd   : > { %v2199_v5 = vsel %vm2198_vm13, %v2195_v44, %v2197_v22 }
 0x4de   : > { %v2202_v52 = vsel %vm2200_vm14, %v2201_v26, %v2199_v5 }
 0x4df   : > { %v2203_v19 = vsel %vm2182_vm12, %v2202_v52, 0.0 }
 0x4e0   : > { %2204 = vadd.xlane.f32.xlu0 %v2203_v19 }
 0x56d   : > { %v2205_v10 = vpop.xlane.xlu0 %2204 }
 0x56e   : > { %v2207_v2 = vmul.f32 0.015625, %v2205_v10 }
 0x570   : > { %v2208_v36 = vadd.f32 1e-06, %v2207_v2 }
 0x572   : > { %2571 = vrcp.f32 %v2208_v36 }
 0x57c   : > { %v2572_v40 = vpop.eup %2571 }
 0x57d   : > { %v2210_v11 = vmul.f32 %v2572_v40, %v2202_v52 }
 0x57f   : > { %v2214_v14 = vmul.f32 %v2210_v11, %v3792_v0  ;;  %v2215_v59 = vmul.f32 %v2210_v11, %v3798_v58  ;;  %v2212_v25 = vmul.f32 %v2210_v11, %v3794_v55  ;;  %v2213_v31 = vmul.f32 %v2210_v11, %v2175_v57 }
 0x581   : > { %v2222_v47 = vmul.f32 %v2431_v38, %v2212_v25  ;;  %v2223_v53 = vmul.f32 %v2431_v38, %v2213_v31  ;;  %v2224_v6 = vmul.f32 %v2431_v38, %v2214_v14  ;;  %v2225_v43 = vmul.f32 %v2431_v38, %v2215_v59 }
 0x583   : > { %v2233_v51 = vadd.f32 %v2432_v27, %v2222_v47  ;;  %v2234_v23 = vadd.f32 %v2432_v27, %v2223_v53  ;;  %v2235_v21 = vadd.f32 %v2432_v27, %v2224_v6  ;;  %v2236_v50 = vadd.f32 %v2432_v27, %v2225_v43 }
 0x585   : > { %v2237_v7 = vadd.f32 %v2233_v51, %v3794_v55  ;;  %v2238_v45 = vadd.f32 %v2234_v23, %v2175_v57  ;;  %v2239_v39 = vadd.f32 %v2235_v21, %v3792_v0  ;;  %v2240_v63 = vadd.f32 %v2236_v50, %v3798_v58 }
 0x587   : > { %v2241_v17 = vpack.c.bf16 %v2238_v45, %v2237_v7  ;;  %v2242_v35 = vpack.c.bf16 %v2240_v63, %v2239_v39 }
 0x589   : > { %2503 = vmatprep.mubr.msk.bf16.mxu1 %vm2182_vm12, %v2241_v17 }
 0x58a   : > { %2504 = vmatmul.mubr.msk.bf16.vlgmr.msra.gmra.mrb[8].mxu1 %vm2182_vm12, %v2242_v35 }
 0x65d   : > { %v2505_v41 = vpop.f32.mrb[8].mxu1 }
 0x65e   : > { %v2331_v46 = vadd.f32 %v2505_v41, %v2433_v37  ;;  %v2322_v34 = vpop.f32.mrb[9].mxu1 }
 0x65f   : > { %v2323_v0 = vadd.f32 %v2433_v37, %v2322_v34  ;;  %v2506_v55 = vpop.f32.mrb[10].mxu1 }
 0x660   : > { %v2339_v61 = vadd.f32 %v2331_v46, %v3731_v32  ;;  %v2334_v58 = vadd.f32 %v2506_v55, %v2433_v37  ;;  %v2325_v57 = vpop.f32.mrb[11].mxu1 }
 0x661   : > { %v2337_v24 = vadd.f32 %v2323_v0, %v3734_v30  ;;  %v2326_v20 = vadd.f32 %v2433_v37, %v2325_v57 }
 0x662   : > { %2343 = vst.msk [vmem:[%s629_s30 + $0x10] sm:$0xff] %vm652_vm0, %v2339_v61  ;;  %v2340_v49 = vadd.f32 %v2334_v58, %v3737_v33 }
 0x663   : > { %2341 = vst.msk [vmem:[%s629_s30] sm:$0xff] %vm652_vm0, %v2337_v24  ;;  %v2338_v1 = vadd.f32 %v2326_v20, %v3742_v9 }
 0x664   : > { %2344 = vst.msk [vmem:[%s629_s30 + $0x18] sm:$0xff] %vm652_vm0, %v2340_v49 }
 0x665   : > { %2342 = vst.msk [vmem:[%s629_s30 + $0x8] sm:$0xff] %vm652_vm0, %v2338_v1 }
 0x666 PF: > { %s30_s1 = sadd.s32 1, %s2583_s1  }
 0x667   : > { %p27_p4 = scmp.ge.s32.totalorder %s30_s1, 4  }
 0x669   :  { %29 = sbr.rel (!%p27_p4) target bundleno = 6 (0x6), region = 130 }

</bundles_post_ra>
